<compile_context>
chip_gen: v5e
topology: v5e:2x2
jax: 0.10.0
libtpu: 0.0.40
codegen_flags: <defaults>
</compile_context>

<pallas_src>
import functools
import math

import numpy as np

import jax
import jax.numpy as jnp
from jax.experimental import pallas as pl
from jax.experimental.pallas import tpu as pltpu


# ---------------------------------------------------------------------------
# Tiling helper
# ---------------------------------------------------------------------------

def pick_row_tile(m, target=512):
    """Largest row tile <= target that divides m and is a multiple of 8.
    Small m uses a single grid step (no artificial splitting: on 1-TC chips
    the grid is a serial loop and extra steps are pure overhead)."""
    if m <= target:
        return m
    for t in range(target, 7, -1):
        if m % t == 0 and t % 8 == 0:
            return t
    return m


def _cparams():
    return pltpu.CompilerParams(dimension_semantics=("parallel",),
                                vmem_limit_bytes=64 * 1024 * 1024)


# ---------------------------------------------------------------------------
# Pallas kernels
# ---------------------------------------------------------------------------

def _norm_qkv_rope_kernel(h_ref, lnw_ref, w_ref, b_ref, cos_ref, sin_ref,
                          o_ref, *, eps):
    """RMSNorm -> fused QKV matmul -> mRoPE.

    QKV column layout (halves-grouped): [q1|k1|vA || q2|k2|vB], so the rotate
    partner of lane j is lane j + NT/2 and the two halves are 128-lane aligned
    slices.  cos/sin tables are NT/2 wide, bf16; V lanes carry cos=1 / sin=0
    so V passes through the FMA unchanged.
    """
    x = h_ref[...].astype(jnp.float32)
    var = jnp.mean(x * x, axis=-1, keepdims=True)
    x = x * jax.lax.rsqrt(var + eps) * lnw_ref[...].astype(jnp.float32)
    qkv = jnp.dot(x.astype(w_ref.dtype), w_ref[...],
                  preferred_element_type=jnp.float32)
    qkv = qkv + b_ref[...].astype(jnp.float32)
    half_nt = qkv.shape[-1] // 2
    x1 = qkv[:, :half_nt]
    x2 = qkv[:, half_nt:]
    c = cos_ref[...].astype(jnp.float32)
    s = sin_ref[...].astype(jnp.float32)
    y1 = x1 * c - x2 * s            # first-half dims:  x1*cos + (-x2)*sin
    y2 = x2 * c + x1 * s            # second-half dims: x2*cos + ( x1)*sin
    o_ref[...] = jnp.concatenate([y1, y2], axis=-1).astype(o_ref.dtype)


def _attention_kernel(qkv_ref, o_ref, *, num_heads, num_kv_heads, head_dim,
                      scale):
    """Softmax attention over one batch element from one lane-dense (S, NT)
    slab.  One K=head_dim score contraction per head; K/V of each KV group is
    read once from VMEM and reused for every query head of the group."""
    n_rep = num_heads // num_kv_heads
    half = head_dim // 2
    nq2 = num_heads * half
    nk2 = num_kv_heads * half
    blk2 = nq2 + nk2 + num_kv_heads * half   # offset of second half-block = NT/2

    x = qkv_ref[0]                            # (S, NT) bf16
    outs = []
    for g in range(num_kv_heads):
        # K for the group: concat the two halves once -> (S, head_dim)
        k = jnp.concatenate(
            [x[:, nq2 + g * half: nq2 + (g + 1) * half],
             x[:, blk2 + nq2 + g * half: blk2 + nq2 + (g + 1) * half]],
            axis=-1)
        # V for the group (V columns are in original per-head order).
        if g < num_kv_heads // 2:
            voff = nq2 + nk2 + g * head_dim
        else:
            voff = blk2 + nq2 + nk2 + (g - num_kv_heads // 2) * head_dim
        v = x[:, voff: voff + head_dim]

        for r in range(n_rep):
            h = g * n_rep + r
            q = jnp.concatenate(
                [x[:, h * half:(h + 1) * half],
                 x[:, blk2 + h * half: blk2 + (h + 1) * half]], axis=-1)
            # Scores are invariant to the shared halves-grouped permutation of
            # Q and K; single K=head_dim contraction (one MXU push per head).
            s = jax.lax.dot_general(q, k, (((1,), (1,)), ((), ())),
                                    preferred_element_type=jnp.float32) * scale
            s = s - jnp.max(s, axis=-1, keepdims=True)
            p = jnp.exp(s)
            inv = pl.reciprocal(jnp.sum(p, axis=-1, keepdims=True),
                                approx=True)
            o = jnp.dot(p.astype(x.dtype), v,
                        preferred_element_type=jnp.float32) * inv
            outs.append(o)
    # Heads were produced in order h = 0..H-1 -> single dense 128-lane store
    # in the head-contiguous layout o_proj expects.
    o_ref[0] = jnp.concatenate(outs, axis=-1).astype(o_ref.dtype)


def _post_attn_kernel(attn_ref, res_ref, wo_ref, postln_ref, wgu_ref, wd_ref,
                      pn0_ref, w1_ref, b1_ref, pn1_ref, w2_ref, b2_ref,
                      pn2_ref, o_ref, *, eps, inter):
    """Fused: o_proj + residual, post-attn RMSNorm + gated MLP + residual,
    projector (RMSNorm -> Linear -> RMSNorm -> SiLU -> Linear -> RMSNorm).
    All weights are grid-invariant (VMEM-resident across row tiles)."""

    def rms(v, w_ref_):
        var = jnp.mean(v * v, axis=-1, keepdims=True)
        return v * jax.lax.rsqrt(var + eps) * w_ref_[...].astype(jnp.float32)

    # o_proj + residual add
    h = jnp.dot(attn_ref[...], wo_ref[...], preferred_element_type=jnp.float32)
    h = h + res_ref[...].astype(jnp.float32)

    # post-attention RMSNorm + gated MLP (gate/up fused) + residual add
    x = rms(h, postln_ref)
    gu = jnp.dot(x.astype(wgu_ref.dtype), wgu_ref[...],
                 preferred_element_type=jnp.float32)
    g = gu[:, :inter]
    u = gu[:, inter:]
    mid = (g * jax.nn.sigmoid(g)) * u
    h = h + jnp.dot(mid.astype(wd_ref.dtype), wd_ref[...],
                    preferred_element_type=jnp.float32)

    # projector tail
    x = rms(h, pn0_ref)
    y = jnp.dot(x.astype(w1_ref.dtype), w1_ref[...],
                preferred_element_type=jnp.float32)
    y = y + b1_ref[...].astype(jnp.float32)
    y = rms(y, pn1_ref)
    y = y * jax.nn.sigmoid(y)                  # SiLU after 2nd RMSNorm
    z = jnp.dot(y.astype(w2_ref.dtype), w2_ref[...],
                preferred_element_type=jnp.float32)
    z = z + b2_ref[...].astype(jnp.float32)
    # NOTE: out_channel=64 < 128 lanes -> masked stores on the final output;
    # acceptable since this is the module's output width.
    o_ref[...] = rms(z, pn2_ref).astype(o_ref.dtype)


# ---------------------------------------------------------------------------
# pallas_call wrappers
# ---------------------------------------------------------------------------

def fused_norm_qkv_rope(h, lnw, wqkv, bqkv, cos_t, sin_t, *, eps, tm):
    M, D = h.shape
    NT = wqkv.shape[1]
    cost = pl.CostEstimate(
        flops=2 * M * D * NT + 8 * M * NT,
        transcendentals=M,
        bytes_accessed=M * D * 4 + D * NT * 2 + NT * 4
        + 2 * M * (NT // 2) * 2 + M * NT * 2)
    return pl.pallas_call(
        functools.partial(_norm_qkv_rope_kernel, eps=eps),
        out_shape=jax.ShapeDtypeStruct((M, NT), jnp.bfloat16),
        grid=(M // tm,),
        in_specs=[pl.BlockSpec((tm, D), lambda i: (i, 0)),
                  pl.BlockSpec((1, D), lambda i: (0, 0)),
                  pl.BlockSpec((D, NT), lambda i: (0, 0)),
                  pl.BlockSpec((1, NT), lambda i: (0, 0)),
                  pl.BlockSpec((tm, NT // 2), lambda i: (i, 0)),
                  pl.BlockSpec((tm, NT // 2), lambda i: (i, 0))],
        out_specs=pl.BlockSpec((tm, NT), lambda i: (i, 0)),
        compiler_params=_cparams(),
        cost_estimate=cost,
    )(h, lnw, wqkv, bqkv, cos_t, sin_t)


def fused_attention(qkv, *, num_heads, num_kv_heads, head_dim):
    B, S, NT = qkv.shape
    NQ = num_heads * head_dim
    scale = 1.0 / math.sqrt(head_dim)
    return pl.pallas_call(
        functools.partial(_attention_kernel, num_heads=num_heads,
                          num_kv_heads=num_kv_heads, head_dim=head_dim,
                          scale=scale),
        out_shape=jax.ShapeDtypeStruct((B, S, NQ), jnp.bfloat16),
        grid=(B,),
        in_specs=[pl.BlockSpec((1, S, NT), lambda b: (b, 0, 0))],
        out_specs=pl.BlockSpec((1, S, NQ), lambda b: (b, 0, 0)),
        compiler_params=_cparams(),
    )(qkv)


def fused_post_attention(attn, resid, params, *, eps, tm):
    M, NQ = attn.shape
    D = params['wo'].shape[1]
    I2 = params['wgu'].shape[1]
    inter = I2 // 2
    P = params['w1'].shape[1]
    C = params['w2'].shape[1]
    return pl.pallas_call(
        functools.partial(_post_attn_kernel, eps=eps, inter=inter),
        out_shape=jax.ShapeDtypeStruct((M, C), jnp.float32),
        grid=(M // tm,),
        in_specs=[pl.BlockSpec((tm, NQ), lambda i: (i, 0)),
                  pl.BlockSpec((tm, D), lambda i: (i, 0)),
                  pl.BlockSpec((NQ, D), lambda i: (0, 0)),
                  pl.BlockSpec((1, D), lambda i: (0, 0)),
                  pl.BlockSpec((D, I2), lambda i: (0, 0)),
                  pl.BlockSpec((inter, D), lambda i: (0, 0)),
                  pl.BlockSpec((1, D), lambda i: (0, 0)),
                  pl.BlockSpec((D, P), lambda i: (0, 0)),
                  pl.BlockSpec((1, P), lambda i: (0, 0)),
                  pl.BlockSpec((1, P), lambda i: (0, 0)),
                  pl.BlockSpec((P, C), lambda i: (0, 0)),
                  pl.BlockSpec((1, C), lambda i: (0, 0)),
                  pl.BlockSpec((1, C), lambda i: (0, 0))],
        out_specs=pl.BlockSpec((tm, C), lambda i: (i, 0)),
        compiler_params=_cparams(),
    )(attn, resid, params['wo'], params['post_ln_w'], params['wgu'],
      params['wd'], params['p_norm0_w'], params['w1'], params['b1'],
      params['p_norm1_w'], params['w2'], params['b2'], params['p_norm2_w'])


# ---------------------------------------------------------------------------
# JAX glue: position ids and mRoPE tables (half-width, bf16, halves-grouped)
# ---------------------------------------------------------------------------

def get_position_ids(grid_thw_np, base_grid, spatial_merge_size,
                     tokens_per_second):
    # Faithful to the original module: only grid_thw[0] is consulted and the
    # same position ids are broadcast to every batch element.
    batch = grid_thw_np.shape[0]
    t = int(grid_thw_np[0][0])
    h = int(grid_thw_np[0][1])
    w = int(grid_thw_np[0][2])
    llm_h, llm_w = h // spatial_merge_size, w // spatial_merge_size
    scale_h = base_grid[1] / h
    scale_w = base_grid[2] / w
    t_idx = jnp.broadcast_to(
        (jnp.arange(t) * tokens_per_second).reshape(-1, 1), (t, llm_h * llm_w)
    ).reshape(-1).astype(jnp.float32)
    h_idx = jnp.broadcast_to(
        jnp.arange(llm_h, dtype=jnp.float32).reshape(1, -1, 1),
        (t, llm_h, llm_w)).reshape(-1) * scale_h
    w_idx = jnp.broadcast_to(
        jnp.arange(llm_w, dtype=jnp.float32).reshape(1, 1, -1),
        (t, llm_h, llm_w)).reshape(-1) * scale_w
    pos = jnp.stack([t_idx, h_idx, w_idx])                       # (3, S)
    return jnp.broadcast_to(pos[:, None, :], (3, batch, pos.shape[-1]))


def build_rope_tables(pos, cfg):
    """Half-width (NT/2) bf16 cos/sin tables matching the halves-grouped QKV
    column layout [q1|k1|vA]; V lanes get cos=1 / sin=0 so they pass through
    the in-kernel rotation unchanged."""
    H, KVH, Dh = cfg['num_heads'], cfg['num_kv_heads'], cfg['head_dim']
    half = Dh // 2
    theta = cfg['rope_theta']
    _, B, S = pos.shape

    inv_freq = 1.0 / (theta ** (jnp.arange(0, Dh, 2, dtype=jnp.float32) / Dh))
    sec = np.repeat(np.arange(len(cfg['mrope_section'])),
                    np.array(cfg['mrope_section']))              # (half,) in {0,1,2}
    ang = jnp.transpose(pos[sec], (1, 2, 0)) * inv_freq[None, None, :]  # (B,S,half)
    cos_h = jnp.cos(ang)
    sin_h = jnp.sin(ang)

    ones_v = jnp.ones((B, S, KVH * half), jnp.float32)
    zeros_v = jnp.zeros((B, S, KVH * half), jnp.float32)
    cos_blk = jnp.concatenate(
        [jnp.tile(cos_h, (1, 1, H)), jnp.tile(cos_h, (1, 1, KVH)), ones_v], -1)
    sin_blk = jnp.concatenate(
        [jnp.tile(sin_h, (1, 1, H)), jnp.tile(sin_h, (1, 1, KVH)), zeros_v], -1)
    NT2 = (H + 2 * KVH) * Dh // 2
    return (cos_blk.reshape(B * S, NT2).astype(jnp.bfloat16),
            sin_blk.reshape(B * S, NT2).astype(jnp.bfloat16))


# ---------------------------------------------------------------------------
# Parameters: raw (PyTorch layout) init and one-time kernel-layout preparation
# ---------------------------------------------------------------------------

def init_params(key, D, H, KVH, Dh, I, out_channel, expand_ratio):
    def nrm(k, shape, scale=0.02):
        return scale * jax.random.normal(k, shape, dtype=jnp.float32)

    keys = jax.random.split(key, 14)
    P = out_channel * expand_ratio
    return dict(
        input_ln_w=jnp.ones((D,), jnp.float32),
        post_ln_w=jnp.ones((D,), jnp.float32),
        q_w=nrm(keys[0], (H * Dh, D)),   q_b=nrm(keys[1], (H * Dh,)),
        k_w=nrm(keys[2], (KVH * Dh, D)), k_b=nrm(keys[3], (KVH * Dh,)),
        v_w=nrm(keys[4], (KVH * Dh, D)), v_b=nrm(keys[5], (KVH * Dh,)),
        o_w=nrm(keys[6], (D, H * Dh)),
        gate_w=nrm(keys[7], (I, D)), up_w=nrm(keys[8], (I, D)),
        down_w=nrm(keys[9], (D, I)),
        p_norm0_w=jnp.ones((D,), jnp.float32),
        p_lin1_w=nrm(keys[10], (P, D)), p_lin1_b=nrm(keys[11], (P,)),
        p_norm1_w=jnp.ones((P,), jnp.float32),
        p_lin2_w=nrm(keys[12], (out_channel, P)),
        p_lin2_b=nrm(keys[13], (out_channel,)),
        p_norm2_w=jnp.ones((out_channel,), jnp.float32),
    )


def prepare_params(raw, cfg):
    """One-time: transpose, fuse, permute to kernel layouts, cast MXU weights
    to bf16.  Nothing here runs per forward pass."""
    D = cfg['hidden_size']
    H, KVH, Dh = cfg['num_heads'], cfg['num_kv_heads'], cfg['head_dim']
    C = cfg['out_channel']
    P = C * cfg['expand_ratio']
    half = Dh // 2
    assert KVH % 2 == 0, "halves-grouped V layout assumes an even KV-head count"
    wdt = jnp.bfloat16

    def head_halves(w_t, nh):
        # w_t: (D, nh*Dh), columns head-contiguous -> (first-halves, second-halves)
        w4 = w_t.reshape(w_t.shape[0], nh, 2, half)
        return (w4[:, :, 0, :].reshape(w_t.shape[0], nh * half),
                w4[:, :, 1, :].reshape(w_t.shape[0], nh * half))

    def bias_halves(b, nh):
        b3 = b.reshape(nh, 2, half)
        return b3[:, 0, :].reshape(-1), b3[:, 1, :].reshape(-1)

    qA, qB = head_halves(raw['q_w'].T, H)
    kA, kB = head_halves(raw['k_w'].T, KVH)
    nv_half = KVH * Dh // 2
    wv_t = raw['v_w'].T
    vA, vB = wv_t[:, :nv_half], wv_t[:, nv_half:]
    wqkv = jnp.concatenate([qA, kA, vA, qB, kB, vB], axis=1).astype(wdt)

    bqA, bqB = bias_halves(raw['q_b'], H)
    bkA, bkB = bias_halves(raw['k_b'], KVH)
    bvA, bvB = raw['v_b'][:nv_half], raw['v_b'][nv_half:]
    bqkv = jnp.concatenate([bqA, bkA, bvA, bqB, bkB, bvB]).reshape(1, -1)

    return dict(
        input_ln_w=raw['input_ln_w'].reshape(1, D),
        wqkv=wqkv,
        bqkv=bqkv.astype(jnp.float32),
        wo=raw['o_w'].T.astype(wdt),
        post_ln_w=raw['post_ln_w'].reshape(1, D),
        wgu=jnp.concatenate([raw['gate_w'].T, raw['up_w'].T], axis=1).astype(wdt),
        wd=raw['down_w'].T.astype(wdt),
        p_norm0_w=raw['p_norm0_w'].reshape(1, D),
        w1=raw['p_lin1_w'].T.astype(wdt),
        b1=raw['p_lin1_b'].reshape(1, P),
        p_norm1_w=raw['p_norm1_w'].reshape(1, P),
        w2=raw['p_lin2_w'].T.astype(wdt),
        b2=raw['p_lin2_b'].reshape(1, C),
        p_norm2_w=raw['p_norm2_w'].reshape(1, C),
    )


# ---------------------------------------------------------------------------
# Forward pass
# ---------------------------------------------------------------------------

def nexus_gen_merger_forward(params, embeds, embeds_grid, *, cfg):
    B, S, D = embeds.shape
    H, KVH, Dh = cfg['num_heads'], cfg['num_kv_heads'], cfg['head_dim']
    C = cfg['out_channel']
    eps = cfg['eps']
    M = B * S
    tm = pick_row_tile(M)

    # mRoPE tables (scalar / position-id glue stays in JAX).
    pos = get_position_ids(embeds_grid, cfg['base_grid'],
                           cfg['spatial_merge_size'], cfg['tokens_per_second'])
    cos_t, sin_t = build_rope_tables(pos, cfg)

    h = embeds.reshape(M, D).astype(jnp.float32)

    # ----- Qwen2.5-VL decoder layer (num_layers = 1) -----
    qkv = fused_norm_qkv_rope(h, params['input_ln_w'], params['wqkv'],
                              params['bqkv'], cos_t, sin_t, eps=eps, tm=tm)
    attn = fused_attention(qkv.reshape(B, S, -1), num_heads=H,
                           num_kv_heads=KVH, head_dim=Dh)        # (B,S,H*Dh)

    # ----- o_proj + residual + post-LN + MLP + residual + projector -----
    out = fused_post_attention(attn.reshape(M, H * Dh), h, params,
                               eps=eps, tm=tm)                   # (M, C)
    return out.reshape(B, S, C)


# ---------------------------------------------------------------------------

if __name__ == "__main__":
    cfg = dict(
        hidden_size=128, num_heads=4, num_kv_heads=2, head_dim=32,
        intermediate_size=256, out_channel=64, expand_ratio=4,
        mrope_section=(4, 6, 6),             # sums to head_dim // 2
        rope_theta=1000000.0, eps=1e-6,
        base_grid=(1, 72, 72), spatial_merge_size=2, tokens_per_second=2,
    )

    key = jax.random.PRNGKey(0)
    kp, kx = jax.random.split(key)
    raw = init_params(kp, cfg['hidden_size'], cfg['num_heads'],
                      cfg['num_kv_heads'], cfg['head_dim'],
                      cfg['intermediate_size'], cfg['out_channel'],
                      cfg['expand_ratio'])
    params = prepare_params(raw, cfg)

    B = 2
    embeds_grid = np.array([[1, 8, 8], [1, 8, 8]], dtype=np.int32)   # (t, h, w)
    S = 1 * (8 // 2) * (8 // 2)                                      # 16 tokens
    embeds = jax.random.normal(kx, (B, S, cfg['hidden_size']), dtype=jnp.float32)

    fwd = jax.jit(lambda p, e: nexus_gen_merger_forward(p, e, embeds_grid,
                                                        cfg=cfg))
    out = jax.block_until_ready(fwd(params, embeds))
    assert out.shape == (B, S, cfg['out_channel'])
    assert bool(jnp.all(jnp.isfinite(out)))
    print("KERNEL_OK")
</pallas_src>

<mosaic_0001>
module attributes {stable_mosaic.version = 11 : i64} {
  func.func @_norm_qkv_rope_kernel(%arg0: i32, %arg1: memref<32x128xf32, #tpu.memory_space<vmem>>, %arg2: memref<1x128xf32, #tpu.memory_space<vmem>>, %arg3: memref<128x256xbf16, #tpu.memory_space<vmem>>, %arg4: memref<1x256xf32, #tpu.memory_space<vmem>>, %arg5: memref<32x128xbf16, #tpu.memory_space<vmem>>, %arg6: memref<32x128xbf16, #tpu.memory_space<vmem>>, %arg7: memref<32x256xbf16, #tpu.memory_space<vmem>>) attributes {dimension_semantics = [#tpu.dimension_semantics<parallel>], iteration_bounds = array<i64: 1>, scalar_prefetch = 0 : i64, scratch_operands = 0 : i64, tpu.core_type = #tpu.core_type<tc>, window_params = [{transform_indices = @transform_0, window_bounds = array<i64: 32, 128>}, {pipeline_mode = #tpu.pipeline_mode<synchronous>, transform_indices = @transform_1, window_bounds = array<i64: 1, 128>}, {pipeline_mode = #tpu.pipeline_mode<synchronous>, transform_indices = @transform_2, window_bounds = array<i64: 128, 256>}, {pipeline_mode = #tpu.pipeline_mode<synchronous>, transform_indices = @transform_3, window_bounds = array<i64: 1, 256>}, {transform_indices = @transform_4, window_bounds = array<i64: 32, 128>}, {transform_indices = @transform_5, window_bounds = array<i64: 32, 128>}, {transform_indices = @transform_6, window_bounds = array<i64: 32, 256>}]} {
    %c0 = arith.constant 0 : index
    %c0_0 = arith.constant 0 : index
    %0 = vector.load %arg1[%c0, %c0_0] : memref<32x128xf32, #tpu.memory_space<vmem>>, vector<32x128xf32>
    %1 = arith.mulf %0, %0 : vector<32x128xf32>
    %cst = arith.constant dense<0.000000e+00> : vector<32xf32>
    %2 = vector.multi_reduction <add>, %1, %cst [1] : vector<32x128xf32> to vector<32xf32>
    %3 = vector.shape_cast %2 : vector<32xf32> to vector<32x1xf32>
    %cst_1 = arith.constant 1.280000e+02 : f32
    %4 = vector.broadcast %cst_1 : f32 to vector<32x1xf32>
    %5 = arith.divf %3, %4 : vector<32x1xf32>
    %cst_2 = arith.constant 9.99999997E-7 : f32
    %6 = vector.broadcast %cst_2 : f32 to vector<32x1xf32>
    %7 = arith.addf %5, %6 : vector<32x1xf32>
    %8 = math.rsqrt %7 : vector<32x1xf32>
    %9 = vector.broadcast %8 : vector<32x1xf32> to vector<32x128xf32>
    %10 = arith.mulf %0, %9 : vector<32x128xf32>
    %c0_3 = arith.constant 0 : index
    %c0_4 = arith.constant 0 : index
    %11 = vector.load %arg2[%c0_3, %c0_4] : memref<1x128xf32, #tpu.memory_space<vmem>>, vector<1x128xf32>
    %12 = vector.broadcast %11 : vector<1x128xf32> to vector<32x128xf32>
    %13 = arith.mulf %10, %12 : vector<32x128xf32>
    %14 = arith.truncf %13 : vector<32x128xf32> to vector<32x128xbf16>
    %c0_5 = arith.constant 0 : index
    %c0_6 = arith.constant 0 : index
    %15 = vector.load %arg3[%c0_5, %c0_6] : memref<128x256xbf16, #tpu.memory_space<vmem>>, vector<128x256xbf16>
    %cst_7 = arith.constant dense<0.000000e+00> : vector<32x256xf32>
    %16 = tpu.matmul %14, %15, %cst_7 {dimension_numbers = #tpu.dot_dimension_numbers<[1], [0], [0], [1], [0, 0, 1, 1], [], []>} : vector<32x128xbf16>, vector<128x256xbf16>, vector<32x256xf32> -> vector<32x256xf32>
    %c0_8 = arith.constant 0 : index
    %c0_9 = arith.constant 0 : index
    %17 = vector.load %arg4[%c0_8, %c0_9] : memref<1x256xf32, #tpu.memory_space<vmem>>, vector<1x256xf32>
    %18 = vector.broadcast %17 : vector<1x256xf32> to vector<32x256xf32>
    %19 = arith.addf %16, %18 : vector<32x256xf32>
    %20 = vector.extract_strided_slice %19 {offsets = [0, 0], sizes = [32, 128], strides = [1, 1]} : vector<32x256xf32> to vector<32x128xf32>
    %21 = vector.extract_strided_slice %19 {offsets = [0, 128], sizes = [32, 128], strides = [1, 1]} : vector<32x256xf32> to vector<32x128xf32>
    %c0_10 = arith.constant 0 : index
    %c0_11 = arith.constant 0 : index
    %22 = vector.load %arg5[%c0_10, %c0_11] : memref<32x128xbf16, #tpu.memory_space<vmem>>, vector<32x128xbf16>
    %23 = arith.extf %22 : vector<32x128xbf16> to vector<32x128xf32>
    %c0_12 = arith.constant 0 : index
    %c0_13 = arith.constant 0 : index
    %24 = vector.load %arg6[%c0_12, %c0_13] : memref<32x128xbf16, #tpu.memory_space<vmem>>, vector<32x128xbf16>
    %25 = arith.extf %24 : vector<32x128xbf16> to vector<32x128xf32>
    %26 = arith.mulf %20, %23 : vector<32x128xf32>
    %27 = arith.mulf %21, %25 : vector<32x128xf32>
    %28 = arith.subf %26, %27 : vector<32x128xf32>
    %29 = arith.mulf %21, %23 : vector<32x128xf32>
    %30 = arith.mulf %20, %25 : vector<32x128xf32>
    %31 = arith.addf %29, %30 : vector<32x128xf32>
    %32 = tpu.concatenate %28, %31 in 1 : vector<32x128xf32>, vector<32x128xf32> -> vector<32x256xf32>
    %33 = arith.truncf %32 : vector<32x256xf32> to vector<32x256xbf16>
    %c0_14 = arith.constant 0 : index
    %c0_15 = arith.constant 0 : index
    %34 = vector.load %arg7[%c0_14, %c0_15] : memref<32x256xbf16, #tpu.memory_space<vmem>>, vector<32x256xbf16>
    tpu.vector_store %arg7[%c0_14, %c0_15], %33 {strides = array<i32>} : memref<32x256xbf16, #tpu.memory_space<vmem>>, vector<32x256xbf16>,
    return
  }
  func.func @transform_0(%arg0: i32) -> (i32, i32) {
    %c0_i32 = arith.constant 0 : i32
    %c0_i32_0 = arith.constant 0 : i32
    return %arg0, %c0_i32 : i32, i32
  }
  func.func @transform_1(%arg0: i32) -> (i32, i32) {
    %c0_i32 = arith.constant 0 : i32
    %c0_i32_0 = arith.constant 0 : i32
    %c0_i32_1 = arith.constant 0 : i32
    return %c0_i32, %c0_i32_0 : i32, i32
  }
  func.func @transform_2(%arg0: i32) -> (i32, i32) {
    %c0_i32 = arith.constant 0 : i32
    %c0_i32_0 = arith.constant 0 : i32
    %c0_i32_1 = arith.constant 0 : i32
    return %c0_i32, %c0_i32_0 : i32, i32
  }
  func.func @transform_3(%arg0: i32) -> (i32, i32) {
    %c0_i32 = arith.constant 0 : i32
    %c0_i32_0 = arith.constant 0 : i32
    %c0_i32_1 = arith.constant 0 : i32
    return %c0_i32, %c0_i32_0 : i32, i32
  }
  func.func @transform_4(%arg0: i32) -> (i32, i32) {
    %c0_i32 = arith.constant 0 : i32
    %c0_i32_0 = arith.constant 0 : i32
    return %arg0, %c0_i32 : i32, i32
  }
  func.func @transform_5(%arg0: i32) -> (i32, i32) {
    %c0_i32 = arith.constant 0 : i32
    %c0_i32_0 = arith.constant 0 : i32
    return %arg0, %c0_i32 : i32, i32
  }
  func.func @transform_6(%arg0: i32) -> (i32, i32) {
    %c0_i32 = arith.constant 0 : i32
    %c0_i32_0 = arith.constant 0 : i32
    return %arg0, %c0_i32 : i32, i32
  }
}

module attributes {stable_mosaic.version = 11 : i64} {
  func.func @_attention_kernel(%arg0: i32, %arg1: memref<1x16x256xbf16, #tpu.memory_space<vmem>>, %arg2: memref<1x16x128xbf16, #tpu.memory_space<vmem>>) attributes {dimension_semantics = [#tpu.dimension_semantics<parallel>], iteration_bounds = array<i64: 2>, scalar_prefetch = 0 : i64, scratch_operands = 0 : i64, tpu.core_type = #tpu.core_type<tc>, window_params = [{transform_indices = @transform_0, window_bounds = array<i64: 1, 16, 256>}, {transform_indices = @transform_1, window_bounds = array<i64: 1, 16, 128>}]} {
    %c0 = arith.constant 0 : index
    %c0_0 = arith.constant 0 : index
    %c0_1 = arith.constant 0 : index
    %0 = vector.load %arg1[%c0, %c0_0, %c0_1] : memref<1x16x256xbf16, #tpu.memory_space<vmem>>, vector<1x16x256xbf16>
    %1 = vector.shape_cast %0 : vector<1x16x256xbf16> to vector<16x256xbf16>
    %2 = vector.extract_strided_slice %1 {offsets = [0, 64], sizes = [16, 16], strides = [1, 1]} : vector<16x256xbf16> to vector<16x16xbf16>
    %3 = vector.extract_strided_slice %1 {offsets = [0, 192], sizes = [16, 16], strides = [1, 1]} : vector<16x256xbf16> to vector<16x16xbf16>
    %4 = tpu.concatenate %2, %3 in 1 : vector<16x16xbf16>, vector<16x16xbf16> -> vector<16x32xbf16>
    %5 = vector.extract_strided_slice %1 {offsets = [0, 96], sizes = [16, 32], strides = [1, 1]} : vector<16x256xbf16> to vector<16x32xbf16>
    %6 = vector.extract_strided_slice %1 {offsets = [0, 0], sizes = [16, 16], strides = [1, 1]} : vector<16x256xbf16> to vector<16x16xbf16>
    %7 = vector.extract_strided_slice %1 {offsets = [0, 128], sizes = [16, 16], strides = [1, 1]} : vector<16x256xbf16> to vector<16x16xbf16>
    %8 = tpu.concatenate %6, %7 in 1 : vector<16x16xbf16>, vector<16x16xbf16> -> vector<16x32xbf16>
    %cst = arith.constant dense<0.000000e+00> : vector<16x16xf32>
    %9 = tpu.matmul %8, %4, %cst {dimension_numbers = #tpu.dot_dimension_numbers<[1], [1], [0], [0], [0, 0, 1, 0], [], []>} : vector<16x32xbf16>, vector<16x32xbf16>, vector<16x16xf32> -> vector<16x16xf32>
    %cst_2 = arith.constant 0.176776692 : f32
    %10 = vector.broadcast %cst_2 : f32 to vector<16x16xf32>
    %11 = arith.mulf %9, %10 : vector<16x16xf32>
    %cst_3 = arith.constant dense<0xFF800000> : vector<16xf32>
    %12 = vector.multi_reduction <maximumf>, %11, %cst_3 [1] : vector<16x16xf32> to vector<16xf32>
    %13 = vector.shape_cast %12 : vector<16xf32> to vector<16x1xf32>
    %14 = vector.broadcast %13 : vector<16x1xf32> to vector<16x16xf32>
    %15 = arith.subf %11, %14 : vector<16x16xf32>
    %16 = math.exp %15 : vector<16x16xf32>
    %cst_4 = arith.constant dense<0.000000e+00> : vector<16xf32>
    %17 = vector.multi_reduction <add>, %16, %cst_4 [1] : vector<16x16xf32> to vector<16xf32>
    %18 = vector.shape_cast %17 : vector<16xf32> to vector<16x1xf32>
    %19 = tpu.reciprocal %18 {approx = true} : vector<16x1xf32> -> vector<16x1xf32>
    %20 = arith.truncf %16 : vector<16x16xf32> to vector<16x16xbf16>
    %cst_5 = arith.constant dense<0.000000e+00> : vector<16x32xf32>
    %21 = tpu.matmul %20, %5, %cst_5 {dimension_numbers = #tpu.dot_dimension_numbers<[1], [0], [0], [1], [0, 0, 1, 1], [], []>} : vector<16x16xbf16>, vector<16x32xbf16>, vector<16x32xf32> -> vector<16x32xf32>
    %22 = vector.broadcast %19 : vector<16x1xf32> to vector<16x32xf32>
    %23 = arith.mulf %21, %22 : vector<16x32xf32>
    %24 = vector.extract_strided_slice %1 {offsets = [0, 16], sizes = [16, 16], strides = [1, 1]} : vector<16x256xbf16> to vector<16x16xbf16>
    %25 = vector.extract_strided_slice %1 {offsets = [0, 144], sizes = [16, 16], strides = [1, 1]} : vector<16x256xbf16> to vector<16x16xbf16>
    %26 = tpu.concatenate %24, %25 in 1 : vector<16x16xbf16>, vector<16x16xbf16> -> vector<16x32xbf16>
    %cst_6 = arith.constant dense<0.000000e+00> : vector<16x16xf32>
    %27 = tpu.matmul %26, %4, %cst_6 {dimension_numbers = #tpu.dot_dimension_numbers<[1], [1], [0], [0], [0, 0, 1, 0], [], []>} : vector<16x32xbf16>, vector<16x32xbf16>, vector<16x16xf32> -> vector<16x16xf32>
    %cst_7 = arith.constant 0.176776692 : f32
    %28 = vector.broadcast %cst_7 : f32 to vector<16x16xf32>
    %29 = arith.mulf %27, %28 : vector<16x16xf32>
    %cst_8 = arith.constant dense<0xFF800000> : vector<16xf32>
    %30 = vector.multi_reduction <maximumf>, %29, %cst_8 [1] : vector<16x16xf32> to vector<16xf32>
    %31 = vector.shape_cast %30 : vector<16xf32> to vector<16x1xf32>
    %32 = vector.broadcast %31 : vector<16x1xf32> to vector<16x16xf32>
    %33 = arith.subf %29, %32 : vector<16x16xf32>
    %34 = math.exp %33 : vector<16x16xf32>
    %cst_9 = arith.constant dense<0.000000e+00> : vector<16xf32>
    %35 = vector.multi_reduction <add>, %34, %cst_9 [1] : vector<16x16xf32> to vector<16xf32>
    %36 = vector.shape_cast %35 : vector<16xf32> to vector<16x1xf32>
    %37 = tpu.reciprocal %36 {approx = true} : vector<16x1xf32> -> vector<16x1xf32>
    %38 = arith.truncf %34 : vector<16x16xf32> to vector<16x16xbf16>
    %cst_10 = arith.constant dense<0.000000e+00> : vector<16x32xf32>
    %39 = tpu.matmul %38, %5, %cst_10 {dimension_numbers = #tpu.dot_dimension_numbers<[1], [0], [0], [1], [0, 0, 1, 1], [], []>} : vector<16x16xbf16>, vector<16x32xbf16>, vector<16x32xf32> -> vector<16x32xf32>
    %40 = vector.broadcast %37 : vector<16x1xf32> to vector<16x32xf32>
    %41 = arith.mulf %39, %40 : vector<16x32xf32>
    %42 = vector.extract_strided_slice %1 {offsets = [0, 80], sizes = [16, 16], strides = [1, 1]} : vector<16x256xbf16> to vector<16x16xbf16>
    %43 = vector.extract_strided_slice %1 {offsets = [0, 208], sizes = [16, 16], strides = [1, 1]} : vector<16x256xbf16> to vector<16x16xbf16>
    %44 = tpu.concatenate %42, %43 in 1 : vector<16x16xbf16>, vector<16x16xbf16> -> vector<16x32xbf16>
    %45 = vector.extract_strided_slice %1 {offsets = [0, 224], sizes = [16, 32], strides = [1, 1]} : vector<16x256xbf16> to vector<16x32xbf16>
    %46 = vector.extract_strided_slice %1 {offsets = [0, 32], sizes = [16, 16], strides = [1, 1]} : vector<16x256xbf16> to vector<16x16xbf16>
    %47 = vector.extract_strided_slice %1 {offsets = [0, 160], sizes = [16, 16], strides = [1, 1]} : vector<16x256xbf16> to vector<16x16xbf16>
    %48 = tpu.concatenate %46, %47 in 1 : vector<16x16xbf16>, vector<16x16xbf16> -> vector<16x32xbf16>
    %cst_11 = arith.constant dense<0.000000e+00> : vector<16x16xf32>
    %49 = tpu.matmul %48, %44, %cst_11 {dimension_numbers = #tpu.dot_dimension_numbers<[1], [1], [0], [0], [0, 0, 1, 0], [], []>} : vector<16x32xbf16>, vector<16x32xbf16>, vector<16x16xf32> -> vector<16x16xf32>
    %cst_12 = arith.constant 0.176776692 : f32
    %50 = vector.broadcast %cst_12 : f32 to vector<16x16xf32>
    %51 = arith.mulf %49, %50 : vector<16x16xf32>
    %cst_13 = arith.constant dense<0xFF800000> : vector<16xf32>
    %52 = vector.multi_reduction <maximumf>, %51, %cst_13 [1] : vector<16x16xf32> to vector<16xf32>
    %53 = vector.shape_cast %52 : vector<16xf32> to vector<16x1xf32>
    %54 = vector.broadcast %53 : vector<16x1xf32> to vector<16x16xf32>
    %55 = arith.subf %51, %54 : vector<16x16xf32>
    %56 = math.exp %55 : vector<16x16xf32>
    %cst_14 = arith.constant dense<0.000000e+00> : vector<16xf32>
    %57 = vector.multi_reduction <add>, %56, %cst_14 [1] : vector<16x16xf32> to vector<16xf32>
    %58 = vector.shape_cast %57 : vector<16xf32> to vector<16x1xf32>
    %59 = tpu.reciprocal %58 {approx = true} : vector<16x1xf32> -> vector<16x1xf32>
    %60 = arith.truncf %56 : vector<16x16xf32> to vector<16x16xbf16>
    %cst_15 = arith.constant dense<0.000000e+00> : vector<16x32xf32>
    %61 = tpu.matmul %60, %45, %cst_15 {dimension_numbers = #tpu.dot_dimension_numbers<[1], [0], [0], [1], [0, 0, 1, 1], [], []>} : vector<16x16xbf16>, vector<16x32xbf16>, vector<16x32xf32> -> vector<16x32xf32>
    %62 = vector.broadcast %59 : vector<16x1xf32> to vector<16x32xf32>
    %63 = arith.mulf %61, %62 : vector<16x32xf32>
    %64 = vector.extract_strided_slice %1 {offsets = [0, 48], sizes = [16, 16], strides = [1, 1]} : vector<16x256xbf16> to vector<16x16xbf16>
    %65 = vector.extract_strided_slice %1 {offsets = [0, 176], sizes = [16, 16], strides = [1, 1]} : vector<16x256xbf16> to vector<16x16xbf16>
    %66 = tpu.concatenate %64, %65 in 1 : vector<16x16xbf16>, vector<16x16xbf16> -> vector<16x32xbf16>
    %cst_16 = arith.constant dense<0.000000e+00> : vector<16x16xf32>
    %67 = tpu.matmul %66, %44, %cst_16 {dimension_numbers = #tpu.dot_dimension_numbers<[1], [1], [0], [0], [0, 0, 1, 0], [], []>} : vector<16x32xbf16>, vector<16x32xbf16>, vector<16x16xf32> -> vector<16x16xf32>
    %cst_17 = arith.constant 0.176776692 : f32
    %68 = vector.broadcast %cst_17 : f32 to vector<16x16xf32>
    %69 = arith.mulf %67, %68 : vector<16x16xf32>
    %cst_18 = arith.constant dense<0xFF800000> : vector<16xf32>
    %70 = vector.multi_reduction <maximumf>, %69, %cst_18 [1] : vector<16x16xf32> to vector<16xf32>
    %71 = vector.shape_cast %70 : vector<16xf32> to vector<16x1xf32>
    %72 = vector.broadcast %71 : vector<16x1xf32> to vector<16x16xf32>
    %73 = arith.subf %69, %72 : vector<16x16xf32>
    %74 = math.exp %73 : vector<16x16xf32>
    %cst_19 = arith.constant dense<0.000000e+00> : vector<16xf32>
    %75 = vector.multi_reduction <add>, %74, %cst_19 [1] : vector<16x16xf32> to vector<16xf32>
    %76 = vector.shape_cast %75 : vector<16xf32> to vector<16x1xf32>
    %77 = tpu.reciprocal %76 {approx = true} : vector<16x1xf32> -> vector<16x1xf32>
    %78 = arith.truncf %74 : vector<16x16xf32> to vector<16x16xbf16>
    %cst_20 = arith.constant dense<0.000000e+00> : vector<16x32xf32>
    %79 = tpu.matmul %78, %45, %cst_20 {dimension_numbers = #tpu.dot_dimension_numbers<[1], [0], [0], [1], [0, 0, 1, 1], [], []>} : vector<16x16xbf16>, vector<16x32xbf16>, vector<16x32xf32> -> vector<16x32xf32>
    %80 = vector.broadcast %77 : vector<16x1xf32> to vector<16x32xf32>
    %81 = arith.mulf %79, %80 : vector<16x32xf32>
    %82 = tpu.concatenate %23, %41, %63, %81 in 1 : vector<16x32xf32>, vector<16x32xf32>, vector<16x32xf32>, vector<16x32xf32> -> vector<16x128xf32>
    %83 = arith.truncf %82 : vector<16x128xf32> to vector<16x128xbf16>
    %c0_21 = arith.constant 0 : index
    %c0_22 = arith.constant 0 : index
    %c0_23 = arith.constant 0 : index
    %84 = vector.load %arg2[%c0_21, %c0_22, %c0_23] : memref<1x16x128xbf16, #tpu.memory_space<vmem>>, vector<1x16x128xbf16>
    %85 = vector.shape_cast %84 : vector<1x16x128xbf16> to vector<16x128xbf16>
    %86 = vector.shape_cast %83 : vector<16x128xbf16> to vector<1x16x128xbf16>
    tpu.vector_store %arg2[%c0_21, %c0_22, %c0_23], %86 {strides = array<i32>} : memref<1x16x128xbf16, #tpu.memory_space<vmem>>, vector<1x16x128xbf16>,
    return
  }
  func.func @transform_0(%arg0: i32) -> (i32, i32, i32) {
    %c0_i32 = arith.constant 0 : i32
    %c0_i32_0 = arith.constant 0 : i32
    %c0_i32_1 = arith.constant 0 : i32
    return %arg0, %c0_i32, %c0_i32_0 : i32, i32, i32
  }
  func.func @transform_1(%arg0: i32) -> (i32, i32, i32) {
    %c0_i32 = arith.constant 0 : i32
    %c0_i32_0 = arith.constant 0 : i32
    %c0_i32_1 = arith.constant 0 : i32
    return %arg0, %c0_i32, %c0_i32_0 : i32, i32, i32
  }
}

module attributes {stable_mosaic.version = 11 : i64} {
  func.func @_post_attn_kernel(%arg0: i32, %arg1: memref<32x128xbf16, #tpu.memory_space<vmem>>, %arg2: memref<32x128xf32, #tpu.memory_space<vmem>>, %arg3: memref<128x128xbf16, #tpu.memory_space<vmem>>, %arg4: memref<1x128xf32, #tpu.memory_space<vmem>>, %arg5: memref<128x512xbf16, #tpu.memory_space<vmem>>, %arg6: memref<256x128xbf16, #tpu.memory_space<vmem>>, %arg7: memref<1x128xf32, #tpu.memory_space<vmem>>, %arg8: memref<128x256xbf16, #tpu.memory_space<vmem>>, %arg9: memref<1x256xf32, #tpu.memory_space<vmem>>, %arg10: memref<1x256xf32, #tpu.memory_space<vmem>>, %arg11: memref<256x64xbf16, #tpu.memory_space<vmem>>, %arg12: memref<1x64xf32, #tpu.memory_space<vmem>>, %arg13: memref<1x64xf32, #tpu.memory_space<vmem>>, %arg14: memref<32x64xf32, #tpu.memory_space<vmem>>) attributes {dimension_semantics = [#tpu.dimension_semantics<parallel>], iteration_bounds = array<i64: 1>, scalar_prefetch = 0 : i64, scratch_operands = 0 : i64, tpu.core_type = #tpu.core_type<tc>, window_params = [{transform_indices = @transform_0, window_bounds = array<i64: 32, 128>}, {transform_indices = @transform_1, window_bounds = array<i64: 32, 128>}, {pipeline_mode = #tpu.pipeline_mode<synchronous>, transform_indices = @transform_2, window_bounds = array<i64: 128, 128>}, {pipeline_mode = #tpu.pipeline_mode<synchronous>, transform_indices = @transform_3, window_bounds = array<i64: 1, 128>}, {pipeline_mode = #tpu.pipeline_mode<synchronous>, transform_indices = @transform_4, window_bounds = array<i64: 128, 512>}, {pipeline_mode = #tpu.pipeline_mode<synchronous>, transform_indices = @transform_5, window_bounds = array<i64: 256, 128>}, {pipeline_mode = #tpu.pipeline_mode<synchronous>, transform_indices = @transform_6, window_bounds = array<i64: 1, 128>}, {pipeline_mode = #tpu.pipeline_mode<synchronous>, transform_indices = @transform_7, window_bounds = array<i64: 128, 256>}, {pipeline_mode = #tpu.pipeline_mode<synchronous>, transform_indices = @transform_8, window_bounds = array<i64: 1, 256>}, {pipeline_mode = #tpu.pipeline_mode<synchronous>, transform_indices = @transform_9, window_bounds = array<i64: 1, 256>}, {pipeline_mode = #tpu.pipeline_mode<synchronous>, transform_indices = @transform_10, window_bounds = array<i64: 256, 64>}, {pipeline_mode = #tpu.pipeline_mode<synchronous>, transform_indices = @transform_11, window_bounds = array<i64: 1, 64>}, {pipeline_mode = #tpu.pipeline_mode<synchronous>, transform_indices = @transform_12, window_bounds = array<i64: 1, 64>}, {transform_indices = @transform_13, window_bounds = array<i64: 32, 64>}]} {
    %c0 = arith.constant 0 : index
    %c0_0 = arith.constant 0 : index
    %0 = vector.load %arg1[%c0, %c0_0] : memref<32x128xbf16, #tpu.memory_space<vmem>>, vector<32x128xbf16>
    %c0_1 = arith.constant 0 : index
    %c0_2 = arith.constant 0 : index
    %1 = vector.load %arg3[%c0_1, %c0_2] : memref<128x128xbf16, #tpu.memory_space<vmem>>, vector<128x128xbf16>
    %cst = arith.constant dense<0.000000e+00> : vector<32x128xf32>
    %2 = tpu.matmul %0, %1, %cst {dimension_numbers = #tpu.dot_dimension_numbers<[1], [0], [0], [1], [0, 0, 1, 1], [], []>} : vector<32x128xbf16>, vector<128x128xbf16>, vector<32x128xf32> -> vector<32x128xf32>
    %c0_3 = arith.constant 0 : index
    %c0_4 = arith.constant 0 : index
    %3 = vector.load %arg2[%c0_3, %c0_4] : memref<32x128xf32, #tpu.memory_space<vmem>>, vector<32x128xf32>
    %4 = arith.addf %2, %3 : vector<32x128xf32>
    %5 = arith.mulf %4, %4 : vector<32x128xf32>
    %cst_5 = arith.constant dense<0.000000e+00> : vector<32xf32>
    %6 = vector.multi_reduction <add>, %5, %cst_5 [1] : vector<32x128xf32> to vector<32xf32>
    %7 = vector.shape_cast %6 : vector<32xf32> to vector<32x1xf32>
    %cst_6 = arith.constant 1.280000e+02 : f32
    %8 = vector.broadcast %cst_6 : f32 to vector<32x1xf32>
    %9 = arith.divf %7, %8 : vector<32x1xf32>
    %cst_7 = arith.constant 9.99999997E-7 : f32
    %10 = vector.broadcast %cst_7 : f32 to vector<32x1xf32>
    %11 = arith.addf %9, %10 : vector<32x1xf32>
    %12 = math.rsqrt %11 : vector<32x1xf32>
    %13 = vector.broadcast %12 : vector<32x1xf32> to vector<32x128xf32>
    %14 = arith.mulf %4, %13 : vector<32x128xf32>
    %c0_8 = arith.constant 0 : index
    %c0_9 = arith.constant 0 : index
    %15 = vector.load %arg4[%c0_8, %c0_9] : memref<1x128xf32, #tpu.memory_space<vmem>>, vector<1x128xf32>
    %16 = vector.broadcast %15 : vector<1x128xf32> to vector<32x128xf32>
    %17 = arith.mulf %14, %16 : vector<32x128xf32>
    %18 = arith.truncf %17 : vector<32x128xf32> to vector<32x128xbf16>
    %c0_10 = arith.constant 0 : index
    %c0_11 = arith.constant 0 : index
    %19 = vector.load %arg5[%c0_10, %c0_11] : memref<128x512xbf16, #tpu.memory_space<vmem>>, vector<128x512xbf16>
    %cst_12 = arith.constant dense<0.000000e+00> : vector<32x512xf32>
    %20 = tpu.matmul %18, %19, %cst_12 {dimension_numbers = #tpu.dot_dimension_numbers<[1], [0], [0], [1], [0, 0, 1, 1], [], []>} : vector<32x128xbf16>, vector<128x512xbf16>, vector<32x512xf32> -> vector<32x512xf32>
    %21 = vector.extract_strided_slice %20 {offsets = [0, 0], sizes = [32, 256], strides = [1, 1]} : vector<32x512xf32> to vector<32x256xf32>
    %22 = vector.extract_strided_slice %20 {offsets = [0, 256], sizes = [32, 256], strides = [1, 1]} : vector<32x512xf32> to vector<32x256xf32>
    %23 = arith.negf %21 : vector<32x256xf32>
    %24 = math.exp %23 : vector<32x256xf32>
    %cst_13 = arith.constant 1.000000e+00 : f32
    %25 = vector.broadcast %cst_13 : f32 to vector<32x256xf32>
    %26 = arith.addf %25, %24 : vector<32x256xf32>
    %27 = arith.divf %25, %26 : vector<32x256xf32>
    %28 = arith.mulf %21, %27 : vector<32x256xf32>
    %29 = arith.mulf %28, %22 : vector<32x256xf32>
    %30 = arith.truncf %29 : vector<32x256xf32> to vector<32x256xbf16>
    %c0_14 = arith.constant 0 : index
    %c0_15 = arith.constant 0 : index
    %31 = vector.load %arg6[%c0_14, %c0_15] : memref<256x128xbf16, #tpu.memory_space<vmem>>, vector<256x128xbf16>
    %cst_16 = arith.constant dense<0.000000e+00> : vector<32x128xf32>
    %32 = tpu.matmul %30, %31, %cst_16 {dimension_numbers = #tpu.dot_dimension_numbers<[1], [0], [0], [1], [0, 0, 1, 1], [], []>} : vector<32x256xbf16>, vector<256x128xbf16>, vector<32x128xf32> -> vector<32x128xf32>
    %33 = arith.addf %4, %32 : vector<32x128xf32>
    %34 = arith.mulf %33, %33 : vector<32x128xf32>
    %cst_17 = arith.constant dense<0.000000e+00> : vector<32xf32>
    %35 = vector.multi_reduction <add>, %34, %cst_17 [1] : vector<32x128xf32> to vector<32xf32>
    %36 = vector.shape_cast %35 : vector<32xf32> to vector<32x1xf32>
    %cst_18 = arith.constant 1.280000e+02 : f32
    %37 = vector.broadcast %cst_18 : f32 to vector<32x1xf32>
    %38 = arith.divf %36, %37 : vector<32x1xf32>
    %cst_19 = arith.constant 9.99999997E-7 : f32
    %39 = vector.broadcast %cst_19 : f32 to vector<32x1xf32>
    %40 = arith.addf %38, %39 : vector<32x1xf32>
    %41 = math.rsqrt %40 : vector<32x1xf32>
    %42 = vector.broadcast %41 : vector<32x1xf32> to vector<32x128xf32>
    %43 = arith.mulf %33, %42 : vector<32x128xf32>
    %c0_20 = arith.constant 0 : index
    %c0_21 = arith.constant 0 : index
    %44 = vector.load %arg7[%c0_20, %c0_21] : memref<1x128xf32, #tpu.memory_space<vmem>>, vector<1x128xf32>
    %45 = vector.broadcast %44 : vector<1x128xf32> to vector<32x128xf32>
    %46 = arith.mulf %43, %45 : vector<32x128xf32>
    %47 = arith.truncf %46 : vector<32x128xf32> to vector<32x128xbf16>
    %c0_22 = arith.constant 0 : index
    %c0_23 = arith.constant 0 : index
    %48 = vector.load %arg8[%c0_22, %c0_23] : memref<128x256xbf16, #tpu.memory_space<vmem>>, vector<128x256xbf16>
    %cst_24 = arith.constant dense<0.000000e+00> : vector<32x256xf32>
    %49 = tpu.matmul %47, %48, %cst_24 {dimension_numbers = #tpu.dot_dimension_numbers<[1], [0], [0], [1], [0, 0, 1, 1], [], []>} : vector<32x128xbf16>, vector<128x256xbf16>, vector<32x256xf32> -> vector<32x256xf32>
    %c0_25 = arith.constant 0 : index
    %c0_26 = arith.constant 0 : index
    %50 = vector.load %arg9[%c0_25, %c0_26] : memref<1x256xf32, #tpu.memory_space<vmem>>, vector<1x256xf32>
    %51 = vector.broadcast %50 : vector<1x256xf32> to vector<32x256xf32>
    %52 = arith.addf %49, %51 : vector<32x256xf32>
    %53 = arith.mulf %52, %52 : vector<32x256xf32>
    %cst_27 = arith.constant dense<0.000000e+00> : vector<32xf32>
    %54 = vector.multi_reduction <add>, %53, %cst_27 [1] : vector<32x256xf32> to vector<32xf32>
    %55 = vector.shape_cast %54 : vector<32xf32> to vector<32x1xf32>
    %cst_28 = arith.constant 2.560000e+02 : f32
    %56 = vector.broadcast %cst_28 : f32 to vector<32x1xf32>
    %57 = arith.divf %55, %56 : vector<32x1xf32>
    %cst_29 = arith.constant 9.99999997E-7 : f32
    %58 = vector.broadcast %cst_29 : f32 to vector<32x1xf32>
    %59 = arith.addf %57, %58 : vector<32x1xf32>
    %60 = math.rsqrt %59 : vector<32x1xf32>
    %61 = vector.broadcast %60 : vector<32x1xf32> to vector<32x256xf32>
    %62 = arith.mulf %52, %61 : vector<32x256xf32>
    %c0_30 = arith.constant 0 : index
    %c0_31 = arith.constant 0 : index
    %63 = vector.load %arg10[%c0_30, %c0_31] : memref<1x256xf32, #tpu.memory_space<vmem>>, vector<1x256xf32>
    %64 = vector.broadcast %63 : vector<1x256xf32> to vector<32x256xf32>
    %65 = arith.mulf %62, %64 : vector<32x256xf32>
    %66 = arith.negf %65 : vector<32x256xf32>
    %67 = math.exp %66 : vector<32x256xf32>
    %cst_32 = arith.constant 1.000000e+00 : f32
    %68 = vector.broadcast %cst_32 : f32 to vector<32x256xf32>
    %69 = arith.addf %68, %67 : vector<32x256xf32>
    %70 = arith.divf %68, %69 : vector<32x256xf32>
    %71 = arith.mulf %65, %70 : vector<32x256xf32>
    %72 = arith.truncf %71 : vector<32x256xf32> to vector<32x256xbf16>
    %c0_33 = arith.constant 0 : index
    %c0_34 = arith.constant 0 : index
    %73 = vector.load %arg11[%c0_33, %c0_34] : memref<256x64xbf16, #tpu.memory_space<vmem>>, vector<256x64xbf16>
    %cst_35 = arith.constant dense<0.000000e+00> : vector<32x64xf32>
    %74 = tpu.matmul %72, %73, %cst_35 {dimension_numbers = #tpu.dot_dimension_numbers<[1], [0], [0], [1], [0, 0, 1, 1], [], []>} : vector<32x256xbf16>, vector<256x64xbf16>, vector<32x64xf32> -> vector<32x64xf32>
    %c0_36 = arith.constant 0 : index
    %c0_37 = arith.constant 0 : index
    %75 = vector.load %arg12[%c0_36, %c0_37] : memref<1x64xf32, #tpu.memory_space<vmem>>, vector<1x64xf32>
    %76 = vector.broadcast %75 : vector<1x64xf32> to vector<32x64xf32>
    %77 = arith.addf %74, %76 : vector<32x64xf32>
    %78 = arith.mulf %77, %77 : vector<32x64xf32>
    %cst_38 = arith.constant dense<0.000000e+00> : vector<32xf32>
    %79 = vector.multi_reduction <add>, %78, %cst_38 [1] : vector<32x64xf32> to vector<32xf32>
    %80 = vector.shape_cast %79 : vector<32xf32> to vector<32x1xf32>
    %cst_39 = arith.constant 6.400000e+01 : f32
    %81 = vector.broadcast %cst_39 : f32 to vector<32x1xf32>
    %82 = arith.divf %80, %81 : vector<32x1xf32>
    %cst_40 = arith.constant 9.99999997E-7 : f32
    %83 = vector.broadcast %cst_40 : f32 to vector<32x1xf32>
    %84 = arith.addf %82, %83 : vector<32x1xf32>
    %85 = math.rsqrt %84 : vector<32x1xf32>
    %86 = vector.broadcast %85 : vector<32x1xf32> to vector<32x64xf32>
    %87 = arith.mulf %77, %86 : vector<32x64xf32>
    %c0_41 = arith.constant 0 : index
    %c0_42 = arith.constant 0 : index
    %88 = vector.load %arg13[%c0_41, %c0_42] : memref<1x64xf32, #tpu.memory_space<vmem>>, vector<1x64xf32>
    %89 = vector.broadcast %88 : vector<1x64xf32> to vector<32x64xf32>
    %90 = arith.mulf %87, %89 : vector<32x64xf32>
    %c0_43 = arith.constant 0 : index
    %c0_44 = arith.constant 0 : index
    %91 = vector.load %arg14[%c0_43, %c0_44] : memref<32x64xf32, #tpu.memory_space<vmem>>, vector<32x64xf32>
    tpu.vector_store %arg14[%c0_43, %c0_44], %90 {strides = array<i32>} : memref<32x64xf32, #tpu.memory_space<vmem>>, vector<32x64xf32>,
    return
  }
  func.func @transform_0(%arg0: i32) -> (i32, i32) {
    %c0_i32 = arith.constant 0 : i32
    %c0_i32_0 = arith.constant 0 : i32
    return %arg0, %c0_i32 : i32, i32
  }
  func.func @transform_1(%arg0: i32) -> (i32, i32) {
    %c0_i32 = arith.constant 0 : i32
    %c0_i32_0 = arith.constant 0 : i32
    return %arg0, %c0_i32 : i32, i32
  }
  func.func @transform_2(%arg0: i32) -> (i32, i32) {
    %c0_i32 = arith.constant 0 : i32
    %c0_i32_0 = arith.constant 0 : i32
    %c0_i32_1 = arith.constant 0 : i32
    return %c0_i32, %c0_i32_0 : i32, i32
  }
  func.func @transform_3(%arg0: i32) -> (i32, i32) {
    %c0_i32 = arith.constant 0 : i32
    %c0_i32_0 = arith.constant 0 : i32
    %c0_i32_1 = arith.constant 0 : i32
    return %c0_i32, %c0_i32_0 : i32, i32
  }
  func.func @transform_4(%arg0: i32) -> (i32, i32) {
    %c0_i32 = arith.constant 0 : i32
    %c0_i32_0 = arith.constant 0 : i32
    %c0_i32_1 = arith.constant 0 : i32
    return %c0_i32, %c0_i32_0 : i32, i32
  }
  func.func @transform_5(%arg0: i32) -> (i32, i32) {
    %c0_i32 = arith.constant 0 : i32
    %c0_i32_0 = arith.constant 0 : i32
    %c0_i32_1 = arith.constant 0 : i32
    return %c0_i32, %c0_i32_0 : i32, i32
  }
  func.func @transform_6(%arg0: i32) -> (i32, i32) {
    %c0_i32 = arith.constant 0 : i32
    %c0_i32_0 = arith.constant 0 : i32
    %c0_i32_1 = arith.constant 0 : i32
    return %c0_i32, %c0_i32_0 : i32, i32
  }
  func.func @transform_7(%arg0: i32) -> (i32, i32) {
    %c0_i32 = arith.constant 0 : i32
    %c0_i32_0 = arith.constant 0 : i32
    %c0_i32_1 = arith.constant 0 : i32
    return %c0_i32, %c0_i32_0 : i32, i32
  }
  func.func @transform_8(%arg0: i32) -> (i32, i32) {
    %c0_i32 = arith.constant 0 : i32
    %c0_i32_0 = arith.constant 0 : i32
    %c0_i32_1 = arith.constant 0 : i32
    return %c0_i32, %c0_i32_0 : i32, i32
  }
  func.func @transform_9(%arg0: i32) -> (i32, i32) {
    %c0_i32 = arith.constant 0 : i32
    %c0_i32_0 = arith.constant 0 : i32
    %c0_i32_1 = arith.constant 0 : i32
    return %c0_i32, %c0_i32_0 : i32, i32
  }
  func.func @transform_10(%arg0: i32) -> (i32, i32) {
    %c0_i32 = arith.constant 0 : i32
    %c0_i32_0 = arith.constant 0 : i32
    %c0_i32_1 = arith.constant 0 : i32
    return %c0_i32, %c0_i32_0 : i32, i32
  }
  func.func @transform_11(%arg0: i32) -> (i32, i32) {
    %c0_i32 = arith.constant 0 : i32
    %c0_i32_0 = arith.constant 0 : i32
    %c0_i32_1 = arith.constant 0 : i32
    return %c0_i32, %c0_i32_0 : i32, i32
  }
  func.func @transform_12(%arg0: i32) -> (i32, i32) {
    %c0_i32 = arith.constant 0 : i32
    %c0_i32_0 = arith.constant 0 : i32
    %c0_i32_1 = arith.constant 0 : i32
    return %c0_i32, %c0_i32_0 : i32, i32
  }
  func.func @transform_13(%arg0: i32) -> (i32, i32) {
    %c0_i32 = arith.constant 0 : i32
    %c0_i32_0 = arith.constant 0 : i32
    return %arg0, %c0_i32 : i32, i32
  }
}

</mosaic_0001>

<bundles_post_ra>
// kernel: _lambda_.3
= control target key start
LH: loop header
LB: loop body
LE: loop exit
PB: predicated region body
PF: predicated region fallthrough
CT: control target
= control target key end

     0   :  { %v426_v11 = vmov 128.0   ;;  %s626_s0 = inlined_call_operand.vmem [shape: f32[32,128], index: 0, kind: input, shape index: {}]   ;;  %s627_s1 = inlined_call_operand.vmem [shape: f32[1,128], index: 1, kind: input, shape index: {}]   ;;  %s628_s2 = inlined_call_operand.vmem [shape: bf16[128,256], index: 2, kind: input, shape index: {}]   ;;  %s629_s3 = inlined_call_operand.vmem [shape: f32[1,256], index: 3, kind: input, shape index: {}]   ;;  %s630_s4 = inlined_call_operand.vmem [shape: bf16[32,128], index: 4, kind: input, shape index: {}]   ;;  %s631_s5 = inlined_call_operand.vmem [shape: bf16[32,128], index: 5, kind: input, shape index: {}]   ;;  %s632_s6 = inlined_call_operand.vmem [shape: bf16[32,256], index: 6, kind: output, shape index: {}]  }
   0x1   :  { %v465_v0 = vld [vmem:[%s626_s0 + $0x10] sm:$0xff]  ;;  %v470_v1 = vld [vmem:[%s626_s0] sm:$0xff]  ;;  %v479_v4 = vld [vmem:[%s626_s0 + $0x18] sm:$0xff]  ;;  %416 = vrcp.f32 %v426_v11 }
   0x2   :  { %v29_v2 = vmul.f32 %v465_v0, %v465_v0  ;;  %v27_v3 = vmul.f32 %v470_v1, %v470_v1  ;;  %v484_v5 = vld [vmem:[%s626_s0 + $0x8] sm:$0xff]  ;;  %v30_v6 = vmul.f32 %v479_v4, %v479_v4  ;;  %v358_v8 = vld [vmem:[%s628_s2 + $0x70] sm:$0xf]  ;;  %v379_v9 = vld [vmem:[%s628_s2 + $0x74] sm:$0xf0] }
   0x3   :  { %v28_v7 = vmul.f32 %v484_v5, %v484_v5  ;;  %v378_v10 = vld [vmem:[%s628_s2 + $0x74] sm:$0xf]  ;;  %v359_v12 = vor.u32 %v379_v9, %v358_v8  ;;  %v360_v13 = vld [vmem:[%s628_s2 + $0x78] sm:$0xf0]  ;;  %v350_v15 = vld [vmem:[%s628_s2 + $0x60] sm:$0xf] }
   0x4   :  { %35 = vadd.xlane.f32.xlu0 %v29_v2  ;;  %31 = vadd.xlane.f32.xlu1 %v27_v3  ;;  %v363_v14 = vor.u32 %v378_v10, %v360_v13  ;;  %v377_v16 = vld [vmem:[%s628_s2 + $0x64] sm:$0xf0]  ;;  %v376_v17 = vld [vmem:[%s628_s2 + $0x64] sm:$0xf]  ;;  %v352_v19 = vld [vmem:[%s628_s2 + $0x68] sm:$0xf0] }
   0x5   :  { %210 = vmatpush.bf16.msra.mxu0 %v359_v12  ;;  %398 = vmatpush.bf16.msra.mxu2 %v359_v12  ;;  %v351_v18 = vor.u32 %v377_v16, %v350_v15  ;;  %v355_v20 = vor.u32 %v376_v17, %v352_v19  ;;  %v342_v22 = vld [vmem:[%s628_s2 + $0x50] sm:$0xf]  ;;  %v375_v23 = vld [vmem:[%s628_s2 + $0x54] sm:$0xf0]  ;;  %v374_v24 = vld [vmem:[%s628_s2 + $0x54] sm:$0xf] }
   0x6   :  { %229 = vmatpush.bf16.msra.mxu1 %v363_v14  ;;  %406 = vmatpush.bf16.msra.mxu3 %v363_v14  ;;  %v343_v25 = vor.u32 %v375_v23, %v342_v22  ;;  %v344_v26 = vld [vmem:[%s628_s2 + $0x58] sm:$0xf0]  ;;  %v334_v29 = vld [vmem:[%s628_s2 + $0x40] sm:$0xf]  ;;  %v373_v30 = vld [vmem:[%s628_s2 + $0x44] sm:$0xf0] }
   0x7   :  { %v417_v21 = vpop.eup %416  ;;  %v347_v28 = vor.u32 %v374_v24, %v344_v26  ;;  %v372_v31 = vld [vmem:[%s628_s2 + $0x44] sm:$0xf]  ;;  %v335_v32 = vor.u32 %v373_v30, %v334_v29  ;;  %v336_v33 = vld [vmem:[%s628_s2 + $0x48] sm:$0xf0]  ;;  %v326_v36 = vld [vmem:[%s628_s2 + $0x30] sm:$0xf] }
   0x8   :  { %v40_v27 = vmul.f32 128.0, %v417_v21  ;;  %v339_v35 = vor.u32 %v372_v31, %v336_v33  ;;  %v371_v37 = vld [vmem:[%s628_s2 + $0x34] sm:$0xf0]  ;;  %v370_v38 = vld [vmem:[%s628_s2 + $0x34] sm:$0xf]  ;;  %vm44_vm0 = vweird.f32 %v417_v21 }
   0x9   :  { %211 = vmatpush.bf16.msra.mxu0 %v351_v18  ;;  %399 = vmatpush.bf16.msra.mxu2 %v351_v18  ;;  %v327_v39 = vor.u32 %v371_v37, %v326_v36  ;;  %v328_v40 = vld [vmem:[%s628_s2 + $0x38] sm:$0xf0]  ;;  %v318_v43 = vld [vmem:[%s628_s2 + $0x20] sm:$0xf]  ;;  %v369_v44 = vld [vmem:[%s628_s2 + $0x24] sm:$0xf0] }
   0xa   :  { %230 = vmatpush.bf16.msra.mxu1 %v355_v20  ;;  %407 = vmatpush.bf16.msra.mxu3 %v355_v20  ;;  %v41_v34 = vsub.f32 1.0, %v40_v27  ;;  %v331_v42 = vor.u32 %v370_v38, %v328_v40  ;;  %v368_v45 = vld [vmem:[%s628_s2 + $0x24] sm:$0xf]  ;;  %v319_v46 = vor.u32 %v369_v44, %v318_v43  ;;  %v320_v47 = vld [vmem:[%s628_s2 + $0x28] sm:$0xf0] }
   0xb   :  { %v323_v49 = vor.u32 %v368_v45, %v320_v47  ;;  %v310_v50 = vld [vmem:[%s628_s2 + $0x10] sm:$0xf]  ;;  %v367_v51 = vld [vmem:[%s628_s2 + $0x14] sm:$0xf0]  ;;  %v366_v52 = vld [vmem:[%s628_s2 + $0x14] sm:$0xf] }
   0xc   :  { %37 = vadd.xlane.f32.xlu0 %v30_v6  ;;  %33 = vadd.xlane.f32.xlu1 %v28_v7  ;;  %v42_v41 = vmul.f32 %v417_v21, %v41_v34  ;;  %v311_v53 = vor.u32 %v367_v51, %v310_v50  ;;  %v312_v54 = vld [vmem:[%s628_s2 + $0x18] sm:$0xf0]  ;;  %v302_v55 = vld [vmem:[%s628_s2] sm:$0xf]  ;;  %v365_v56 = vld [vmem:[%s628_s2 + $0x4] sm:$0xf0] }
   0xd   :  { %212 = vmatpush.bf16.msra.mxu0 %v343_v25  ;;  %400 = vmatpush.bf16.msra.mxu2 %v343_v25  ;;  %v315_v58 = vor.u32 %v366_v52, %v312_v54  ;;  %v364_v59 = vld [vmem:[%s628_s2 + $0x4] sm:$0xf]  ;;  %v304_v60 = vld [vmem:[%s628_s2 + $0x8] sm:$0xf0]  ;;  %v303_v61 = vor.u32 %v365_v56, %v302_v55 }
   0xe   :  { %231 = vmatpush.bf16.msra.mxu1 %v347_v28  ;;  %408 = vmatpush.bf16.msra.mxu3 %v347_v28  ;;  %v43_v48 = vadd.f32 %v417_v21, %v42_v41  ;;  %v307_v2 = vor.u32 %v364_v59, %v304_v60 }
  0x10   :  { %v45_v57 = vsel %vm44_vm0, %v417_v21, %v43_v48 }
  0x11   :  { %213 = vmatpush.bf16.msra.mxu0 %v335_v32  ;;  %401 = vmatpush.bf16.msra.mxu2 %v335_v32 }
  0x12   :  { %232 = vmatpush.bf16.msra.mxu1 %v339_v35  ;;  %409 = vmatpush.bf16.msra.mxu3 %v339_v35 }
  0x15   :  { %214 = vmatpush.bf16.msra.mxu0 %v327_v39  ;;  %402 = vmatpush.bf16.msra.mxu2 %v327_v39 }
  0x16   :  { %233 = vmatpush.bf16.msra.mxu1 %v331_v42  ;;  %410 = vmatpush.bf16.msra.mxu3 %v331_v42  ;;  %v415_v42 = vld [vmem:[%s627_s1] ss:$0 sm:$0xff] }
  0x19   :  { %215 = vmatpush.bf16.msra.mxu0 %v319_v46  ;;  %403 = vmatpush.bf16.msra.mxu2 %v319_v46 }
  0x1a   :  { %234 = vmatpush.bf16.msra.mxu1 %v323_v49  ;;  %411 = vmatpush.bf16.msra.mxu3 %v323_v49 }
  0x1d   :  { %216 = vmatpush.bf16.msra.mxu0 %v311_v53  ;;  %404 = vmatpush.bf16.msra.mxu2 %v311_v53 }
  0x1e   :  { %235 = vmatpush.bf16.msra.mxu1 %v315_v58  ;;  %412 = vmatpush.bf16.msra.mxu3 %v315_v58 }
  0x21   :  { %217 = vmatpush.bf16.msra.mxu0 %v303_v61  ;;  %405 = vmatpush.bf16.msra.mxu2 %v303_v61 }
  0x22   :  { %236 = vmatpush.bf16.msra.mxu1 %v307_v2  ;;  %413 = vmatpush.bf16.msra.mxu3 %v307_v2 }
  0x77   :  { %v36_v62 = vpop.xlane.xlu0 %35  ;;  %v32_v63 = vpop.xlane.xlu1 %31 }
  0x78   :  { %v48_v3 = vmul.f32 %v45_v57, %v36_v62  ;;  %v46_v6 = vmul.f32 %v45_v57, %v32_v63  ;;  %v396_v62 = vld [vmem:[%s630_s4 + $0x8] sm:$0xff]  }
  0x79   :  { %v397_v63 = vld [vmem:[%s631_s5 + $0x8] sm:$0xff]  }
  0x7a   :  { %v52_v7 = vadd.f32 1e-06, %v48_v3  ;;  %v50_v8 = vadd.f32 1e-06, %v46_v6  ;;  %v395_v35 = vunpack.c.h.bf16 %v397_v63 }
  0x7c   :  { %418 = vrsqrt.f32 %v52_v7  ;;  %vm60_vm2 = vweird.f32 %v50_v8  ;;  %vm80_vm4 = vweird.f32 %v52_v7 }
  0x7d   :  { %420 = vrsqrt.f32 %v50_v8 }
  0x7f   :  { %v38_v9 = vpop.xlane.xlu0 %37  ;;  %v34_v10 = vpop.xlane.xlu1 %33 }
  0x80   :  { %v49_v11 = vmul.f32 %v45_v57, %v38_v9  ;;  %v47_v12 = vmul.f32 %v45_v57, %v34_v10  ;;  %v394_v9 = vunpack.c.l.bf16 %v397_v63 }
  0x82   :  { %v419_v13 = vpop.eup %418  ;;  %v53_v14 = vadd.f32 1e-06, %v49_v11  ;;  %v51_v15 = vadd.f32 1e-06, %v47_v12 }
  0x83   :  { %v421_v16 = vpop.eup %420  ;;  %v75_v17 = vmul.f32 %v419_v13, %v52_v7  ;;  %vm81_vm1 = vweird.f32 %v419_v13 }
  0x84   :  { %v55_v18 = vmul.f32 %v421_v16, %v50_v8  ;;  %422 = vrsqrt.f32 %v53_v14  ;;  %vm61_vm3 = vweird.f32 %v421_v16  ;;  %vm82_vm5 = vmor %vm80_vm4, %vm81_vm1  ;;  %vm70_vm8 = vweird.f32 %v51_v15 }
  0x85   :  { %v76_v19 = vmul.f32 %v419_v13, %v75_v17  ;;  %424 = vrsqrt.f32 %v51_v15  ;;  %vm586_vm6 = vmor %vm60_vm2, %vm61_vm3  ;;  %vm90_vm10 = vweird.f32 %v53_v14  ;;  %v386_v8 = vunpack.c.l.bf16 %v396_v62 }
  0x86   :  { %v56_v20 = vmul.f32 %v421_v16, %v55_v18 }
  0x87   :  { %v77_v21 = vmul.f32 0.5, %v76_v19 }
  0x88   :  { %v57_v22 = vmul.f32 0.5, %v56_v20 }
  0x89   :  { %v78_v23 = vsub.f32 1.5, %v77_v21 }
  0x8a   :  { %v423_v24 = vpop.eup %422  ;;  %v58_v25 = vsub.f32 1.5, %v57_v22 }
  0x8b   :  { %v425_v26 = vpop.eup %424  ;;  %v85_v27 = vmul.f32 %v423_v24, %v53_v14  ;;  %v79_v29 = vmul.f32 %v419_v13, %v78_v23  ;;  %vm91_vm7 = vweird.f32 %v423_v24 }
  0x8c   :  { %v65_v28 = vmul.f32 %v425_v26, %v51_v15  ;;  %v59_v31 = vmul.f32 %v421_v16, %v58_v25  ;;  %vm71_vm9 = vweird.f32 %v425_v26  ;;  %vm92_vm11 = vmor %vm90_vm10, %vm91_vm7 }
  0x8d   :  { %v86_v30 = vmul.f32 %v423_v24, %v85_v27  ;;  %v83_v37 = vsel %vm82_vm5, %v419_v13, %v79_v29  ;;  %vm72_vm12 = vmor %vm70_vm8, %vm71_vm9 }
  0x8e   :  { %v66_v32 = vmul.f32 %v425_v26, %v65_v28  ;;  %v63_v39 = vsel %vm586_vm6, %v421_v16, %v59_v31  ;;  %v96_v43 = vmul.f32 %v83_v37, %v465_v0  ;;  %v124_v0 = vld [vmem:[%s629_s3] sm:$0x3] }
  0x8f   :  { %v87_v33 = vmul.f32 0.5, %v86_v30  ;;  %v94_v44 = vmul.f32 %v63_v39, %v470_v1  ;;  %v381_v1 = vld [vmem:[%s630_s4] sm:$0xff]   ;;  %v127_v55 = vperm.slane %v124_v0, 1 }
  0x90   :  { %v67_v34 = vmul.f32 0.5, %v66_v32  ;;  %v104_v49 = vmul.f32 %v415_v42, %v96_v43  ;;  %v382_v56 = vunpack.c.l.bf16 %v381_v1  ;;  %v383_v17 = vunpack.c.h.bf16 %v381_v1 }
  0x91   :  { %v88_v36 = vsub.f32 1.5, %v87_v33  ;;  %v102_v51 = vmul.f32 %v415_v42, %v94_v44 }
  0x92   :  { %v68_v38 = vsub.f32 1.5, %v67_v34  ;;  %v387_v34 = vunpack.c.h.bf16 %v396_v62 }
  0x93   :  { %v89_v40 = vmul.f32 %v423_v24, %v88_v36 }
  0x94   :  { %v69_v41 = vmul.f32 %v425_v26, %v68_v38 }
  0x95   :  { %v93_v45 = vsel %vm92_vm11, %v423_v24, %v89_v40 }
  0x96   :  { %v73_v46 = vsel %vm72_vm12, %v425_v26, %v69_v41  ;;  %v97_v47 = vmul.f32 %v93_v45, %v479_v4  ;;  %v389_v4 = vld [vmem:[%s631_s5] sm:$0xff]  }
  0x97   :  { %v95_v48 = vmul.f32 %v73_v46, %v484_v5  ;;  %v126_v5 = vperm.slane %v124_v0, 0  ;;  %v390_v57 = vunpack.c.l.bf16 %v389_v4  ;;  %v391_v18 = vunpack.c.h.bf16 %v389_v4 }
  0x98   :  { %v105_v50 = vmul.f32 %v415_v42, %v97_v47 }
  0x99   :  { %v103_v52 = vmul.f32 %v415_v42, %v95_v48 }
  0x9a   :  { %v107_v53 = vpack.c.bf16 %v105_v50, %v104_v49 }
  0x9b   :  { %v106_v54 = vpack.c.bf16 %v103_v52, %v102_v51 }
  0x9c   :  { %223 = vmatmul.bf16.vlgmr.msra.gmra.mxu2 %v107_v53  ;;  %242 = vmatmul.bf16.vlgmr.msra.gmra.mxu3 %v107_v53 }
  0x9d   :  { %218 = vmatmul.bf16.vlgmr.msra.gmra.mxu0 %v106_v54  ;;  %237 = vmatmul.bf16.vlgmr.msra.gmra.mxu1 %v106_v54 }
 0x11a   :  { %v219_v58 = vpop.f32.mrf.mxu0  ;;  %v238_v59 = vpop.f32.mrf.mxu1 }
 0x11b   :  { %v220_v60 = vadd.f32 %v219_v58, %v126_v5  ;;  %v239_v61 = vadd.f32 %v238_v59, %v127_v55 }
 0x11d   :  { %v264_v2 = vmul.f32 %v382_v56, %v220_v60  ;;  %v280_v3 = vmul.f32 %v390_v57, %v220_v60  ;;  %v268_v6 = vmul.f32 %v390_v57, %v239_v61  ;;  %v276_v7 = vmul.f32 %v382_v56, %v239_v61 }
 0x11f   :  { %v272_v10 = vsub.f32 %v264_v2, %v268_v6  ;;  %v284_v11 = vadd.f32 %v280_v3, %v276_v7  ;;  %v224_v12 = vpop.f32.mrf.mxu2  ;;  %v243_v13 = vpop.f32.mrf.mxu3 }
 0x120   :  { %v225_v14 = vadd.f32 %v224_v12, %v126_v5  ;;  %v244_v15 = vadd.f32 %v243_v13, %v127_v55 }
 0x121   :  { %v288_v16 = vpack.c.bf16 %v284_v11, %v272_v10 }
 0x122   :  { %v266_v19 = vmul.f32 %v386_v8, %v225_v14  ;;  %v282_v20 = vmul.f32 %v394_v9, %v225_v14  ;;  %v270_v21 = vmul.f32 %v394_v9, %v244_v15  ;;  %v278_v22 = vmul.f32 %v386_v8, %v244_v15  ;;  %v221_v23 = vpop.f32.mrf.mxu0  ;;  %v240_v24 = vpop.f32.mrf.mxu1 }
 0x123   :  { %292 = vst [vmem:[%s632_s6] sm:$0xff] %v288_v16  ;;  %v222_v25 = vadd.f32 %v221_v23, %v126_v5  ;;  %v241_v26 = vadd.f32 %v240_v24, %v127_v55 }
 0x124   :  { %v274_v27 = vsub.f32 %v266_v19, %v270_v21  ;;  %v286_v28 = vadd.f32 %v282_v20, %v278_v22 }
 0x125   :  { %v265_v29 = vmul.f32 %v383_v17, %v222_v25  ;;  %v281_v30 = vmul.f32 %v391_v18, %v222_v25  ;;  %v269_v31 = vmul.f32 %v391_v18, %v241_v26  ;;  %v277_v32 = vmul.f32 %v383_v17, %v241_v26 }
 0x126   :  { %v290_v33 = vpack.c.bf16 %v286_v28, %v274_v27 }
 0x127   :  { %v273_v36 = vsub.f32 %v265_v29, %v269_v31  ;;  %v285_v37 = vadd.f32 %v281_v30, %v277_v32  ;;  %v226_v38 = vpop.f32.mrf.mxu2  ;;  %v245_v39 = vpop.f32.mrf.mxu3 }
 0x128   :  { %294 = vst [vmem:[%s632_s6 + $0x10] sm:$0xff] %v290_v33  ;;  %v227_v40 = vadd.f32 %v226_v38, %v126_v5  ;;  %v246_v41 = vadd.f32 %v245_v39, %v127_v55 }
 0x129   :  { %v289_v42 = vpack.c.bf16 %v285_v37, %v273_v36 }
 0x12a   :  { %v267_v43 = vmul.f32 %v387_v34, %v227_v40  ;;  %v283_v44 = vmul.f32 %v395_v35, %v227_v40  ;;  %v271_v45 = vmul.f32 %v395_v35, %v246_v41  ;;  %v279_v46 = vmul.f32 %v387_v34, %v246_v41 }
 0x12b   :  { %293 = vst [vmem:[%s632_s6 + $0x8] sm:$0xff] %v289_v42 }
 0x12c   :  { %v275_v47 = vsub.f32 %v267_v43, %v271_v45  ;;  %v287_v48 = vadd.f32 %v283_v44, %v279_v46 }
 0x12e   :  { %v291_v49 = vpack.c.bf16 %v287_v48, %v275_v47 }
 0x130   :  { %295 = vst [vmem:[%s632_s6 + $0x18] sm:$0xff] %v291_v49 }

// kernel: _lambda_.4
= control target key start
LH: loop header
LB: loop body
LE: loop exit
PB: predicated region body
PF: predicated region fallthrough
CT: control target
= control target key end

     0   :  { %s624_s6 = smov 0   ;;  %s713_s0 = inlined_call_operand.vmem [shape: bf16[2,16,256], index: 0, kind: input, shape index: {}]   ;;  %s714_s1 = inlined_call_operand.vmem [shape: bf16[2,16,128], index: 1, kind: output, shape index: {}]  }
   0x1 LB: > { %s501_s7 = sadd.s32 4294967295, %s605_s6   ;;  %p505_p0 = scmp.ge.s32.totalorder %s605_s6, 1  ;;  %s605_s6 = sphi %s624_s6, %s11_s6  }
   0x2   : > { %p87_p1 = scmp.lt.s32.totalorder %s605_s6, 3 }
   0x4   : > { %p88_p2 = pnand %p505_p0, %p87_p1 }
   0x5   : > { %p107_p3 = scmp.lt.s32.totalorder (!%p88_p2), %s501_s7, 1  ;;  %s607_s12 = smov (!%p88_p2), 64  }
   0x6   : > { %91 = sbr.rel (%p88_p2) target bundleno = 984 (0x3d8), region = 24  ;;  %s608_s13 = smov (!%p88_p2), 112  }
   0x7   : > { %s609_s14 = smov (!%p88_p2), 16   ;;  %s610_s15 = smov (!%p88_p2), 80  }
   0x8   : > { %s611_s16 = smov (!%p88_p2), 96   ;;  %s612_s17 = smov (!%p88_p2), 32  }
   0x9   : > { %s613_s18 = smov (!%p88_p2), 48  }
   0xb   : > { %s716_s7 = smov (!%p107_p3, %s501_s7), 1  ;;  %vm132_vm0 = vcmask 130048   ;;  %vm141_vm1 = vcmask 261120   ;;  %vm436_vm2 = vcmask 523264   ;;  %vm439_vm3 = vcmask 785408  }
   0xc   : > { %s528_s8 = sshll.u32 %s716_s7, 4  ;;  %s529_s19 = sshll.u32 %s716_s7, 3 }
   0xd   : > { %s111_s11 = scalar_lea.vmem %s713_s0, %s528_s8  ;;  %s116_s22 = scalar_lea.vmem %s714_s1, %s529_s19 }
   0xe   : > { %v512_v0 = vld [vmem:[%s111_s11] sm:$0xf]  ;;  %v531_v1 = vld [vmem:[%s111_s11 + $0x4] sm:$0xf0]  ;;  %v530_v2 = vld [vmem:[%s111_s11 + $0x4] sm:$0xf] }
   0xf   : > { %v513_v3 = vor.u32 %v531_v1, %v512_v0  ;;  %v514_v4 = vld [vmem:[%s111_s11 + $0x8] sm:$0xf0] }
  0x10   : > { %v638_v5 = vor.u32 %v530_v2, %v514_v4 }
  0x11   : > { %125 = vrot.lane.b32.xlu0 %v513_v3, %s607_s12  ;;  %205 = vrot.lane.b32.xlu2 %v513_v3, %s608_s13 }
  0x12   : > { %136 = vrot.lane.b32.xlu1 %v638_v5, %s609_s14 }
  0x19   : > { %130 = vrot.lane.b32.xlu0 %v638_v5, %s610_s15  ;;  %275 = vrot.lane.b32.xlu2 %v513_v3, %s611_s16 }
  0x21   : > { %183 = vrot.lane.b32.xlu0 %v513_v3, %s612_s17 }
  0x29   : > { %268 = vrot.lane.b32.xlu0 %v513_v3, %s613_s18 }
  0x31   : > { %270 = vrot.lane.b32.xlu0 %v638_v5, %s607_s12 }
  0x39   : > { %277 = vrot.lane.b32.xlu0 %v638_v5, %s608_s13 }
  0x41   : > { %347 = vrot.lane.b32.xlu0 %v638_v5, %s611_s16 }
  0x6b   : > { %v206_v11 = vpop.permute.xlu2 %205 }
  0x6c   : > { %v209_v13 = vsel %vm132_vm0, %v206_v11, %v638_v5 }
  0x73   : > { %v276_v31 = vpop.permute.xlu2 %275 }
  0x83   : > { %v126_v6 = vpop.permute.xlu0 %125 }
  0x84   : > { %v137_v10 = vpop.permute.xlu1 %136 }
  0x85   : > { %v140_v12 = vsel %vm132_vm0, %v513_v3, %v137_v10 }
  0x8b   : > { %v131_v7 = vpop.permute.xlu0 %130 }
  0x8c   : > { %v135_v8 = vsel %vm132_vm0, %v126_v6, %v131_v7 }
  0x8d   : > { %v144_v9 = vsel %vm141_vm1, %v135_v8, 0 }
  0x8e   : > { %153 = vmatpush.bf16.xpose.msra.mxu0 %v144_v9  ;;  %219 = vmatpush.bf16.xpose.msra.mxu2 %v144_v9 }
  0x93   : > { %v184_v17 = vpop.permute.xlu0 %183 }
  0x94   : > { %196 = vmatpush.bf16.msra.mxu1 %v184_v17  ;;  %259 = vmatpush.bf16.msra.mxu3 %v184_v17 }
  0x95   : > { %518 = vmatmul.msk.bf16.vlgmr.msra.gmra.mxu0 %vm141_vm1, %v140_v12  ;;  %520 = vmatmul.msk.bf16.vlgmr.msra.gmra.mxu2 %vm141_vm1, %v209_v13 }
  0x9b   : > { %v269_v27 = vpop.permute.xlu0 %268 }
  0xa3   : > { %v271_v28 = vpop.permute.xlu0 %270 }
  0xa4   : > { %v274_v29 = vsel %vm132_vm0, %v269_v27, %v271_v28 }
  0xa5   : > { %v284_v30 = vsel %vm141_vm1, %v274_v29, 0 }
  0xa6   : > { %293 = vmatpush.bf16.xpose.msrb.mxu1 %v284_v30  ;;  %361 = vmatpush.bf16.xpose.msrb.mxu0 %v284_v30 }
  0xab   : > { %v278_v34 = vpop.permute.xlu0 %277 }
  0xac   : > { %v281_v45 = vsel %vm132_vm0, %v276_v31, %v278_v34 }
  0xb3   : > { %v348_v39 = vpop.permute.xlu0 %347 }
 0x112   : > { %v155_v14 = vpop.f32.mrf.mxu0 }
 0x113   : > { %v160_v15 = vmul.f32 0.17677669, %v155_v14 }
 0x115   : > { %v162_v16 = vsel %vm132_vm0, %v160_v15, -inf }
 0x116   : > { %163 = vmax.xlane.f32.xlu1 %v162_v16 }
 0x118   : > { %v221_v18 = vpop.f32.mrf.mxu2 }
 0x119   : > { %v226_v25 = vmul.f32 0.17677669, %v221_v18 }
 0x11a   : > { %v157_v19 = vpop.f32.mrf.mxu0 }
 0x11b   : > { %v161_v20 = vmul.f32 0.17677669, %v157_v19  ;;  %v228_v26 = vsel %vm132_vm0, %v226_v25, -inf }
 0x11d   : > { %v165_v21 = vsel %vm132_vm0, %v161_v20, -inf }
 0x11e   : > { %166 = vmax.xlane.f32.xlu2 %v165_v21 }
 0x120   : > { %v223_v22 = vpop.f32.mrf.mxu2 }
 0x121   : > { %v227_v23 = vmul.f32 0.17677669, %v223_v22 }
 0x123   : > { %v231_v24 = vsel %vm132_vm0, %v227_v23, -inf }
 0x124   : > { %232 = vmax.xlane.f32.xlu1 %v231_v24 }
 0x136   : > { %345 = vrot.lane.b32.xlu2 %v513_v3, %s610_s15 }
 0x15f   : > { %229 = vmax.xlane.f32.xlu2 %v228_v26 }
 0x189   : > { %v164_v32 = vpop.xlane.xlu1 %163 }
 0x18a   : > { %v168_v33 = vsub.f32 %v160_v15, %v164_v32 }
 0x18c   : > { %v170_v35 = vmul.f32 1.442695, %v168_v33 }
 0x18e   : > { %567 = vpow2.f32 %v170_v35 }
 0x191   : > { %v167_v36 = vpop.xlane.xlu2 %166 }
 0x192   : > { %v169_v37 = vsub.f32 %v161_v20, %v167_v36 }
 0x194   : > { %v172_v38 = vmul.f32 1.442695, %v169_v37  ;;  %v666_v42 = vpop.eup %567 }
 0x195   : > { %v174_v29 = vsel %vm132_vm0, %v666_v42, 0.0 }
 0x196   : > { %569 = vpow2.f32 %v172_v38 }
 0x197   : > { %v233_v46 = vpop.xlane.xlu1 %232 }
 0x198   : > { %v235_v47 = vsub.f32 %v227_v23, %v233_v46 }
 0x199   : > { %v346_v40 = vpop.permute.xlu2 %345 }
 0x19a   : > { %v351_v41 = vsel %vm132_vm0, %v346_v40, %v348_v39  ;;  %v238_v48 = vmul.f32 1.442695, %v235_v47 }
 0x19b   : > { %524 = vmatmul.msk.bf16.vlgmr.msrb.gmra.mxu0 %vm141_vm1, %v351_v41 }
 0x19c   : > { %v669_v43 = vpop.eup %569  ;;  %571 = vpow2.f32 %v238_v48 }
 0x19d   : > { %v182_v44 = vpack.c.bf16 %v669_v43, %v666_v42  ;;  %v177_v26 = vsel %vm132_vm0, %v669_v43, 0.0 }
 0x19f   : > { %519 = vmatmul.msk.bf16.vlgmr.msra.gmra.mxu1 %vm132_vm0, %v182_v44 }
 0x1a2   : > { %v572_v52 = vpop.eup %571 }
 0x1a3   : > { %v243_v56 = vsel %vm132_vm0, %v572_v52, 0.0 }
 0x1af   : > { %522 = vmatmul.msk.bf16.vlgmr.msrb.gmra.mxu1 %vm141_vm1, %v281_v45 }
 0x1d2   : > { %v230_v49 = vpop.xlane.xlu2 %229 }
 0x1d3   : > { %v234_v50 = vsub.f32 %v226_v25, %v230_v49 }
 0x1d5   : > { %v236_v51 = vmul.f32 1.442695, %v234_v50 }
 0x1d7   : > { %573 = vpow2.f32 %v236_v51 }
 0x1dd   : > { %v574_v53 = vpop.eup %573 }
 0x1de   : > { %v240_v54 = vsel %vm132_vm0, %v574_v53, 0.0  ;;  %v248_v55 = vpack.c.bf16 %v572_v52, %v574_v53 }
 0x1df   : > { %241 = vadd.xlane.f32.xlu2 %v240_v54 }
 0x1e0   : > { %521 = vmatmul.msk.bf16.vlgmr.msra.gmra.mxu3 %vm132_vm0, %v248_v55 }
 0x1e7   : > { %244 = vadd.xlane.f32.xlu2 %v243_v56 }
 0x218   : > { %v363_v57 = vpop.f32.mrf.mxu0 }
 0x219   : > { %v368_v58 = vmul.f32 0.17677669, %v363_v57 }
 0x21b   : > { %v370_v59 = vsel %vm132_vm0, %v368_v58, -inf }
 0x21c   : > { %v680_v60 = vpop.f32.mrf.mxu1  ;;  %371 = vmax.xlane.f32.xlu1 %v370_v59 }
 0x220   : > { %v365_v61 = vpop.f32.mrf.mxu0 }
 0x221   : > { %v369_v62 = vmul.f32 0.17677669, %v365_v61 }
 0x223   : > { %v373_v63 = vsel %vm132_vm0, %v369_v62, -inf }
 0x224   : > { %v683_v0 = vpop.f32.mrf.mxu1  ;;  %374 = vmax.xlane.f32.xlu1 %v373_v63 }
 0x22c   : > { %v295_v1 = vpop.f32.mrf.mxu1 }
 0x22d   : > { %v300_v2 = vmul.f32 0.17677669, %v295_v1 }
 0x22f   : > { %v302_v3 = vsel %vm132_vm0, %v300_v2, -inf }
 0x230   : > { %303 = vmax.xlane.f32.xlu0 %v302_v3 }
 0x234   : > { %v297_v4 = vpop.f32.mrf.mxu1 }
 0x235   : > { %v301_v6 = vmul.f32 0.17677669, %v297_v4 }
 0x237   : > { %v305_v7 = vsel %vm132_vm0, %v301_v6, -inf }
 0x238   : > { %306 = vmax.xlane.f32.xlu1 %v305_v7 }
 0x251   : > { %323 = vrot.lane.b32.xlu1 %v638_v5, %s612_s17 }
 0x252   : > { %v242_v28 = vpop.xlane.xlu2 %241 }
 0x25a   : > { %v245_v34 = vpop.xlane.xlu2 %244 }
 0x263   : > { %v261_v31 = vpop.f32.mrf.mxu3 }
 0x26b   : > { %v263_v35 = vpop.f32.mrf.mxu3 }
 0x28f   : > { %v372_v8 = vpop.xlane.xlu1 %371 }
 0x290   : > { %v376_v9 = vsub.f32 %v368_v58, %v372_v8 }
 0x292   : > { %v378_v10 = vmul.f32 1.442695, %v376_v9 }
 0x294   : > { %575 = vpow2.f32 %v378_v10 }
 0x297   : > { %v375_v11 = vpop.xlane.xlu1 %374 }
 0x298   : > { %v377_v12 = vsub.f32 %v369_v62, %v375_v11 }
 0x29a   : > { %v576_v13 = vpop.eup %575  ;;  %v380_v14 = vmul.f32 1.442695, %v377_v12 }
 0x29b   : > { %v382_v15 = vsel %vm132_vm0, %v576_v13, 0.0 }
 0x29c   : > { %577 = vpow2.f32 %v380_v14  ;;  %383 = vadd.xlane.f32.xlu0 %v382_v15 }
 0x2a2   : > { %v578_v16 = vpop.eup %577 }
 0x2a3   : > { %v304_v17 = vpop.xlane.xlu0 %303  ;;  %v385_v18 = vsel %vm132_vm0, %v578_v16, 0.0  ;;  %v390_v33 = vpack.c.bf16 %v578_v16, %v576_v13 }
 0x2a4   : > { %v308_v19 = vsub.f32 %v300_v2, %v304_v17  ;;  %386 = vadd.xlane.f32.xlu1 %v385_v18 }
 0x2a6   : > { %v310_v20 = vmul.f32 1.442695, %v308_v19 }
 0x2a8   : > { %579 = vpow2.f32 %v310_v20 }
 0x2ab   : > { %v307_v5 = vpop.xlane.xlu1 %306 }
 0x2ac   : > { %v309_v21 = vsub.f32 %v301_v6, %v307_v5 }
 0x2ae   : > { %v580_v22 = vpop.eup %579  ;;  %v312_v23 = vmul.f32 1.442695, %v309_v21 }
 0x2af   : > { %v314_v24 = vsel %vm132_vm0, %v580_v22, 0.0 }
 0x2b0   : > { %581 = vpow2.f32 %v312_v23  ;;  %315 = vadd.xlane.f32.xlu0 %v314_v24 }
 0x2b1   : > { %583 = vrcp.f32 %v245_v34 }
 0x2b2   : > { %585 = vrcp.f32 %v242_v28 }
 0x2b6   : > { %v582_v25 = vpop.eup %581 }
 0x2b7   : > { %v317_v27 = vsel %vm132_vm0, %v582_v25, 0.0  ;;  %v322_v32 = vpack.c.bf16 %v582_v25, %v580_v22  ;;  %v584_v36 = vpop.eup %583 }
 0x2b8   : > { %178 = vadd.xlane.f32.xlu0 %v177_v26  ;;  %318 = vadd.xlane.f32.xlu2 %v317_v27  ;;  %v267_v37 = vmul.f32 %v584_v36, %v263_v35  ;;  %v586_v38 = vpop.eup %585 }
 0x2b9   : > { %v266_v39 = vmul.f32 %v586_v38, %v261_v31 }
 0x2bb   : > { %v552_v40 = vpack.i.bf16 %v267_v37, %v266_v39 }
 0x2c0   : > { %175 = vadd.xlane.f32.xlu2 %v174_v29 }
 0x2c3   : > { %v324_v30 = vpop.permute.xlu1 %323 }
 0x2c4   : > { %336 = vmatpush.bf16.msrb.mxu3 %v324_v30  ;;  %401 = vmatpush.bf16.msrb.mxu2 %v324_v30 }
 0x2c7   : > { %523 = vmatmul.msk.bf16.vlgmr.msrb.gmra.mxu3 %vm132_vm0, %v322_v32  ;;  %525 = vmatmul.msk.bf16.vlgmr.msrb.gmra.mxu2 %vm132_vm0, %v390_v33 }
 0x2d8   : > { %553 = vrot.lane.b32.xlu2 %v552_v40, %s612_s17 }
 0x30f   : > { %v384_v41 = vpop.xlane.xlu0 %383 }
 0x317   : > { %v387_v46 = vpop.xlane.xlu1 %386 }
 0x323   : > { %v316_v42 = vpop.xlane.xlu0 %315 }
 0x324   : > { %587 = vrcp.f32 %v316_v42 }
 0x32a   : > { %v588_v47 = vpop.eup %587 }
 0x32b   : > { %v319_v43 = vpop.xlane.xlu2 %318  ;;  %v179_v59 = vpop.xlane.xlu0 %178 }
 0x32c   : > { %589 = vrcp.f32 %v319_v43 }
 0x32d   : > { %591 = vrcp.f32 %v387_v46 }
 0x32e   : > { %593 = vrcp.f32 %v384_v41 }
 0x332   : > { %v590_v48 = vpop.eup %589 }
 0x333   : > { %v592_v54 = vpop.eup %591  ;;  %v176_v61 = vpop.xlane.xlu2 %175 }
 0x334   : > { %v594_v56 = vpop.eup %593  ;;  %595 = vrcp.f32 %v176_v61 }
 0x335   : > { %597 = vrcp.f32 %v179_v59 }
 0x33a   : > { %v596_v63 = vpop.eup %595 }
 0x33b   : > { %v554_v1 = vpop.permute.xlu2 %553  ;;  %v598_v2 = vpop.eup %597  ;;  %v203_v3 = vmul.f32 %v596_v63, %v680_v60 }
 0x33c   : > { %v556_v4 = vunpack.i.h.bf16 %v554_v1  ;;  %v555_v6 = vunpack.i.l.bf16 %v554_v1  ;;  %v204_v9 = vmul.f32 %v598_v2, %v683_v0 }
 0x33e   : > { %v435_v11 = vsel %vm141_vm1, %v204_v9, %v556_v4  ;;  %v434_v12 = vsel %vm141_vm1, %v203_v3, %v555_v6 }
 0x34a   : > { %v338_v44 = vpop.f32.mrf.mxu3  ;;  %v403_v45 = vpop.f32.mrf.mxu2 }
 0x34b   : > { %v343_v50 = vmul.f32 %v588_v47, %v338_v44  ;;  %v408_v57 = vmul.f32 %v594_v56, %v403_v45 }
 0x352   : > { %v340_v49 = vpop.f32.mrf.mxu3  ;;  %v405_v53 = vpop.f32.mrf.mxu2 }
 0x353   : > { %v344_v51 = vmul.f32 %v590_v48, %v340_v49  ;;  %v409_v55 = vmul.f32 %v592_v54, %v405_v53 }
 0x355   : > { %v557_v52 = vpack.i.bf16 %v344_v51, %v343_v50  ;;  %v562_v58 = vpack.i.bf16 %v409_v55, %v408_v57 }
 0x357   : > { %558 = vrot.lane.b32.xlu0 %v557_v52, %s607_s12 }
 0x35f   : > { %563 = vrot.lane.b32.xlu0 %v562_v58, %s611_s16 }
 0x3c9   : > { %v559_v62 = vpop.permute.xlu0 %558 }
 0x3ca   : > { %v561_v7 = vunpack.i.h.bf16 %v559_v62  ;;  %v560_v8 = vunpack.i.l.bf16 %v559_v62 }
 0x3cc   : > { %v438_v15 = vsel %vm436_vm2, %v435_v11, %v561_v7  ;;  %v437_v16 = vsel %vm436_vm2, %v434_v12, %v560_v8 }
 0x3d1   : > { %v564_v10 = vpop.permute.xlu0 %563 }
 0x3d2   : > { %v566_v13 = vunpack.i.h.bf16 %v564_v10  ;;  %v565_v14 = vunpack.i.l.bf16 %v564_v10 }
 0x3d4   : > { %v441_v60 = vsel %vm439_vm3, %v438_v15, %v566_v13  ;;  %v440_v17 = vsel %vm439_vm3, %v437_v16, %v565_v14 }
 0x3d5   : > { %v535_v18 = vpack.c.bf16 %v441_v60, %v440_v17 }
 0x3d7   : > { %536 = vst [vmem:[%s116_s22] sm:$0xff] %v535_v18  }
 0x3d8 PF: > { %s11_s6 = sadd.s32 1, %s605_s6  }
 0x3d9   : > { %p8_p4 = scmp.ge.s32.totalorder %s11_s6, 4  }
 0x3db   :  { %10 = sbr.rel (!%p8_p4) target bundleno = 1 (0x1), region = 54 }

// kernel: _lambda_.5
= control target key start
LH: loop header
LB: loop body
LE: loop exit
PB: predicated region body
PF: predicated region fallthrough
CT: control target
= control target key end

     0   :  { %s3133_s0 = inlined_call_operand.vmem [shape: bf16[32,128], index: 0, kind: input, shape index: {}]   ;;  %s3134_s1 = inlined_call_operand.vmem [shape: f32[32,128], index: 1, kind: input, shape index: {}]   ;;  %s3135_s2 = inlined_call_operand.vmem [shape: bf16[128,128], index: 2, kind: input, shape index: {}]   ;;  %s3136_s3 = inlined_call_operand.vmem [shape: f32[1,128], index: 3, kind: input, shape index: {}]   ;;  %s3137_s4 = inlined_call_operand.vmem [shape: bf16[128,512], index: 4, kind: input, shape index: {}]   ;;  %s3138_s5 = inlined_call_operand.vmem [shape: bf16[256,128], index: 5, kind: input, shape index: {}]   ;;  %s3139_s6 = inlined_call_operand.vmem [shape: f32[1,128], index: 6, kind: input, shape index: {}]   ;;  %s3140_s7 = inlined_call_operand.vmem [shape: bf16[128,256], index: 7, kind: input, shape index: {}]   ;;  %s3141_s8 = inlined_call_operand.vmem [shape: f32[1,256], index: 8, kind: input, shape index: {}]   ;;  %s3142_s9 = inlined_call_operand.vmem [shape: f32[1,256], index: 9, kind: input, shape index: {}]   ;;  %s3143_s10 = inlined_call_operand.vmem [shape: bf16[256,64], index: 10, kind: input, shape index: {}]   ;;  %s3144_s11 = inlined_call_operand.vmem [shape: f32[1,64], index: 11, kind: input, shape index: {}]   ;;  %s3145_s12 = inlined_call_operand.vmem [shape: f32[1,64], index: 12, kind: input, shape index: {}]   ;;  %s3146_s13 = inlined_call_operand.hbm [shape: f32[32,64], index: 13, kind: output, shape index: {}]  }
   0x1   :  { %v1975_v0 = vld [vmem:[%s3135_s2 + $0x38] sm:$0xff]  ;;  %v1974_v1 = vld [vmem:[%s3135_s2 + $0x30] sm:$0xff] }
   0x2   :  { %129 = vmatpush.bf16.msra.mxu0 %v1975_v0 }
   0x3   :  { %18 = vsyncpa [#allocation3], 0  ;;  %v1973_v2 = vld [vmem:[%s3135_s2 + $0x28] sm:$0xff]  ;;  %v1972_v3 = vld [vmem:[%s3135_s2 + $0x20] sm:$0xff]  ;;  %v2202_v33 = vmov 128.0   ;;  %s1578_s22 = sshll.u32 %s3146_s13, 4  ;;  %s1579_s22 = int_to_ptr.hbm [resolvable:$true] %s1578_s22 }
   0x4   :  { %v1971_v4 = vld [vmem:[%s3135_s2 + $0x18] sm:$0xff]  ;;  %v1970_v5 = vld [vmem:[%s3135_s2 + $0x10] sm:$0xff]  ;;  %v1969_v6 = vld [vmem:[%s3135_s2 + $0x8] sm:$0xff]  ;;  %2074 = vrcp.f32 %v2202_v33  ;;  %s2207_s23 = smov 8  }
   0x5   :  { %v1968_v7 = vld [vmem:[%s3135_s2] sm:$0xff]  ;;  %v1967_v9 = vld [vmem:[%s3133_s0 + $0x8] sm:$0xff]  ;;  %v67_v18 = vld [vmem:[%s3134_s1 + $0x10] sm:$0xff] }
   0x6   :  { %130 = vmatpush.bf16.msra.mxu0 %v1974_v1  ;;  %v1966_v8 = vld [vmem:[%s3133_s0] sm:$0xff]  ;;  %v66_v14 = vld [vmem:[%s3134_s1 + $0x8] sm:$0xff]  ;;  %v68_v22 = vld [vmem:[%s3134_s1 + $0x18] sm:$0xff] }
   0x7   :  { %v65_v10 = vld [vmem:[%s3134_s1] sm:$0xff]  ;;  %v2006_v27 = vld [vmem:[%s3137_s4 + $0xec] sm:$0xf0]  ;;  %v1746_v30 = vld [vmem:[%s3137_s4 + $0xf0] sm:$0xf0]  ;;  %s2206_s1 = smov 128  }
   0x8   :  { %v1744_v26 = vld [vmem:[%s3137_s4 + $0xe0] sm:$0xf]  ;;  %v2004_v28 = vld [vmem:[%s3137_s4 + $0xe4] sm:$0xf]  ;;  %v1752_v31 = vld [vmem:[%s3137_s4 + $0xe8] sm:$0xf] }
   0x9   :  { %v1745_v29 = vor.u32 %v2006_v27, %v1744_v26  ;;  %v2007_v32 = vld [vmem:[%s3137_s4 + $0xf4] sm:$0xf0]  ;;  %v1749_v34 = vor.u32 %v2004_v28, %v1746_v30  ;;  %v2005_v36 = vld [vmem:[%s3137_s4 + $0xec] sm:$0xf]  ;;  %v1754_v37 = vld [vmem:[%s3137_s4 + $0xf8] sm:$0xf0] }
   0xa   :  { %131 = vmatpush.bf16.msra.mxu0 %v1973_v2  ;;  %v1753_v35 = vor.u32 %v2007_v32, %v1752_v31  ;;  %v1757_v38 = vor.u32 %v2005_v36, %v1754_v37  ;;  %v1728_v39 = vld [vmem:[%s3137_s4 + $0xc0] sm:$0xf]  ;;  %v2002_v40 = vld [vmem:[%s3137_s4 + $0xcc] sm:$0xf0]  ;;  %v2000_v41 = vld [vmem:[%s3137_s4 + $0xc4] sm:$0xf]  ;;  %v2384_v51 = vpop.eup %2074 }
   0xb   :  { %421 = vmatpush.bf16.msra.mxu1 %v1745_v29  ;;  %440 = vmatpush.bf16.msra.mxu2 %v1749_v34  ;;  %v1729_v42 = vor.u32 %v2002_v40, %v1728_v39  ;;  %v1730_v43 = vld [vmem:[%s3137_s4 + $0xd0] sm:$0xf0]  ;;  %v1736_v44 = vld [vmem:[%s3137_s4 + $0xc8] sm:$0xf]  ;;  %v2003_v45 = vld [vmem:[%s3137_s4 + $0xd4] sm:$0xf0]  ;;  %vm165_vm0 = vweird.f32 %v2384_v51 }
   0xc   :  { %459 = vmatpush.bf16.msra.mxu3 %v1753_v35  ;;  %v1733_v46 = vor.u32 %v2000_v41, %v1730_v43  ;;  %v1737_v47 = vor.u32 %v2003_v45, %v1736_v44  ;;  %v2001_v48 = vld [vmem:[%s3137_s4 + $0xcc] sm:$0xf]  ;;  %v1738_v49 = vld [vmem:[%s3137_s4 + $0xd8] sm:$0xf0]  ;;  %v1712_v52 = vld [vmem:[%s3137_s4 + $0xa0] sm:$0xf] }
   0xd   :  { %v1741_v50 = vor.u32 %v2001_v48, %v1738_v49  ;;  %v1998_v53 = vld [vmem:[%s3137_s4 + $0xac] sm:$0xf0]  ;;  %v1996_v54 = vld [vmem:[%s3137_s4 + $0xa4] sm:$0xf]  ;;  %v1714_v56 = vld [vmem:[%s3137_s4 + $0xb0] sm:$0xf0] }
   0xe   :  { %132 = vmatpush.bf16.msra.mxu0 %v1972_v3  ;;  %v1713_v55 = vor.u32 %v1998_v53, %v1712_v52  ;;  %v1720_v57 = vld [vmem:[%s3137_s4 + $0xa8] sm:$0xf]  ;;  %v1999_v58 = vld [vmem:[%s3137_s4 + $0xb4] sm:$0xf0]  ;;  %v1717_v59 = vor.u32 %v1996_v54, %v1714_v56  ;;  %v1997_v61 = vld [vmem:[%s3137_s4 + $0xac] sm:$0xf] }
   0xf   :  { %422 = vmatpush.bf16.msra.mxu1 %v1729_v42  ;;  %441 = vmatpush.bf16.msra.mxu2 %v1733_v46  ;;  %v1721_v60 = vor.u32 %v1999_v58, %v1720_v57  ;;  %v1722_v62 = vld [vmem:[%s3137_s4 + $0xb8] sm:$0xf0]  ;;  %v161_v63 = vmul.f32 128.0, %v2384_v51  ;;  %v1696_v1 = vld [vmem:[%s3137_s4 + $0x80] sm:$0xf] }
  0x10   :  { %460 = vmatpush.bf16.msra.mxu3 %v1737_v47  ;;  %v1725_v0 = vor.u32 %v1997_v61, %v1722_v62  ;;  %v1994_v2 = vld [vmem:[%s3137_s4 + $0x8c] sm:$0xf0]  ;;  %v1992_v3 = vld [vmem:[%s3137_s4 + $0x84] sm:$0xf]  ;;  %v1989_v27 = vld [vmem:[%s3137_s4 + $0x6c] sm:$0xf] }
  0x11   :  { %v1690_v28 = vld [vmem:[%s3137_s4 + $0x78] sm:$0xf0]  ;;  %v1664_v31 = vld [vmem:[%s3137_s4 + $0x40] sm:$0xf]  ;;  %v1986_v32 = vld [vmem:[%s3137_s4 + $0x4c] sm:$0xf0] }
  0x12   :  { %133 = vmatpush.bf16.msra.mxu0 %v1971_v4  ;;  %v1697_v4 = vor.u32 %v1994_v2, %v1696_v1  ;;  %v1693_v30 = vor.u32 %v1989_v27, %v1690_v28  ;;  %v1984_v33 = vld [vmem:[%s3137_s4 + $0x44] sm:$0xf]  ;;  %v1665_v34 = vor.u32 %v1986_v32, %v1664_v31  ;;  %v1666_v35 = vld [vmem:[%s3137_s4 + $0x50] sm:$0xf0]  ;;  %v1672_v36 = vld [vmem:[%s3137_s4 + $0x48] sm:$0xf] }
  0x13   :  { %423 = vmatpush.bf16.msra.mxu1 %v1713_v55  ;;  %442 = vmatpush.bf16.msra.mxu2 %v1717_v59  ;;  %v1987_v37 = vld [vmem:[%s3137_s4 + $0x54] sm:$0xf0]  ;;  %v1985_v40 = vld [vmem:[%s3137_s4 + $0x4c] sm:$0xf]  ;;  %v1674_v41 = vld [vmem:[%s3137_s4 + $0x58] sm:$0xf0] }
  0x14   :  { %461 = vmatpush.bf16.msra.mxu3 %v1721_v60  ;;  %v1673_v39 = vor.u32 %v1987_v37, %v1672_v36  ;;  %v1677_v43 = vor.u32 %v1985_v40, %v1674_v41  ;;  %v1648_v44 = vld [vmem:[%s3137_s4 + $0x20] sm:$0xf]  ;;  %v1982_v45 = vld [vmem:[%s3137_s4 + $0x2c] sm:$0xf0]  ;;  %v1980_v46 = vld [vmem:[%s3137_s4 + $0x24] sm:$0xf] }
  0x15   :  { %v1649_v47 = vor.u32 %v1982_v45, %v1648_v44  ;;  %v1650_v48 = vld [vmem:[%s3137_s4 + $0x30] sm:$0xf0]  ;;  %v1656_v49 = vld [vmem:[%s3137_s4 + $0x28] sm:$0xf]  ;;  %v1981_v54 = vld [vmem:[%s3137_s4 + $0x2c] sm:$0xf] }
  0x16   :  { %134 = vmatpush.bf16.msra.mxu0 %v1970_v5  ;;  %v1698_v5 = vld [vmem:[%s3137_s4 + $0x90] sm:$0xf0]  ;;  %v1653_v52 = vor.u32 %v1980_v46, %v1650_v48  ;;  %v1658_v55 = vld [vmem:[%s3137_s4 + $0x38] sm:$0xf0]  ;;  %v1632_v58 = vld [vmem:[%s3137_s4] sm:$0xf] }
  0x17   :  { %424 = vmatpush.bf16.msra.mxu1 %v1697_v4  ;;  %v1661_v57 = vor.u32 %v1981_v54, %v1658_v55  ;;  %v1978_v59 = vld [vmem:[%s3137_s4 + $0xc] sm:$0xf0]  ;;  %v1976_v60 = vld [vmem:[%s3137_s4 + $0x4] sm:$0xf]  ;;  %v1634_v62 = vld [vmem:[%s3137_s4 + $0x10] sm:$0xf0] }
  0x18   :  { %v1637_v2 = vor.u32 %v1976_v60, %v1634_v62  ;;  %v1977_v4 = vld [vmem:[%s3137_s4 + $0xc] sm:$0xf]  ;;  %v2070_v37 = vld [vmem:[%s3136_s3] ss:$0 sm:$0xff]  ;;  %v2014_v62 = vld [vmem:[%s3138_s5 + $0x30] sm:$0xff] }
  0x1a   :  { %135 = vmatpush.bf16.msra.mxu0 %v1969_v6  ;;  %v1704_v6 = vld [vmem:[%s3137_s4 + $0x88] sm:$0xf] }
  0x1e   :  { %136 = vmatpush.bf16.msra.mxu0 %v1968_v7  ;;  %v1995_v7 = vld [vmem:[%s3137_s4 + $0x94] sm:$0xf0] }
  0x21   :  { %137 = vmatmul.bf16.vlgmr.msra.gmra.mxu0 %v1966_v8  ;;  %v1701_v8 = vor.u32 %v1992_v3, %v1698_v5  ;;  %v1642_v5 = vld [vmem:[%s3137_s4 + $0x18] sm:$0xf0] }
  0x22   :  { %478 = vmatpush.bf16.msrb.mxu0 %v1757_v38  ;;  %v1669_v38 = vor.u32 %v1984_v33, %v1666_v35 }
  0x23   :  { %443 = vmatpush.bf16.msra.mxu2 %v1701_v8 }
  0x26   :  { %479 = vmatpush.bf16.msrb.mxu0 %v1741_v50  ;;  %v1983_v50 = vld [vmem:[%s3137_s4 + $0x34] sm:$0xf0] }
  0x27   :  { %v1657_v53 = vor.u32 %v1983_v50, %v1656_v49 }
  0x2a   :  { %480 = vmatpush.bf16.msrb.mxu0 %v1725_v0  ;;  %v1979_v0 = vld [vmem:[%s3137_s4 + $0x14] sm:$0xf0] }
  0x31   :  { %142 = vmatmul.bf16.gmra.mxu0 %v1967_v9  ;;  %v1705_v9 = vor.u32 %v1995_v7, %v1704_v6  ;;  %v1645_v6 = vor.u32 %v1977_v4, %v1642_v5  ;;  %v2011_v5 = vld [vmem:[%s3138_s5 + $0x18] sm:$0xff] }
  0x33   :  { %462 = vmatpush.bf16.msra.mxu3 %v1705_v9 }
  0x9e   :  { %v138_v11 = vpop.f32.mrf.mxu0 }
  0x9f   :  { %v2311_v12 = vadd.f32 %v138_v11, %v65_v10  ;;  %v1993_v10 = vld [vmem:[%s3137_s4 + $0x8c] sm:$0xf]  ;;  %v1706_v11 = vld [vmem:[%s3137_s4 + $0x98] sm:$0xf0] }
  0xa1   :  { %v148_v13 = vmul.f32 %v2311_v12, %v2311_v12 }
  0xa3   :  { %152 = vadd.xlane.f32.xlu0 %v148_v13  ;;  %v162_v13 = vsub.f32 1.0, %v161_v63  ;;  %v1640_v63 = vld [vmem:[%s3137_s4 + $0x8] sm:$0xf] }
  0xa4   :  { %v1641_v3 = vor.u32 %v1979_v0, %v1640_v63  ;;  %v2023_v63 = vld [vmem:[%s3138_s5 + $0x78] sm:$0xff]  ;;  %v2013_v0 = vld [vmem:[%s3138_s5 + $0x28] sm:$0xff] }
  0xa5   :  { %v163_v29 = vmul.f32 %v2384_v51, %v162_v13 }
  0xa6   :  { %v140_v15 = vpop.f32.mrf.mxu0 }
  0xa7   :  { %v2318_v16 = vadd.f32 %v140_v15, %v66_v14  ;;  %v1709_v14 = vor.u32 %v1993_v10, %v1706_v11  ;;  %v1680_v15 = vld [vmem:[%s3137_s4 + $0x60] sm:$0xf]  ;;  %v164_v42 = vadd.f32 %v2384_v51, %v163_v29 }
  0xa9   :  { %v149_v17 = vmul.f32 %v2318_v16, %v2318_v16  ;;  %481 = vmatpush.bf16.msrb.mxu0 %v1709_v14  ;;  %v2511_v56 = vsel %vm165_vm0, %v2384_v51, %v164_v42  ;;  %v1633_v51 = vor.u32 %v1978_v59, %v1632_v58 }
  0xab   :  { %154 = vadd.xlane.f32.xlu0 %v149_v17  ;;  %v1990_v17 = vld [vmem:[%s3137_s4 + $0x6c] sm:$0xf0] }
  0xad   :  { %482 = vmatpush.bf16.msrb.mxu0 %v1693_v30 }
  0xae   :  { %v143_v19 = vpop.f32.mrf.mxu0 }
  0xaf   :  { %v2325_v20 = vadd.f32 %v143_v19, %v67_v18  ;;  %v1988_v18 = vld [vmem:[%s3137_s4 + $0x64] sm:$0xf]  ;;  %v1681_v19 = vor.u32 %v1990_v17, %v1680_v15 }
  0xb1   :  { %v150_v21 = vmul.f32 %v2325_v20, %v2325_v20  ;;  %425 = vmatpush.bf16.msra.mxu1 %v1681_v19  ;;  %483 = vmatpush.bf16.msrb.mxu0 %v1677_v43 }
  0xb3   :  { %156 = vadd.xlane.f32.xlu1 %v150_v21  ;;  %v1682_v21 = vld [vmem:[%s3137_s4 + $0x70] sm:$0xf0] }
  0xb5   :  { %426 = vmatpush.bf16.msra.mxu1 %v1665_v34  ;;  %484 = vmatpush.bf16.msrb.mxu0 %v1661_v57 }
  0xb6   :  { %v145_v23 = vpop.f32.mrf.mxu0 }
  0xb7   :  { %v2332_v24 = vadd.f32 %v145_v23, %v68_v22  ;;  %v1688_v22 = vld [vmem:[%s3137_s4 + $0x68] sm:$0xf]  ;;  %v1991_v23 = vld [vmem:[%s3137_s4 + $0x74] sm:$0xf0] }
  0xb8   :  { %v1689_v26 = vor.u32 %v1991_v23, %v1688_v22 }
  0xb9   :  { %v151_v25 = vmul.f32 %v2332_v24, %v2332_v24  ;;  %427 = vmatpush.bf16.msra.mxu1 %v1649_v47  ;;  %485 = vmatpush.bf16.msrb.mxu0 %v1645_v6 }
  0xba   :  { %463 = vmatpush.bf16.msra.mxu3 %v1689_v26 }
  0xbb   :  { %158 = vadd.xlane.f32.xlu1 %v151_v25  ;;  %v1685_v25 = vor.u32 %v1988_v18, %v1682_v21 }
  0xbd   :  { %444 = vmatpush.bf16.msra.mxu2 %v1685_v25  ;;  %428 = vmatpush.bf16.msra.mxu1 %v1633_v51  ;;  %v2015_v51 = vld [vmem:[%s3138_s5 + $0x38] sm:$0xff] }
  0xbe   :  { %464 = vmatpush.bf16.msra.mxu3 %v1673_v39 }
  0xc1   :  { %445 = vmatpush.bf16.msra.mxu2 %v1669_v38  ;;  %797 = vmatpush.bf16.msrb.mxu1 %v2015_v51 }
  0xc2   :  { %465 = vmatpush.bf16.msra.mxu3 %v1657_v53 }
  0xc5   :  { %446 = vmatpush.bf16.msra.mxu2 %v1653_v52  ;;  %798 = vmatpush.bf16.msrb.mxu1 %v2014_v62 }
  0xc6   :  { %466 = vmatpush.bf16.msra.mxu3 %v1641_v3  ;;  %v2021_v3 = vld [vmem:[%s3138_s5 + $0x68] sm:$0xff] }
  0xc9   :  { %447 = vmatpush.bf16.msra.mxu2 %v1637_v2  ;;  %799 = vmatpush.bf16.msrb.mxu1 %v2013_v0  ;;  %v2012_v2 = vld [vmem:[%s3138_s5 + $0x20] sm:$0xff] }
  0xcd   :  { %816 = vmatpush.bf16.msrb.mxu2 %v2023_v63  ;;  %800 = vmatpush.bf16.msrb.mxu1 %v2012_v2 }
  0xd1   :  { %801 = vmatpush.bf16.msrb.mxu1 %v2011_v5 }
 0x116   :  { %v153_v61 = vpop.xlane.xlu0 %152 }
 0x117   :  { %v167_v1 = vmul.f32 %v2511_v56, %v153_v61 }
 0x119   :  { %v171_v7 = vadd.f32 1e-06, %v167_v1  ;;  %v2022_v1 = vld [vmem:[%s3138_s5 + $0x70] sm:$0xff] }
 0x11a   :  { %817 = vmatpush.bf16.msrb.mxu2 %v2022_v1 }
 0x11b   :  { %2076 = vrsqrt.f32 %v171_v7  ;;  %vm181_vm2 = vweird.f32 %v171_v7 }
 0x11e   :  { %v155_v8 = vpop.xlane.xlu0 %154  ;;  %818 = vmatpush.bf16.msrb.mxu2 %v2021_v3 }
 0x11f   :  { %v168_v9 = vmul.f32 %v2511_v56, %v155_v8  ;;  %v2010_v8 = vld [vmem:[%s3138_s5 + $0x10] sm:$0xff] }
 0x120   :  { %802 = vmatpush.bf16.msrb.mxu1 %v2010_v8 }
 0x121   :  { %v2077_v10 = vpop.eup %2076  ;;  %v172_v11 = vadd.f32 1e-06, %v168_v9 }
 0x122   :  { %v176_v13 = vmul.f32 %v2077_v10, %v171_v7  ;;  %vm182_vm1 = vweird.f32 %v2077_v10  ;;  %v2020_v7 = vld [vmem:[%s3138_s5 + $0x60] sm:$0xff] }
 0x123   :  { %2078 = vrsqrt.f32 %v172_v11  ;;  %vm183_vm3 = vmor %vm181_vm2, %vm182_vm1  ;;  %vm191_vm5 = vweird.f32 %v172_v11  ;;  %819 = vmatpush.bf16.msrb.mxu2 %v2020_v7 }
 0x124   :  { %v177_v14 = vmul.f32 %v2077_v10, %v176_v13 }
 0x126   :  { %v178_v15 = vmul.f32 0.5, %v177_v14  ;;  %v157_v17 = vpop.xlane.xlu1 %156  ;;  %v2009_v14 = vld [vmem:[%s3138_s5 + $0x8] sm:$0xff] }
 0x127   :  { %v169_v18 = vmul.f32 %v2511_v56, %v157_v17  ;;  %803 = vmatpush.bf16.msrb.mxu1 %v2009_v14 }
 0x128   :  { %v179_v19 = vsub.f32 1.5, %v178_v15 }
 0x129   :  { %v2079_v21 = vpop.eup %2078  ;;  %v173_v22 = vadd.f32 1e-06, %v169_v18 }
 0x12a   :  { %v186_v23 = vmul.f32 %v2079_v21, %v172_v11  ;;  %v180_v25 = vmul.f32 %v2077_v10, %v179_v19  ;;  %vm192_vm4 = vweird.f32 %v2079_v21  ;;  %v2018_v19 = vld [vmem:[%s3138_s5 + $0x50] sm:$0xff] }
 0x12b   :  { %2080 = vrsqrt.f32 %v173_v22  ;;  %vm193_vm6 = vmor %vm191_vm5, %vm192_vm4  ;;  %vm201_vm8 = vweird.f32 %v173_v22 }
 0x12c   :  { %v187_v26 = vmul.f32 %v2079_v21, %v186_v23  ;;  %v184_v30 = vsel %vm183_vm3, %v2077_v10, %v180_v25  ;;  %v2019_v10 = vld [vmem:[%s3138_s5 + $0x58] sm:$0xff]  ;;  %v2017_v23 = vld [vmem:[%s3138_s5 + $0x48] sm:$0xff] }
 0x12d   :  { %v215_v36 = vmul.f32 %v184_v30, %v2311_v12  ;;  %820 = vmatpush.bf16.msrb.mxu2 %v2019_v10 }
 0x12e   :  { %v188_v27 = vmul.f32 0.5, %v187_v26  ;;  %v159_v28 = vpop.xlane.xlu1 %158 }
 0x12f   :  { %v170_v29 = vmul.f32 %v2511_v56, %v159_v28  ;;  %v223_v42 = vmul.f32 %v2070_v37, %v215_v36 }
 0x130   :  { %v189_v31 = vsub.f32 1.5, %v188_v27 }
 0x131   :  { %v2081_v32 = vpop.eup %2080  ;;  %v174_v33 = vadd.f32 1e-06, %v170_v29  ;;  %821 = vmatpush.bf16.msrb.mxu2 %v2018_v19 }
 0x132   :  { %v190_v34 = vmul.f32 %v2079_v21, %v189_v31  ;;  %v196_v35 = vmul.f32 %v2081_v32, %v173_v22  ;;  %vm202_vm7 = vweird.f32 %v2081_v32 }
 0x133   :  { %2082 = vrsqrt.f32 %v174_v33  ;;  %vm203_vm9 = vmor %vm201_vm8, %vm202_vm7  ;;  %vm211_vm11 = vweird.f32 %v174_v33 }
 0x134   :  { %v194_v38 = vsel %vm193_vm6, %v2079_v21, %v190_v34  ;;  %v197_v39 = vmul.f32 %v2081_v32, %v196_v35  ;;  %v2008_v21 = vld [vmem:[%s3138_s5] sm:$0xff] }
 0x135   :  { %v216_v40 = vmul.f32 %v194_v38, %v2318_v16  ;;  %804 = vmatpush.bf16.msrb.mxu1 %v2008_v21  ;;  %822 = vmatpush.bf16.msrb.mxu2 %v2017_v23 }
 0x136   :  { %v198_v41 = vmul.f32 0.5, %v197_v39 }
 0x137   :  { %v224_v43 = vmul.f32 %v2070_v37, %v216_v40 }
 0x138   :  { %v199_v44 = vsub.f32 1.5, %v198_v41 }
 0x139   :  { %v2083_v45 = vpop.eup %2082  ;;  %v227_v46 = vpack.c.bf16 %v224_v43, %v223_v42 }
 0x13a   :  { %v206_v47 = vmul.f32 %v2083_v45, %v174_v33  ;;  %v200_v48 = vmul.f32 %v2081_v32, %v199_v44  ;;  %vm212_vm10 = vweird.f32 %v2083_v45 }
 0x13b   :  { %429 = vmatmul.bf16.vlgmr.msra.gmra.mxu1 %v227_v46  ;;  %448 = vmatmul.bf16.vlgmr.msra.gmra.mxu2 %v227_v46  ;;  %vm213_vm12 = vmor %vm211_vm11, %vm212_vm10 }
 0x13c   :  { %v207_v49 = vmul.f32 %v2083_v45, %v206_v47  ;;  %467 = vmatmul.bf16.vlgmr.msra.gmra.mxu3 %v227_v46  ;;  %486 = vmatmul.bf16.vlgmr.msrb.gmra.mxu0 %v227_v46  ;;  %v204_v52 = vsel %vm203_vm9, %v2081_v32, %v200_v48  ;;  %v2016_v32 = vld [vmem:[%s3138_s5 + $0x40] sm:$0xff] }
 0x13d   :  { %v217_v55 = vmul.f32 %v204_v52, %v2325_v20  ;;  %823 = vmatpush.bf16.msrb.mxu2 %v2016_v32 }
 0x13e   :  { %v208_v50 = vmul.f32 0.5, %v207_v49 }
 0x13f   :  { %v225_v59 = vmul.f32 %v2070_v37, %v217_v55 }
 0x140   :  { %v209_v53 = vsub.f32 1.5, %v208_v50 }
 0x142   :  { %v210_v54 = vmul.f32 %v2083_v45, %v209_v53 }
 0x144   :  { %v214_v57 = vsel %vm213_vm12, %v2083_v45, %v210_v54 }
 0x145   :  { %v218_v58 = vmul.f32 %v214_v57, %v2332_v24 }
 0x147   :  { %v226_v60 = vmul.f32 %v2070_v37, %v218_v58 }
 0x149   :  { %v228_v61 = vpack.c.bf16 %v226_v60, %v225_v59 }
 0x14b   :  { %434 = vmatmul.bf16.gmra.mxu1 %v228_v61  ;;  %453 = vmatmul.bf16.gmra.mxu2 %v228_v61 }
 0x14c   :  { %472 = vmatmul.bf16.gmra.mxu3 %v228_v61  ;;  %491 = vmatmul.bf16.gmra.mxu0 %v228_v61 }
 0x1b8   :  { %v2569_v4 = vpop.f32.mrf.mxu1 }
 0x1b9   :  { %v1758_v6 = vmul.f32 -1.442695, %v2569_v4 }
 0x1bb   :  { %2084 = vpow2.f32 %v1758_v6 }
 0x1be   :  { %v2581_v9 = vpop.f32.mrf.mxu2 }
 0x1bf   :  { %v1759_v11 = vmul.f32 -1.442695, %v2581_v9  ;;  %v468_v55 = vpop.f32.mrf.mxu3 }
 0x1c0   :  { %v2587_v13 = vpop.f32.mrf.mxu1 }
 0x1c1   :  { %v2085_v15 = vpop.eup %2084  ;;  %2086 = vpow2.f32 %v1759_v11  ;;  %v1760_v17 = vmul.f32 -1.442695, %v2587_v13  ;;  %v487_v11 = vpop.f32.mrf.mxu0 }
 0x1c2   :  { %v521_v18 = vadd.f32 1.0, %v2085_v15 }
 0x1c3   :  { %2088 = vpow2.f32 %v1760_v17 }
 0x1c4   :  { %2090 = vrcp.f32 %v521_v18  ;;  %v538_v41 = vand.u32 2147483647, %v521_v18  ;;  %v540_v42 = vand.u32 2147483648, %v521_v18  ;;  %vm534_vm14 = vweird.f32 %v521_v18 }
 0x1c6   :  { %v2599_v22 = vpop.f32.mrf.mxu2  ;;  %vm2629_vm15 = vcmp.eq.f32.partialorder %v538_v41, 8.507059e+37  ;;  %v541_v54 = vor.u32 1.1754944e-38, %v540_v42 }
 0x1c7   :  { %v2087_v25 = vpop.eup %2086  ;;  %v1761_v26 = vmul.f32 -1.442695, %v2599_v22 }
 0x1c8   :  { %v2605_v27 = vadd.f32 1.0, %v2087_v25  ;;  %v2607_v28 = vpop.f32.mrf.mxu1 }
 0x1c9   :  { %v2089_v29 = vpop.eup %2088  ;;  %2092 = vpow2.f32 %v1761_v26  ;;  %v1762_v30 = vmul.f32 -1.442695, %v2607_v28 }
 0x1ca   :  { %v2091_v31 = vpop.eup %2090  ;;  %2094 = vrcp.f32 %v2605_v27  ;;  %v523_v34 = vadd.f32 1.0, %v2089_v29  ;;  %vm549_vm1 = vweird.f32 %v2605_v27  ;;  %v555_v60 = vand.u32 2147483648, %v2605_v27 }
 0x1cb   :  { %v530_v33 = vmul.f32 %v2091_v31, %v521_v18  ;;  %2096 = vpow2.f32 %v1762_v30  ;;  %vm535_vm13 = vweird.f32 %v2091_v31  ;;  %v553_v6 = vand.u32 2147483647, %v2605_v27 }
 0x1cc   :  { %2098 = vrcp.f32 %v523_v34  ;;  %vm2633_vm0 = vmor %vm534_vm14, %vm535_vm13  ;;  %v568_v62 = vand.u32 2147483647, %v523_v34  ;;  %v570_v63 = vand.u32 2147483648, %v523_v34  ;;  %v556_v14 = vor.u32 1.1754944e-38, %v555_v60 }
 0x1cd   :  { %v531_v35 = vsub.f32 1.0, %v530_v33  ;;  %vm564_vm5 = vweird.f32 %v523_v34  ;;  %vm554_vm8 = vcmp.eq.f32.partialorder %v553_v6, 8.507059e+37 }
 0x1ce   :  { %v2614_v36 = vpop.f32.mrf.mxu2  ;;  %vm569_vm6 = vcmp.eq.f32.partialorder %v568_v62, 8.507059e+37  ;;  %v571_v23 = vor.u32 1.1754944e-38, %v570_v63 }
 0x1cf   :  { %v2093_v37 = vpop.eup %2092  ;;  %v532_v38 = vmul.f32 %v2091_v31, %v531_v35  ;;  %v1763_v39 = vmul.f32 -1.442695, %v2614_v36 }
 0x1d0   :  { %v2617_v40 = vpop.eup %2094  ;;  %v2619_v43 = vadd.f32 1.0, %v2093_v37  ;;  %v2621_v44 = vpop.f32.mrf.mxu1 }
 0x1d1   :  { %v2097_v45 = vpop.eup %2096  ;;  %v545_v46 = vmul.f32 %v2617_v40, %v2605_v27  ;;  %2100 = vpow2.f32 %v1763_v39  ;;  %v533_v47 = vadd.f32 %v2091_v31, %v532_v38  ;;  %v1764_v52 = vmul.f32 -1.442695, %v2621_v44  ;;  %v470_v38 = vpop.f32.mrf.mxu3 }
 0x1d2   :  { %2102 = vrcp.f32 %v2619_v43  ;;  %v2099_v48 = vpop.eup %2098  ;;  %v2626_v50 = vadd.f32 1.0, %v2097_v45  ;;  %vm550_vm2 = vweird.f32 %v2617_v40  ;;  %v583_v26 = vand.u32 2147483647, %v2619_v43 }
 0x1d3   :  { %v546_v49 = vsub.f32 1.0, %v545_v46  ;;  %v560_v57 = vmul.f32 %v2099_v48, %v523_v34  ;;  %v537_v61 = vsel %vm2633_vm0, %v2091_v31, %v533_v47  ;;  %vm565_vm3 = vweird.f32 %v2099_v48  ;;  %vm2656_vm4 = vmor %vm549_vm1, %vm550_vm2 }
 0x1d4   :  { %2104 = vrcp.f32 %v2626_v50  ;;  %v542_v10 = vsel %vm2629_vm15, %v541_v54, %v537_v61  ;;  %vm566_vm7 = vmor %vm564_vm5, %vm565_vm3  ;;  %v585_v30 = vand.u32 2147483648, %v2619_v43  ;;  %vm579_vm10 = vweird.f32 %v2619_v43 }
 0x1d5   :  { %v547_v59 = vmul.f32 %v2617_v40, %v546_v49  ;;  %v561_v51 = vsub.f32 1.0, %v560_v57  ;;  %2106 = vpow2.f32 %v1764_v52  ;;  %v649_v27 = vmul.f32 %v542_v10, %v2569_v4 }
 0x1d6   :  { %v2643_v0 = vpop.f32.mrf.mxu2  ;;  %vm584_vm11 = vcmp.eq.f32.partialorder %v583_v26, 8.507059e+37  ;;  %v586_v46 = vor.u32 1.1754944e-38, %v585_v30  ;;  %vm594_vm14 = vweird.f32 %v2626_v50 }
 0x1d7   :  { %v2101_v1 = vpop.eup %2100  ;;  %v548_v2 = vadd.f32 %v2617_v40, %v547_v59  ;;  %v1765_v3 = vmul.f32 -1.442695, %v2643_v0  ;;  %v562_v7 = vmul.f32 %v2099_v48, %v561_v51  ;;  %v657_v45 = vmul.f32 %v649_v27, %v468_v55 }
 0x1d8   :  { %v2103_v5 = vpop.eup %2102  ;;  %v2649_v8 = vadd.f32 1.0, %v2101_v1  ;;  %v600_v59 = vand.u32 2147483648, %v2626_v50 }
 0x1d9   :  { %v575_v15 = vmul.f32 %v2103_v5, %v2619_v43  ;;  %2108 = vpow2.f32 %v1765_v3  ;;  %v563_v18 = vadd.f32 %v2099_v48, %v562_v7  ;;  %v552_v21 = vsel %vm2656_vm4, %v2617_v40, %v548_v2  ;;  %v489_v43 = vpop.f32.mrf.mxu0  ;;  %v473_v3 = vpop.f32.mrf.mxu3 }
 0x1da   :  { %2110 = vrcp.f32 %v2649_v8  ;;  %v2661_v19 = vpop.eup %2104  ;;  %vm580_vm9 = vweird.f32 %v2103_v5  ;;  %v557_v35 = vsel %vm554_vm8, %v556_v14, %v552_v21  ;;  %v601_v6 = vor.u32 1.1754944e-38, %v600_v59 }
 0x1db   :  { %v576_v25 = vsub.f32 1.0, %v575_v15  ;;  %v567_v29 = vsel %vm566_vm7, %v2099_v48, %v563_v18  ;;  %v590_v31 = vmul.f32 %v2661_v19, %v2626_v50  ;;  %v2107_v32 = vpop.eup %2106  ;;  %vm581_vm12 = vmor %vm579_vm10, %vm580_vm9  ;;  %v650_v48 = vmul.f32 %v557_v35, %v2581_v9 }
 0x1dc   :  { %v572_v33 = vsel %vm569_vm6, %v571_v23, %v567_v29  ;;  %v2672_v40 = vadd.f32 1.0, %v2107_v32  ;;  %vm595_vm13 = vweird.f32 %v2661_v19  ;;  %v613_v7 = vand.u32 2147483647, %v2649_v8 }
 0x1dd   :  { %v577_v34 = vmul.f32 %v2103_v5, %v576_v25  ;;  %v651_v37 = vmul.f32 %v572_v33, %v2587_v13  ;;  %v591_v39 = vsub.f32 1.0, %v590_v31  ;;  %v658_v9 = vmul.f32 %v650_v48, %v487_v11  ;;  %vm2693_vm15 = vmor %vm594_vm14, %vm595_vm13  ;;  %v2034_v25 = vld [vmem:[%s3140_s7 + $0x54] sm:$0xf] }
 0x1de   :  { %2112 = vrcp.f32 %v2672_v40  ;;  %v630_v14 = vand.u32 2147483648, %v2672_v40  ;;  %v628_v18 = vand.u32 2147483647, %v2672_v40  ;;  %vm609_vm3 = vweird.f32 %v2649_v8 }
 0x1df   :  { %v2109_v41 = vpop.eup %2108  ;;  %v578_v4 = vadd.f32 %v2103_v5, %v577_v34  ;;  %v659_v47 = vmul.f32 %v651_v37, %v470_v38  ;;  %v592_v49 = vmul.f32 %v2661_v19, %v591_v39  ;;  %vm2712_vm5 = vcmp.eq.f32.partialorder %v613_v7, 8.507059e+37  ;;  %v2038_v7 = vld [vmem:[%s3140_s7 + $0x74] sm:$0xf] }
 0x1e0   :  { %v2675_v42 = vpop.eup %2110  ;;  %v2683_v55 = vadd.f32 1.0, %v2109_v41  ;;  %vm624_vm6 = vweird.f32 %v2672_v40  ;;  %vm629_vm8 = vcmp.eq.f32.partialorder %v628_v18, 8.507059e+37  ;;  %v1882_v18 = vld [vmem:[%s3140_s7 + $0x68] sm:$0xf0] }
 0x1e1   :  { %v582_v13 = vsel %vm581_vm12, %v2103_v5, %v578_v4  ;;  %v605_v52 = vmul.f32 %v2675_v42, %v2649_v8  ;;  %v665_v54 = vpack.c.bf16 %v659_v47, %v657_v45  ;;  %v593_v61 = vadd.f32 %v2661_v19, %v592_v49  ;;  %v492_v23 = vpop.f32.mrf.mxu0  ;;  %v475_v4 = vpop.f32.mrf.mxu3 }
 0x1e2   :  { %v587_v53 = vsel %vm584_vm11, %v586_v46, %v582_v13  ;;  %2114 = vrcp.f32 %v2683_v55  ;;  %vm610_vm0 = vweird.f32 %v2675_v42  ;;  %v645_v34 = vand.u32 2147483648, %v2683_v55 }
 0x1e3   :  { %v652_v57 = vmul.f32 %v587_v53, %v2599_v22  ;;  %v606_v58 = vsub.f32 1.0, %v605_v52  ;;  %805 = vmatmul.bf16.vlgmr.msrb.gmra.mxu1 %v665_v54  ;;  %v598_v22 = vand.u32 2147483647, %v2626_v50  ;;  %v597_v5 = vsel %vm2693_vm15, %v2661_v19, %v593_v61  ;;  %vm2708_vm4 = vmor %vm609_vm3, %vm610_vm0 }
 0x1e4   :  { %v2113_v51 = vpop.eup %2112  ;;  %v615_v50 = vand.u32 2147483648, %v2649_v8  ;;  %v631_v8 = vor.u32 1.1754944e-38, %v630_v14  ;;  %v643_v38 = vand.u32 2147483647, %v2683_v55  ;;  %vm639_vm10 = vweird.f32 %v2683_v55  ;;  %v2037_v14 = vld [vmem:[%s3140_s7 + $0x64] sm:$0xf0] }
 0x1e5   :  { %v660_v60 = vmul.f32 %v652_v57, %v489_v43  ;;  %v607_v62 = vmul.f32 %v2675_v42, %v606_v58  ;;  %v620_v63 = vmul.f32 %v2113_v51, %v2672_v40  ;;  %vm599_vm1 = vcmp.eq.f32.partialorder %v598_v22, 8.507059e+37 }
 0x1e6   :  { %vm625_vm2 = vweird.f32 %v2113_v51  ;;  %v602_v19 = vsel %vm599_vm1, %v601_v6, %v597_v5  ;;  %v616_v30 = vor.u32 1.1754944e-38, %v615_v50  ;;  %vm644_vm12 = vcmp.eq.f32.partialorder %v643_v38, 8.507059e+37  ;;  %v1888_v6 = vld [vmem:[%s3140_s7 + $0x70] sm:$0xf]  ;;  %v1880_v50 = vld [vmem:[%s3140_s7 + $0x60] sm:$0xf] }
 0x1e7   :  { %v666_v1 = vpack.c.bf16 %v660_v60, %v658_v9  ;;  %v621_v10 = vsub.f32 1.0, %v620_v63  ;;  %v608_v11 = vadd.f32 %v2675_v42, %v607_v62  ;;  %vm626_vm7 = vmor %vm624_vm6, %vm625_vm2  ;;  %v653_v32 = vmul.f32 %v602_v19, %v2607_v28  ;;  %v2030_v38 = vld [vmem:[%s3140_s7 + $0x34] sm:$0xf] }
 0x1e8   :  { %v2115_v15 = vpop.eup %2114  ;;  %v646_v28 = vor.u32 1.1754944e-38, %v645_v34 }
 0x1e9   :  { %824 = vmatmul.bf16.vlgmr.msrb.gmra.mxu2 %v666_v1  ;;  %v622_v17 = vmul.f32 %v2113_v51, %v621_v10  ;;  %v635_v21 = vmul.f32 %v2115_v15, %v2683_v55  ;;  %v612_v29 = vsel %vm2708_vm4, %v2675_v42, %v608_v11  ;;  %vm640_vm9 = vweird.f32 %v2115_v15  ;;  %v494_v52 = vpop.f32.mrf.mxu0 }
 0x1ea   :  { %v617_v39 = vsel %vm2712_vm5, %v616_v30, %v612_v29  ;;  %v661_v42 = vmul.f32 %v653_v32, %v473_v3  ;;  %vm641_vm11 = vmor %vm639_vm10, %vm640_vm9  ;;  %v1864_v30 = vld [vmem:[%s3140_s7 + $0x40] sm:$0xf] }
 0x1eb   :  { %v623_v27 = vadd.f32 %v2113_v51, %v622_v17  ;;  %v636_v31 = vsub.f32 1.0, %v635_v21  ;;  %v654_v46 = vmul.f32 %v617_v39, %v2614_v36  ;;  %v1881_v17 = vor.u32 %v2037_v14, %v1880_v50  ;;  %v1872_v21 = vld [vmem:[%s3140_s7 + $0x50] sm:$0xf] }
 0x1ed   :  { %v627_v33 = vsel %vm626_vm7, %v2113_v51, %v623_v27  ;;  %v637_v37 = vmul.f32 %v2115_v15, %v636_v31  ;;  %v662_v53 = vmul.f32 %v654_v46, %v492_v23  ;;  %v2035_v23 = vld [vmem:[%s3140_s7 + $0x54] sm:$0xf0]  ;;  %v1874_v27 = vld [vmem:[%s3140_s7 + $0x58] sm:$0xf0]  ;;  %v2032_v31 = vld [vmem:[%s3140_s7 + $0x44] sm:$0xf] }
 0x1ee   :  { %v632_v35 = vsel %vm629_vm8, %v631_v8, %v627_v33  ;;  %v1873_v26 = vor.u32 %v2035_v23, %v1872_v21  ;;  %v1877_v29 = vor.u32 %v2034_v25, %v1874_v27  ;;  %v2033_v8 = vld [vmem:[%s3140_s7 + $0x44] sm:$0xf0]  ;;  %v1866_v33 = vld [vmem:[%s3140_s7 + $0x48] sm:$0xf0]  ;;  %v2071_v25 = vld [vmem:[%s3139_s6] ss:$0 sm:$0xff] }
 0x1ef   :  { %v655_v40 = vmul.f32 %v632_v35, %v2621_v44  ;;  %v638_v41 = vadd.f32 %v2115_v15, %v637_v37  ;;  %v1865_v32 = vor.u32 %v2033_v8, %v1864_v30  ;;  %v1869_v34 = vor.u32 %v2032_v31, %v1866_v33  ;;  %v1856_v35 = vld [vmem:[%s3140_s7 + $0x30] sm:$0xf]  ;;  %v2031_v37 = vld [vmem:[%s3140_s7 + $0x34] sm:$0xf0]  ;;  %v1850_v46 = vld [vmem:[%s3140_s7 + $0x28] sm:$0xf0] }
 0x1f0   :  { %v1857_v39 = vor.u32 %v2031_v37, %v1856_v35 }
 0x1f1   :  { %v663_v45 = vmul.f32 %v655_v40, %v475_v4  ;;  %v642_v47 = vsel %vm641_vm11, %v2115_v15, %v638_v41  ;;  %v2036_v15 = vld [vmem:[%s3140_s7 + $0x64] sm:$0xf]  ;;  %v1858_v40 = vld [vmem:[%s3140_s7 + $0x38] sm:$0xf0]  ;;  %v1848_v4 = vld [vmem:[%s3140_s7 + $0x20] sm:$0xf] }
 0x1f2   :  { %v647_v48 = vsel %vm644_vm12, %v646_v28, %v642_v47  ;;  %v1885_v19 = vor.u32 %v2036_v15, %v1882_v18  ;;  %v1861_v41 = vor.u32 %v2030_v38, %v1858_v40  ;;  %v2028_v28 = vld [vmem:[%s3140_s7 + $0x24] sm:$0xf] }
 0x1f3   :  { %v667_v13 = vpack.c.bf16 %v663_v45, %v661_v42  ;;  %v656_v49 = vmul.f32 %v647_v48, %v2643_v0  ;;  %v2029_v42 = vld [vmem:[%s3140_s7 + $0x24] sm:$0xf0]  ;;  %v1853_v47 = vor.u32 %v2028_v28, %v1850_v46 }
 0x1f4   :  { %v1849_v45 = vor.u32 %v2029_v42, %v1848_v4 }
 0x1f5   :  { %810 = vmatmul.bf16.gmra.mxu1 %v667_v13  ;;  %v664_v44 = vmul.f32 %v656_v49, %v494_v52  ;;  %v1840_v49 = vld [vmem:[%s3140_s7 + $0x10] sm:$0xf]  ;;  %v2027_v52 = vld [vmem:[%s3140_s7 + $0x14] sm:$0xf0] }
 0x1f7   :  { %v668_v54 = vpack.c.bf16 %v664_v44, %v662_v53  ;;  %v2026_v53 = vld [vmem:[%s3140_s7 + $0x14] sm:$0xf]  ;;  %v1841_v44 = vor.u32 %v2027_v52, %v1840_v49 }
 0x1f9   :  { %829 = vmatmul.bf16.gmra.mxu2 %v668_v54  ;;  %v1842_v54 = vld [vmem:[%s3140_s7 + $0x18] sm:$0xf0] }
 0x260   :  { %v806_v43 = vpop.f32.mrf.mxu1 }
 0x268   :  { %v808_v59 = vpop.f32.mrf.mxu1 }
 0x26c   :  { %v825_v57 = vpop.f32.mrf.mxu2 }
 0x26d   :  { %v826_v58 = vadd.f32 %v825_v57, %v806_v43  ;;  %v1845_v57 = vor.u32 %v2026_v53, %v1842_v54 }
 0x26f   :  { %v2730_v55 = vadd.f32 %v826_v58, %v2311_v12  ;;  %v1832_v58 = vld [vmem:[%s3140_s7] sm:$0xf] }
 0x271   :  { %v839_v36 = vmul.f32 %v2730_v55, %v2730_v55 }
 0x272   :  { %v811_v51 = vpop.f32.mrf.mxu1 }
 0x273   :  { %843 = vadd.xlane.f32.xlu2 %v839_v36  ;;  %v2025_v36 = vld [vmem:[%s3140_s7 + $0x4] sm:$0xf0] }
 0x274   :  { %v827_v9 = vpop.f32.mrf.mxu2 }
 0x275   :  { %v828_v60 = vadd.f32 %v827_v9, %v808_v59  ;;  %v2024_v59 = vld [vmem:[%s3140_s7 + $0x4] sm:$0xf]  ;;  %v1833_v9 = vor.u32 %v2025_v36, %v1832_v58 }
 0x277   :  { %v2735_v0 = vadd.f32 %v828_v60, %v2318_v16  ;;  %v1834_v60 = vld [vmem:[%s3140_s7 + $0x8] sm:$0xf0] }
 0x279   :  { %v840_v61 = vmul.f32 %v2735_v0, %v2735_v0 }
 0x27a   :  { %v813_v1 = vpop.f32.mrf.mxu1 }
 0x27b   :  { %845 = vadd.xlane.f32.xlu2 %v840_v61  ;;  %v1837_v61 = vor.u32 %v2024_v59, %v1834_v60 }
 0x27c   :  { %v830_v62 = vpop.f32.mrf.mxu2 }
 0x27d   :  { %v831_v22 = vadd.f32 %v830_v62, %v811_v51 }
 0x27f   :  { %v2740_v12 = vadd.f32 %v831_v22, %v2325_v20  ;;  %v2039_v20 = vld [vmem:[%s3140_s7 + $0x74] sm:$0xf0] }
 0x280   :  { %v1889_v10 = vor.u32 %v2039_v20, %v1888_v6 }
 0x281   :  { %v841_v63 = vmul.f32 %v2740_v12, %v2740_v12 }
 0x282   :  { %1015 = vmatpush.bf16.msrb.mxu3 %v1889_v10 }
 0x283   :  { %847 = vadd.xlane.f32.xlu0 %v841_v63 }
 0x284   :  { %v832_v2 = vpop.f32.mrf.mxu2 }
 0x285   :  { %v833_v3 = vadd.f32 %v832_v2, %v813_v1 }
 0x286   :  { %1016 = vmatpush.bf16.msrb.mxu3 %v1881_v17 }
 0x287   :  { %v2745_v16 = vadd.f32 %v833_v3, %v2332_v24  ;;  %v1890_v24 = vld [vmem:[%s3140_s7 + $0x78] sm:$0xf0] }
 0x288   :  { %v2761_v11 = vor.u32 %v2038_v7, %v1890_v24 }
 0x289   :  { %v842_v5 = vmul.f32 %v2745_v16, %v2745_v16 }
 0x28a   :  { %1034 = vmatpush.bf16.msra.mxu0 %v2761_v11  ;;  %1017 = vmatpush.bf16.msrb.mxu3 %v1873_v26 }
 0x28b   :  { %849 = vadd.xlane.f32.xlu1 %v842_v5 }
 0x28e   :  { %1035 = vmatpush.bf16.msra.mxu0 %v1885_v19  ;;  %1018 = vmatpush.bf16.msrb.mxu3 %v1865_v32 }
 0x292   :  { %1036 = vmatpush.bf16.msra.mxu0 %v1877_v29  ;;  %1019 = vmatpush.bf16.msrb.mxu3 %v1857_v39 }
 0x296   :  { %1037 = vmatpush.bf16.msra.mxu0 %v1869_v34  ;;  %1020 = vmatpush.bf16.msrb.mxu3 %v1849_v45 }
 0x29a   :  { %1038 = vmatpush.bf16.msra.mxu0 %v1861_v41  ;;  %1021 = vmatpush.bf16.msrb.mxu3 %v1841_v44 }
 0x29e   :  { %1039 = vmatpush.bf16.msra.mxu0 %v1853_v47  ;;  %1022 = vmatpush.bf16.msrb.mxu3 %v1833_v9 }
 0x2a2   :  { %1040 = vmatpush.bf16.msra.mxu0 %v1845_v57  ;;  %2056 = vmatpush.bf16.msra.mxu3 %v2761_v11 }
 0x2a6   :  { %1041 = vmatpush.bf16.msra.mxu0 %v1837_v61  ;;  %2057 = vmatpush.bf16.msra.mxu3 %v1885_v19 }
 0x2aa   :  { %2058 = vmatpush.bf16.msra.mxu3 %v1877_v29 }
 0x2ae   :  { %2059 = vmatpush.bf16.msra.mxu3 %v1869_v34 }
 0x2b2   :  { %2060 = vmatpush.bf16.msra.mxu3 %v1861_v41 }
 0x2b6   :  { %2061 = vmatpush.bf16.msra.mxu3 %v1853_v47 }
 0x2ba   :  { %2062 = vmatpush.bf16.msra.mxu3 %v1845_v57 }
 0x2be   :  { %2063 = vmatpush.bf16.msra.mxu3 %v1837_v61 }
 0x2e6   :  { %v844_v48 = vpop.xlane.xlu2 %843 }
 0x2e7   :  { %v851_v13 = vmul.f32 %v844_v48, %v2511_v56 }
 0x2e9   :  { %v855_v43 = vadd.f32 1e-06, %v851_v13  ;;  %v929_v13 = vld [vmem:[%s3141_s8] sm:$0x3] }
 0x2ea   :  { %v932_v52 = vperm.slane %v929_v13, 1  ;;  %v931_v53 = vperm.slane %v929_v13, 0 }
 0x2eb   :  { %2116 = vrsqrt.f32 %v855_v43  ;;  %vm865_vm14 = vweird.f32 %v855_v43 }
 0x2ee   :  { %v846_v51 = vpop.xlane.xlu2 %845 }
 0x2ef   :  { %v852_v62 = vmul.f32 %v846_v51, %v2511_v56 }
 0x2f1   :  { %v2117_v22 = vpop.eup %2116  ;;  %v856_v63 = vadd.f32 1e-06, %v852_v62 }
 0x2f2   :  { %v860_v1 = vmul.f32 %v2117_v22, %v855_v43  ;;  %vm866_vm13 = vweird.f32 %v2117_v22 }
 0x2f3   :  { %2118 = vrsqrt.f32 %v856_v63  ;;  %vm867_vm15 = vmor %vm865_vm14, %vm866_vm13  ;;  %vm875_vm1 = vweird.f32 %v856_v63 }
 0x2f4   :  { %v861_v2 = vmul.f32 %v2117_v22, %v860_v1 }
 0x2f6   :  { %v862_v3 = vmul.f32 0.5, %v861_v2  ;;  %v848_v20 = vpop.xlane.xlu0 %847 }
 0x2f7   :  { %v853_v10 = vmul.f32 %v848_v20, %v2511_v56 }
 0x2f8   :  { %v863_v5 = vsub.f32 1.5, %v862_v3 }
 0x2f9   :  { %v2119_v6 = vpop.eup %2118  ;;  %v857_v14 = vadd.f32 1e-06, %v853_v10 }
 0x2fa   :  { %v870_v7 = vmul.f32 %v2119_v6, %v856_v63  ;;  %v864_v24 = vmul.f32 %v2117_v22, %v863_v5  ;;  %vm876_vm0 = vweird.f32 %v2119_v6 }
 0x2fb   :  { %2120 = vrsqrt.f32 %v857_v14  ;;  %vm877_vm2 = vmor %vm875_vm1, %vm876_vm0  ;;  %vm885_vm4 = vweird.f32 %v857_v14 }
 0x2fc   :  { %v871_v50 = vmul.f32 %v2119_v6, %v870_v7  ;;  %v868_v15 = vsel %vm867_vm15, %v2117_v22, %v864_v24 }
 0x2fd   :  { %v899_v23 = vmul.f32 %v868_v15, %v2730_v55 }
 0x2fe   :  { %v872_v11 = vmul.f32 0.5, %v871_v50  ;;  %v850_v18 = vpop.xlane.xlu1 %849 }
 0x2ff   :  { %v854_v21 = vmul.f32 %v850_v18, %v2511_v56  ;;  %v907_v32 = vmul.f32 %v2071_v25, %v899_v23 }
 0x300   :  { %v873_v17 = vsub.f32 1.5, %v872_v11  ;;  %v2203_v11 = vmov 256.0  }
 0x301   :  { %v2121_v26 = vpop.eup %2120  ;;  %v858_v29 = vadd.f32 1e-06, %v854_v21 }
 0x302   :  { %v874_v19 = vmul.f32 %v2119_v6, %v873_v17  ;;  %v880_v30 = vmul.f32 %v2121_v26, %v857_v14  ;;  %vm886_vm3 = vweird.f32 %v2121_v26 }
 0x303   :  { %2122 = vrsqrt.f32 %v858_v29  ;;  %vm887_vm5 = vmor %vm885_vm4, %vm886_vm3  ;;  %vm895_vm7 = vweird.f32 %v858_v29 }
 0x304   :  { %v878_v27 = vsel %vm877_vm2, %v2119_v6, %v874_v19  ;;  %v881_v31 = vmul.f32 %v2121_v26, %v880_v30  ;;  %2124 = vrcp.f32 %v2203_v11  ;;  %v2047_v30 = vld [vmem:[%s3143_s10 + $0x38] sm:$0xff] }
 0x305   :  { %v900_v8 = vmul.f32 %v878_v27, %v2735_v0  ;;  %1446 = vmatpush.bf16.msra.mxu1 %v2047_v30 }
 0x306   :  { %v882_v56 = vmul.f32 0.5, %v881_v31 }
 0x307   :  { %v908_v33 = vmul.f32 %v2071_v25, %v900_v8  ;;  %v2055_v8 = vld [vmem:[%s3143_s10 + $0x78] sm:$0xff] }
 0x308   :  { %v883_v35 = vsub.f32 1.5, %v882_v56  ;;  %1465 = vmatpush.bf16.msra.mxu2 %v2055_v8 }
 0x309   :  { %v911_v34 = vpack.c.bf16 %v908_v33, %v907_v32  ;;  %v2123_v55 = vpop.eup %2122 }
 0x30a   :  { %v890_v37 = vmul.f32 %v2123_v55, %v858_v29  ;;  %v884_v38 = vmul.f32 %v2121_v26, %v883_v35  ;;  %vm896_vm6 = vweird.f32 %v2123_v55  ;;  %v2125_v15 = vpop.eup %2124  ;;  %v2054_v35 = vld [vmem:[%s3143_s10 + $0x70] sm:$0xff] }
 0x30b   :  { %1023 = vmatmul.bf16.vlgmr.msrb.gmra.mxu3 %v911_v34  ;;  %1042 = vmatmul.bf16.vlgmr.msra.gmra.mxu0 %v911_v34  ;;  %vm897_vm8 = vmor %vm895_vm7, %vm896_vm6  ;;  %v1074_v17 = vmul.f32 256.0, %v2125_v15  ;;  %vm1078_vm9 = vweird.f32 %v2125_v15  ;;  %v2046_v34 = vld [vmem:[%s3143_s10 + $0x30] sm:$0xff] }
 0x30c   :  { %v891_v39 = vmul.f32 %v2123_v55, %v890_v37  ;;  %v888_v41 = vsel %vm887_vm5, %v2121_v26, %v884_v38  ;;  %1447 = vmatpush.bf16.msra.mxu1 %v2046_v34  ;;  %1466 = vmatpush.bf16.msra.mxu2 %v2054_v35  ;;  %v2045_v38 = vld [vmem:[%s3143_s10 + $0x28] sm:$0xff] }
 0x30d   :  { %v901_v42 = vmul.f32 %v888_v41, %v2740_v12  ;;  %v1075_v18 = vsub.f32 1.0, %v1074_v17 }
 0x30e   :  { %v892_v40 = vmul.f32 0.5, %v891_v39  ;;  %v2053_v39 = vld [vmem:[%s3143_s10 + $0x68] sm:$0xff] }
 0x30f   :  { %v909_v46 = vmul.f32 %v2071_v25, %v901_v42  ;;  %v1076_v19 = vmul.f32 %v2125_v15, %v1075_v18 }
 0x310   :  { %v893_v0 = vsub.f32 1.5, %v892_v40  ;;  %1448 = vmatpush.bf16.msra.mxu1 %v2045_v38  ;;  %1467 = vmatpush.bf16.msra.mxu2 %v2053_v39 }
 0x311   :  { %v1077_v21 = vadd.f32 %v2125_v15, %v1076_v19 }
 0x312   :  { %v894_v4 = vmul.f32 %v2123_v55, %v893_v0  ;;  %v1136_v0 = vld [vmem:[%s3142_s9] sm:$0x3] }
 0x313   :  { %v2895_v23 = vsel %vm1078_vm9, %v2125_v15, %v1077_v21 }
 0x314   :  { %v898_v28 = vsel %vm897_vm8, %v2123_v55, %v894_v4 }
 0x315   :  { %v902_v45 = vmul.f32 %v898_v28, %v2745_v16  ;;  %v2044_v28 = vld [vmem:[%s3143_s10 + $0x20] sm:$0xff] }
 0x316   :  { %1449 = vmatpush.bf16.msra.mxu1 %v2044_v28 }
 0x317   :  { %v910_v47 = vmul.f32 %v2071_v25, %v902_v45  ;;  %v2052_v45 = vld [vmem:[%s3143_s10 + $0x60] sm:$0xff] }
 0x318   :  { %1468 = vmatpush.bf16.msra.mxu2 %v2052_v45 }
 0x319   :  { %v912_v48 = vpack.c.bf16 %v910_v47, %v909_v46  ;;  %v2926_v46 = vperm.slane %v1136_v0, 0  ;;  %v2928_v47 = vperm.slane %v1136_v0, 1 }
 0x31b   :  { %1028 = vmatmul.bf16.gmra.mxu3 %v912_v48 }
 0x32b   :  { %1047 = vmatmul.bf16.vlgmr.msra.gmra.mxu3 %v912_v48 }
 0x388   :  { %v1043_v49 = vpop.f32.mrf.mxu0 }
 0x389   :  { %v2863_v44 = vadd.f32 %v1043_v49, %v932_v52 }
 0x38b   :  { %v1054_v12 = vmul.f32 %v2863_v44, %v2863_v44 }
 0x38e   :  { %v1024_v54 = vpop.f32.mrf.mxu3 }
 0x38f   :  { %v2865_v43 = vadd.f32 %v1024_v54, %v931_v53  ;;  %v2043_v54 = vld [vmem:[%s3143_s10 + $0x18] sm:$0xff] }
 0x390   :  { %v1045_v57 = vpop.f32.mrf.mxu0  ;;  %1450 = vmatpush.bf16.msra.mxu1 %v2043_v54 }
 0x391   :  { %v1053_v16 = vmul.f32 %v2865_v43, %v2865_v43  ;;  %v2871_v36 = vadd.f32 %v1045_v57, %v932_v52 }
 0x393   :  { %v1061_v58 = vadd.f32 %v1054_v12, %v1053_v16  ;;  %v1056_v60 = vmul.f32 %v2871_v36, %v2871_v36  ;;  %v2051_v12 = vld [vmem:[%s3143_s10 + $0x58] sm:$0xff] }
 0x394   :  { %1469 = vmatpush.bf16.msra.mxu2 %v2051_v12 }
 0x395   :  { %1062 = vadd.xlane.f32.xlu2 %v1061_v58 }
 0x396   :  { %v1026_v59 = vpop.f32.mrf.mxu3 }
 0x397   :  { %v2873_v9 = vadd.f32 %v1026_v59, %v931_v53 }
 0x399   :  { %v1055_v61 = vmul.f32 %v2873_v9, %v2873_v9 }
 0x39b   :  { %v1064_v51 = vadd.f32 %v1056_v60, %v1055_v61  ;;  %v2042_v60 = vld [vmem:[%s3143_s10 + $0x10] sm:$0xff] }
 0x39c   :  { %v2050_v61 = vld [vmem:[%s3143_s10 + $0x50] sm:$0xff]  ;;  %1451 = vmatpush.bf16.msra.mxu1 %v2042_v60 }
 0x39d   :  { %1065 = vadd.xlane.f32.xlu0 %v1064_v51  ;;  %1470 = vmatpush.bf16.msra.mxu2 %v2050_v61 }
 0x39e   :  { %v1029_v62 = vpop.f32.mrf.mxu3 }
 0x39f   :  { %v2879_v63 = vadd.f32 %v1029_v62, %v931_v53 }
 0x3a1   :  { %v1057_v3 = vmul.f32 %v2879_v63, %v2879_v63 }
 0x3a6   :  { %v1031_v22 = vpop.f32.mrf.mxu3 }
 0x3a7   :  { %v2887_v20 = vadd.f32 %v1031_v22, %v931_v53 }
 0x3a9   :  { %v1059_v24 = vmul.f32 %v2887_v20, %v2887_v20 }
 0x3ae   :  { %v1048_v1 = vpop.f32.mrf.mxu3 }
 0x3af   :  { %v2881_v2 = vadd.f32 %v1048_v1, %v932_v52  ;;  %v2041_v1 = vld [vmem:[%s3143_s10 + $0x8] sm:$0xff] }
 0x3b0   :  { %1452 = vmatpush.bf16.msra.mxu1 %v2041_v1 }
 0x3b1   :  { %v1058_v5 = vmul.f32 %v2881_v2, %v2881_v2 }
 0x3b3   :  { %v1067_v6 = vadd.f32 %v1058_v5, %v1057_v3  ;;  %v2049_v3 = vld [vmem:[%s3143_s10 + $0x48] sm:$0xff] }
 0x3b4   :  { %1471 = vmatpush.bf16.msra.mxu2 %v2049_v3 }
 0x3b5   :  { %1068 = vadd.xlane.f32.xlu1 %v1067_v6 }
 0x3b6   :  { %v1050_v7 = vpop.f32.mrf.mxu3 }
 0x3b7   :  { %v2889_v10 = vadd.f32 %v1050_v7, %v932_v52 }
 0x3b9   :  { %v1060_v50 = vmul.f32 %v2889_v10, %v2889_v10 }
 0x3bb   :  { %v1070_v14 = vadd.f32 %v1060_v50, %v1059_v24 }
 0x3bd   :  { %1071 = vadd.xlane.f32.xlu2 %v1070_v14 }
 0x408   :  { %v1063_v25 = vpop.xlane.xlu2 %1062 }
 0x409   :  { %v1080_v26 = vmul.f32 %v2895_v23, %v1063_v25 }
 0x40b   :  { %v1084_v27 = vadd.f32 1e-06, %v1080_v26 }
 0x40d   :  { %2126 = vrsqrt.f32 %v1084_v27  ;;  %vm1094_vm11 = vweird.f32 %v1084_v27 }
 0x410   :  { %v1066_v29 = vpop.xlane.xlu0 %1065 }
 0x411   :  { %v1081_v31 = vmul.f32 %v2895_v23, %v1066_v29 }
 0x413   :  { %v2127_v32 = vpop.eup %2126  ;;  %v1085_v33 = vadd.f32 1e-06, %v1081_v31 }
 0x414   :  { %v1089_v56 = vmul.f32 %v2127_v32, %v1084_v27  ;;  %vm1095_vm10 = vweird.f32 %v2127_v32 }
 0x415   :  { %2128 = vrsqrt.f32 %v1085_v33  ;;  %vm1096_vm12 = vmor %vm1094_vm11, %vm1095_vm10  ;;  %vm1104_vm14 = vweird.f32 %v1085_v33 }
 0x416   :  { %v1090_v55 = vmul.f32 %v2127_v32, %v1089_v56 }
 0x418   :  { %v1091_v37 = vmul.f32 0.5, %v1090_v55 }
 0x41a   :  { %v1092_v40 = vsub.f32 1.5, %v1091_v37 }
 0x41b   :  { %v2129_v41 = vpop.eup %2128 }
 0x41c   :  { %v1093_v4 = vmul.f32 %v2127_v32, %v1092_v40  ;;  %v1099_v42 = vmul.f32 %v2129_v41, %v1085_v33  ;;  %vm1105_vm13 = vweird.f32 %v2129_v41 }
 0x41d   :  { %vm1106_vm15 = vmor %vm1104_vm14, %vm1105_vm13 }
 0x41e   :  { %v1097_v48 = vsel %vm1096_vm12, %v2127_v32, %v1093_v4  ;;  %v1100_v13 = vmul.f32 %v2129_v41, %v1099_v42 }
 0x41f   :  { %v1128_v49 = vmul.f32 %v1097_v48, %v2865_v43  ;;  %v1129_v52 = vmul.f32 %v1097_v48, %v2863_v44 }
 0x420   :  { %v1101_v53 = vmul.f32 0.5, %v1100_v13 }
 0x421   :  { %v2939_v16 = vmul.f32 %v2926_v46, %v1128_v49  ;;  %v2942_v57 = vmul.f32 %v2928_v47, %v1129_v52 }
 0x422   :  { %v1102_v58 = vsub.f32 1.5, %v1101_v53 }
 0x423   :  { %v1894_v44 = vmul.f32 -1.442695, %v2939_v16  ;;  %v1895_v43 = vmul.f32 -1.442695, %v2942_v57 }
 0x424   :  { %v1103_v59 = vmul.f32 %v2129_v41, %v1102_v58 }
 0x425   :  { %2130 = vpow2.f32 %v1894_v44 }
 0x426   :  { %v1107_v51 = vsel %vm1106_vm15, %v2129_v41, %v1103_v59  ;;  %2132 = vpow2.f32 %v1895_v43 }
 0x427   :  { %v1130_v62 = vmul.f32 %v1107_v51, %v2873_v9  ;;  %v1131_v22 = vmul.f32 %v1107_v51, %v2871_v36  ;;  %v2040_v36 = vld [vmem:[%s3143_s10] sm:$0xff] }
 0x428   :  { %v2048_v9 = vld [vmem:[%s3143_s10 + $0x40] sm:$0xff]  ;;  %v1069_v24 = vpop.xlane.xlu1 %1068  ;;  %1453 = vmatpush.bf16.msra.mxu1 %v2040_v36 }
 0x429   :  { %v2961_v5 = vmul.f32 %v2926_v46, %v1130_v62  ;;  %v2964_v6 = vmul.f32 %v2928_v47, %v1131_v22  ;;  %v1082_v15 = vmul.f32 %v2895_v23, %v1069_v24  ;;  %1472 = vmatpush.bf16.msra.mxu2 %v2048_v9 }
 0x42b   :  { %v2131_v7 = vpop.eup %2130  ;;  %v1896_v50 = vmul.f32 -1.442695, %v2961_v5  ;;  %v1897_v14 = vmul.f32 -1.442695, %v2964_v6  ;;  %v1086_v19 = vadd.f32 1e-06, %v1082_v15 }
 0x42c   :  { %v2133_v11 = vpop.eup %2132  ;;  %v1174_v17 = vadd.f32 1.0, %v2131_v7 }
 0x42d   :  { %2134 = vpow2.f32 %v1896_v50  ;;  %v2975_v18 = vadd.f32 1.0, %v2133_v11  ;;  %vm1114_vm2 = vweird.f32 %v1086_v19 }
 0x42e   :  { %2136 = vrcp.f32 %v1174_v17  ;;  %v1191_v35 = vand.u32 2147483647, %v1174_v17  ;;  %v1193_v55 = vand.u32 2147483648, %v1174_v17  ;;  %vm1187_vm0 = vweird.f32 %v1174_v17 }
 0x42f   :  { %2138 = vpow2.f32 %v1897_v14  ;;  %v1208_v40 = vand.u32 2147483648, %v2975_v18  ;;  %vm1202_vm1 = vweird.f32 %v2975_v18  ;;  %v1206_v4 = vand.u32 2147483647, %v2975_v18 }
 0x430   :  { %2140 = vrsqrt.f32 %v1086_v19  ;;  %v1072_v25 = vpop.xlane.xlu2 %1071  ;;  %vm3001_vm4 = vcmp.eq.f32.partialorder %v1191_v35, 8.507059e+37  ;;  %v1194_v49 = vor.u32 1.1754944e-38, %v1193_v55 }
 0x431   :  { %2142 = vrcp.f32 %v2975_v18  ;;  %v1083_v27 = vmul.f32 %v2895_v23, %v1072_v25  ;;  %v1209_v53 = vor.u32 1.1754944e-38, %v1208_v40  ;;  %vm3019_vm9 = vcmp.eq.f32.partialorder %v1206_v4, 8.507059e+37 }
 0x433   :  { %v2135_v21 = vpop.eup %2134  ;;  %v2984_v32 = vadd.f32 1e-06, %v1083_v27 }
 0x434   :  { %v2978_v26 = vpop.eup %2136  ;;  %v2981_v29 = vadd.f32 1.0, %v2135_v21 }
 0x435   :  { %v2139_v30 = vpop.eup %2138  ;;  %v1183_v8 = vmul.f32 %v2978_v26, %v1174_v17  ;;  %vm1188_vm3 = vweird.f32 %v2978_v26  ;;  %vm1124_vm7 = vweird.f32 %v2984_v32 }
 0x436   :  { %v2141_v31 = vpop.eup %2140  ;;  %2144 = vrcp.f32 %v2981_v29  ;;  %v2990_v37 = vadd.f32 1.0, %v2139_v30  ;;  %v1221_v48 = vand.u32 2147483647, %v2981_v29  ;;  %vm1217_vm6 = vweird.f32 %v2981_v29  ;;  %vm3015_vm8 = vmor %vm1187_vm0, %vm1188_vm3 }
 0x437   :  { %v2987_v33 = vpop.eup %2142  ;;  %v1109_v56 = vmul.f32 %v2141_v31, %v1086_v19  ;;  %v1184_v34 = vsub.f32 1.0, %v1183_v8  ;;  %2146 = vrsqrt.f32 %v2984_v32  ;;  %vm1115_vm5 = vweird.f32 %v2141_v31 }
 0x438   :  { %v1198_v39 = vmul.f32 %v2987_v33, %v2975_v18  ;;  %2148 = vrcp.f32 %v2990_v37  ;;  %v1223_v12 = vand.u32 2147483648, %v2981_v29  ;;  %vm3026_vm11 = vcmp.eq.f32.partialorder %v1221_v48, 8.507059e+37  ;;  %vm1116_vm13 = vmor %vm1114_vm2, %vm1115_vm5 }
 0x439   :  { %v1110_v23 = vmul.f32 %v2141_v31, %v1109_v56  ;;  %v1185_v38 = vmul.f32 %v2978_v26, %v1184_v34  ;;  %vm1203_vm12 = vweird.f32 %v2987_v33  ;;  %v1236_v24 = vand.u32 2147483647, %v2990_v37 }
 0x43a   :  { %v1199_v41 = vsub.f32 1.0, %v1198_v39  ;;  %v1224_v7 = vor.u32 1.1754944e-38, %v1223_v12  ;;  %v1238_v50 = vand.u32 2147483648, %v2990_v37  ;;  %vm3041_vm14 = vmor %vm1202_vm1, %vm1203_vm12  ;;  %vm1232_vm1 = vweird.f32 %v2990_v37 }
 0x43b   :  { %v1111_v0 = vmul.f32 0.5, %v1110_v23  ;;  %v1186_v28 = vadd.f32 %v2978_v26, %v1185_v38  ;;  %vm1237_vm5 = vcmp.eq.f32.partialorder %v1236_v24, 8.507059e+37 }
 0x43c   :  { %v2145_v42 = vpop.eup %2144  ;;  %v1200_v58 = vmul.f32 %v2987_v33, %v1199_v41  ;;  %v1239_v55 = vor.u32 1.1754944e-38, %v1238_v50 }
 0x43d   :  { %v1112_v13 = vsub.f32 1.5, %v1111_v0  ;;  %v1213_v52 = vmul.f32 %v2145_v42, %v2981_v29  ;;  %v2147_v54 = vpop.eup %2146  ;;  %v1190_v62 = vsel %vm3015_vm8, %v2978_v26, %v1186_v28  ;;  %vm1218_vm10 = vweird.f32 %v2145_v42 }
 0x43e   :  { %v1119_v43 = vmul.f32 %v2147_v54, %v2984_v32  ;;  %v2149_v51 = vpop.eup %2148  ;;  %v1201_v36 = vadd.f32 %v2987_v33, %v1200_v58  ;;  %v1195_v15 = vsel %vm3001_vm4, %v1194_v49, %v1190_v62  ;;  %vm1125_vm15 = vweird.f32 %v2147_v54  ;;  %vm1219_vm0 = vmor %vm1217_vm6, %vm1218_vm10 }
 0x43f   :  { %v1113_v44 = vmul.f32 %v2141_v31, %v1112_v13  ;;  %v1214_v60 = vsub.f32 1.0, %v1213_v52  ;;  %v1228_v9 = vmul.f32 %v2149_v51, %v2990_v37  ;;  %vm1233_vm2 = vweird.f32 %v2149_v51  ;;  %vm1126_vm3 = vmor %vm1124_vm7, %vm1125_vm15 }
 0x440   :  { %v1120_v1 = vmul.f32 %v2147_v54, %v1119_v43  ;;  %v1205_v18 = vsel %vm3041_vm14, %v2987_v33, %v1201_v36  ;;  %vm1234_vm4 = vmor %vm1232_vm1, %vm1233_vm2 }
 0x441   :  { %v1215_v3 = vmul.f32 %v2145_v42, %v1214_v60  ;;  %v1117_v14 = vsel %vm1116_vm13, %v2141_v31, %v1113_v44  ;;  %v1229_v21 = vsub.f32 1.0, %v1228_v9  ;;  %v1210_v35 = vsel %vm3019_vm9, %v1209_v53, %v1205_v18 }
 0x442   :  { %v1121_v11 = vmul.f32 0.5, %v1120_v1  ;;  %v1132_v25 = vmul.f32 %v1117_v14, %v2879_v63  ;;  %v1133_v26 = vmul.f32 %v1117_v14, %v2881_v2  ;;  %v1302_v2 = vmul.f32 %v1195_v15, %v2939_v16 }
 0x443   :  { %v1216_v17 = vadd.f32 %v2145_v42, %v1215_v3  ;;  %v1230_v8 = vmul.f32 %v2149_v51, %v1229_v21  ;;  %v1303_v0 = vmul.f32 %v1210_v35, %v2942_v57 }
 0x444   :  { %v1122_v27 = vsub.f32 1.5, %v1121_v11  ;;  %v3057_v29 = vmul.f32 %v2926_v46, %v1132_v25  ;;  %v3060_v56 = vmul.f32 %v2928_v47, %v1133_v26 }
 0x445   :  { %v1220_v30 = vsel %vm1219_vm0, %v2145_v42, %v1216_v17  ;;  %v1231_v34 = vadd.f32 %v2149_v51, %v1230_v8 }
 0x446   :  { %v1225_v31 = vsel %vm3026_vm11, %v1224_v7, %v1220_v30  ;;  %v1123_v63 = vmul.f32 %v2147_v54, %v1122_v27  ;;  %v1898_v37 = vmul.f32 -1.442695, %v3057_v29  ;;  %v1899_v23 = vmul.f32 -1.442695, %v3060_v56 }
 0x447   :  { %v1304_v33 = vmul.f32 %v1225_v31, %v2961_v5  ;;  %v1235_v39 = vsel %vm1234_vm4, %v2149_v51, %v1231_v34 }
 0x448   :  { %v1127_v32 = vsel %vm1126_vm3, %v2147_v54, %v1123_v63  ;;  %v1240_v40 = vsel %vm1237_vm5, %v1239_v55, %v1235_v39  ;;  %2150 = vpow2.f32 %v1898_v37 }
 0x449   :  { %v1310_v38 = vpack.c.bf16 %v1304_v33, %v1302_v2  ;;  %v1134_v16 = vmul.f32 %v1127_v32, %v2887_v20  ;;  %v1135_v5 = vmul.f32 %v1127_v32, %v2889_v10  ;;  %v1305_v41 = vmul.f32 %v1240_v40, %v2964_v6 }
 0x44a   :  { %2152 = vpow2.f32 %v1899_v23 }
 0x44b   :  { %1454 = vmatmul.bf16.vlgmr.msra.gmra.mxu1 %v1310_v38  ;;  %v3076_v4 = vmul.f32 %v2926_v46, %v1134_v16  ;;  %v3079_v42 = vmul.f32 %v2928_v47, %v1135_v5  ;;  %v1311_v28 = vpack.c.bf16 %v1305_v41, %v1303_v0 }
 0x44d   :  { %v1900_v45 = vmul.f32 -1.442695, %v3076_v4  ;;  %v1901_v20 = vmul.f32 -1.442695, %v3079_v42  ;;  %1473 = vmatmul.bf16.vlgmr.msra.gmra.mxu2 %v1311_v28 }
 0x44e   :  { %v2151_v48 = vpop.eup %2150 }
 0x44f   :  { %2154 = vpow2.f32 %v1900_v45  ;;  %v1178_v13 = vadd.f32 1.0, %v2151_v48  ;;  %v2072_v45 = vld [vmem:[%s3144_s11] ss:$0 sm:$0xff] }
 0x450   :  { %v2153_v10 = vpop.eup %2152  ;;  %2156 = vpow2.f32 %v1901_v20 }
 0x451   :  { %v1179_v57 = vadd.f32 1.0, %v2153_v10  ;;  %2158 = vrcp.f32 %v1178_v13  ;;  %v1251_v59 = vand.u32 2147483647, %v1178_v13  ;;  %v1253_v61 = vand.u32 2147483648, %v1178_v13 }
 0x452   :  { %vm1247_vm6 = vweird.f32 %v1178_v13 }
 0x453   :  { %2160 = vrcp.f32 %v1179_v57  ;;  %vm1262_vm8 = vweird.f32 %v1179_v57  ;;  %vm3083_vm10 = vcmp.eq.f32.partialorder %v1251_v59, 8.507059e+37  ;;  %v1266_v24 = vand.u32 2147483647, %v1179_v57 }
 0x454   :  { %v1268_v50 = vand.u32 2147483648, %v1179_v57  ;;  %v1254_v11 = vor.u32 1.1754944e-38, %v1253_v61 }
 0x455   :  { %v2155_v6 = vpop.eup %2154  ;;  %vm1267_vm0 = vcmp.eq.f32.partialorder %v1266_v24, 8.507059e+37 }
 0x456   :  { %v2157_v46 = vpop.eup %2156  ;;  %v1180_v49 = vadd.f32 1.0, %v2155_v6  ;;  %v1269_v63 = vor.u32 1.1754944e-38, %v1268_v50 }
 0x457   :  { %v1181_v52 = vadd.f32 1.0, %v2157_v46  ;;  %v2159_v47 = vpop.eup %2158 }
 0x458   :  { %2162 = vrcp.f32 %v1180_v49  ;;  %v1243_v54 = vmul.f32 %v2159_v47, %v1178_v13  ;;  %vm1248_vm7 = vweird.f32 %v2159_v47  ;;  %v1281_v15 = vand.u32 2147483647, %v1180_v49 }
 0x459   :  { %v2161_v53 = vpop.eup %2160  ;;  %2164 = vrcp.f32 %v1181_v52  ;;  %vm3087_vm11 = vmor %vm1247_vm6, %vm1248_vm7  ;;  %v1283_v17 = vand.u32 2147483648, %v1180_v49  ;;  %v1298_v27 = vand.u32 2147483648, %v1181_v52  ;;  %v1296_v8 = vand.u32 2147483647, %v1181_v52 }
 0x45a   :  { %v1258_v12 = vmul.f32 %v2161_v53, %v1179_v57  ;;  %v1244_v58 = vsub.f32 1.0, %v1243_v54  ;;  %vm1263_vm9 = vweird.f32 %v2161_v53  ;;  %vm1277_vm15 = vweird.f32 %v1180_v49 }
 0x45b   :  { %vm3094_vm13 = vmor %vm1262_vm8, %vm1263_vm9  ;;  %v1284_v33 = vor.u32 1.1754944e-38, %v1283_v17  ;;  %vm1292_vm1 = vweird.f32 %v1181_v52  ;;  %vm1282_vm3 = vcmp.eq.f32.partialorder %v1281_v15, 8.507059e+37  ;;  %v1299_v37 = vor.u32 1.1754944e-38, %v1298_v27 }
 0x45c   :  { %v1259_v44 = vsub.f32 1.0, %v1258_v12  ;;  %v1245_v43 = vmul.f32 %v2159_v47, %v1244_v58  ;;  %vm1297_vm5 = vcmp.eq.f32.partialorder %v1296_v8, 8.507059e+37  ;;  %vm1488_vm6 = vcmask 523264   ;;  %v2073_v8 = vld [vmem:[%s3145_s12] ss:$0 sm:$0xff]  ;;  %s2205_s12 = smov [#allocation2]  }
 0x45d   :  { %s1576_s19 = sshll.u32 %s2205_s12, 4  ;;  %s1577_s19 = int_to_ptr.vmem [resolvable:$true] %s1576_s19 }
 0x45e   :  { %v2163_v60 = vpop.eup %2162  ;;  %v1260_v51 = vmul.f32 %v2161_v53, %v1259_v44  ;;  %v1246_v22 = vadd.f32 %v2159_v47, %v1245_v43 }
 0x45f   :  { %v2165_v62 = vpop.eup %2164  ;;  %v1273_v1 = vmul.f32 %v2163_v60, %v1180_v49  ;;  %vm1278_vm12 = vweird.f32 %v2163_v60 }
 0x460   :  { %v1261_v3 = vadd.f32 %v2161_v53, %v1260_v51  ;;  %v1288_v36 = vmul.f32 %v2165_v62, %v1181_v52  ;;  %v1250_v21 = vsel %vm3087_vm11, %v2159_v47, %v1246_v22  ;;  %vm1293_vm14 = vweird.f32 %v2165_v62  ;;  %vm1279_vm2 = vmor %vm1277_vm15, %vm1278_vm12 }
 0x461   :  { %v1274_v7 = vsub.f32 1.0, %v1273_v1  ;;  %v1255_v2 = vsel %vm3083_vm10, %v1254_v11, %v1250_v21  ;;  %vm1294_vm4 = vmor %vm1292_vm1, %vm1293_vm14  ;;  %v2204_v51 = vmov 64.0  }
 0x462   :  { %v1289_v19 = vsub.f32 1.0, %v1288_v36  ;;  %v1265_v30 = vsel %vm3094_vm13, %v2161_v53, %v1261_v3  ;;  %v1306_v39 = vmul.f32 %v1255_v2, %v3057_v29  ;;  %2166 = vrcp.f32 %v2204_v51 }
 0x463   :  { %v1275_v25 = vmul.f32 %v2163_v60, %v1274_v7  ;;  %v1270_v55 = vsel %vm1267_vm0, %v1269_v63, %v1265_v30 }
 0x464   :  { %v1290_v18 = vmul.f32 %v2165_v62, %v1289_v19  ;;  %v1307_v16 = vmul.f32 %v1270_v55, %v3060_v56 }
 0x465   :  { %v1276_v31 = vadd.f32 %v2163_v60, %v1275_v25 }
 0x466   :  { %v1291_v34 = vadd.f32 %v2165_v62, %v1290_v18 }
 0x467   :  { %v1280_v35 = vsel %vm1279_vm2, %v2163_v60, %v1276_v31 }
 0x468   :  { %v1285_v23 = vsel %vm1282_vm3, %v1284_v33, %v1280_v35  ;;  %v1295_v38 = vsel %vm1294_vm4, %v2165_v62, %v1291_v34  ;;  %v2167_v62 = vpop.eup %2166 }
 0x469   :  { %v1308_v32 = vmul.f32 %v1285_v23, %v3076_v4  ;;  %v1300_v40 = vsel %vm1297_vm5, %v1299_v37, %v1295_v38  ;;  %v1502_v22 = vmul.f32 64.0, %v2167_v62  ;;  %vm1506_vm7 = vweird.f32 %v2167_v62 }
 0x46a   :  { %v1309_v5 = vmul.f32 %v1300_v40, %v3079_v42 }
 0x46b   :  { %v1312_v0 = vpack.c.bf16 %v1308_v32, %v1306_v39  ;;  %v1503_v1 = vsub.f32 1.0, %v1502_v22 }
 0x46c   :  { %v1313_v41 = vpack.c.bf16 %v1309_v5, %v1307_v16 }
 0x46d   :  { %1459 = vmatmul.bf16.gmra.mxu1 %v1312_v0  ;;  %v1504_v3 = vmul.f32 %v2167_v62, %v1503_v1 }
 0x46e   :  { %1478 = vmatmul.bf16.gmra.mxu2 %v1313_v41 }
 0x46f   :  { %v1505_v36 = vadd.f32 %v2167_v62, %v1504_v3 }
 0x471   :  { %v1507_v9 = vsel %vm1506_vm7, %v2167_v62, %v1505_v36 }
 0x4c8   :  { %v1455_v28 = vpop.f32.mrf.mxu1 }
 0x4c9   :  { %v1456_v20 = vadd.f32 %v2072_v45, %v1455_v28 }
 0x4d0   :  { %v1474_v48 = vpop.f32.mrf.mxu2  ;;  %v1457_v4 = vpop.f32.mrf.mxu1 }
 0x4d1   :  { %v1475_v10 = vadd.f32 %v1474_v48, %v1456_v20  ;;  %v1458_v56 = vadd.f32 %v2072_v45, %v1457_v4 }
 0x4d3   :  { %v1484_v29 = vmul.f32 %v1475_v10, %v1475_v10 }
 0x4d5   :  { %v1489_v13 = vsel %vm1488_vm6, %v1484_v29, 0.0 }
 0x4d6   :  { %1490 = vadd.xlane.f32.xlu0 %v1489_v13 }
 0x4d8   :  { %v1476_v42 = vpop.f32.mrf.mxu2 }
 0x4d9   :  { %v1477_v57 = vadd.f32 %v1476_v42, %v1458_v56 }
 0x4db   :  { %v1485_v6 = vmul.f32 %v1477_v57, %v1477_v57 }
 0x4dd   :  { %v1492_v46 = vsel %vm1488_vm6, %v1485_v6, 0.0 }
 0x4de   :  { %1493 = vadd.xlane.f32.xlu1 %v1492_v46 }
 0x4ea   :  { %v1460_v49 = vpop.f32.mrf.mxu1 }
 0x4eb   :  { %v1461_v52 = vadd.f32 %v2072_v45, %v1460_v49 }
 0x4f1   :  { %v1479_v47 = vpop.f32.mrf.mxu2 }
 0x4f2   :  { %v3111_v53 = vadd.f32 %v1479_v47, %v1461_v52  ;;  %v1462_v12 = vpop.f32.mrf.mxu1 }
 0x4f3   :  { %v1463_v44 = vadd.f32 %v2072_v45, %v1462_v12 }
 0x4f4   :  { %v1486_v54 = vmul.f32 %v3111_v53, %v3111_v53 }
 0x4f6   :  { %v1495_v58 = vsel %vm1488_vm6, %v1486_v54, 0.0 }
 0x4f7   :  { %1496 = vadd.xlane.f32.xlu2 %v1495_v58 }
 0x4f9   :  { %v1481_v43 = vpop.f32.mrf.mxu2 }
 0x4fa   :  { %v3116_v59 = vadd.f32 %v1481_v43, %v1463_v44 }
 0x4fc   :  { %v1487_v60 = vmul.f32 %v3116_v59, %v3116_v59 }
 0x4fe   :  { %v1498_v61 = vsel %vm1488_vm6, %v1487_v60, 0.0 }
 0x4ff   :  { %1499 = vadd.xlane.f32.xlu0 %v1498_v61 }
 0x549   :  { %v1491_v7 = vpop.xlane.xlu0 %1490 }
 0x54a   :  { %v1508_v24 = vmul.f32 %v1507_v9, %v1491_v7 }
 0x54c   :  { %v1512_v50 = vadd.f32 1e-06, %v1508_v24 }
 0x54e   :  { %2168 = vrsqrt.f32 %v1512_v50  ;;  %vm1522_vm9 = vweird.f32 %v1512_v50 }
 0x551   :  { %v1494_v14 = vpop.xlane.xlu1 %1493 }
 0x552   :  { %v1509_v11 = vmul.f32 %v1507_v9, %v1494_v14 }
 0x554   :  { %v2169_v15 = vpop.eup %2168  ;;  %v1513_v17 = vadd.f32 1e-06, %v1509_v11 }
 0x555   :  { %v1517_v19 = vmul.f32 %v2169_v15, %v1512_v50  ;;  %vm1523_vm8 = vweird.f32 %v2169_v15 }
 0x556   :  { %2170 = vrsqrt.f32 %v1513_v17  ;;  %vm1524_vm10 = vmor %vm1522_vm9, %vm1523_vm8  ;;  %vm1532_vm12 = vweird.f32 %v1513_v17 }
 0x557   :  { %v1518_v21 = vmul.f32 %v2169_v15, %v1517_v19 }
 0x559   :  { %v1519_v25 = vmul.f32 0.5, %v1518_v21 }
 0x55b   :  { %v1520_v26 = vsub.f32 1.5, %v1519_v25 }
 0x55c   :  { %v2171_v27 = vpop.eup %2170 }
 0x55d   :  { %v1521_v30 = vmul.f32 %v2169_v15, %v1520_v26  ;;  %v1527_v18 = vmul.f32 %v2171_v27, %v1513_v17  ;;  %vm1533_vm11 = vweird.f32 %v2171_v27 }
 0x55e   :  { %vm1534_vm13 = vmor %vm1532_vm12, %vm1533_vm11 }
 0x55f   :  { %v1525_v31 = vsel %vm1524_vm10, %v2169_v15, %v1521_v30  ;;  %v1528_v63 = vmul.f32 %v2171_v27, %v1527_v18 }
 0x560   :  { %v1556_v2 = vmul.f32 %v1525_v31, %v1475_v10 }
 0x561   :  { %v1529_v33 = vmul.f32 0.5, %v1528_v63 }
 0x562   :  { %v1564_v34 = vmul.f32 %v2073_v8, %v1556_v2 }
 0x563   :  { %v1530_v35 = vsub.f32 1.5, %v1529_v33 }
 0x564   :  { %1568 = vst.msk [vmem:[#allocation2] sm:$0xff] %vm1488_vm6, %v1564_v34 }
 0x565   :  { %v1531_v55 = vmul.f32 %v2171_v27, %v1530_v35 }
 0x567   :  { %v1535_v37 = vsel %vm1534_vm13, %v2171_v27, %v1531_v55 }
 0x568   :  { %v1557_v23 = vmul.f32 %v1535_v37, %v1477_v57 }
 0x56a   :  { %v1497_v38 = vpop.xlane.xlu2 %1496  ;;  %v1565_v39 = vmul.f32 %v2073_v8, %v1557_v23 }
 0x56b   :  { %v1510_v32 = vmul.f32 %v1507_v9, %v1497_v38 }
 0x56c   :  { %1569 = vst.msk [vmem:[#allocation2 + $0x8] sm:$0xff] %vm1488_vm6, %v1565_v39 }
 0x56d   :  { %v1514_v40 = vadd.f32 1e-06, %v1510_v32 }
 0x56f   :  { %2172 = vrsqrt.f32 %v1514_v40  ;;  %vm1542_vm15 = vweird.f32 %v1514_v40 }
 0x572   :  { %v1500_v16 = vpop.xlane.xlu0 %1499 }
 0x573   :  { %v1511_v5 = vmul.f32 %v1507_v9, %v1500_v16 }
 0x575   :  { %v2173_v0 = vpop.eup %2172  ;;  %v1515_v41 = vadd.f32 1e-06, %v1511_v5 }
 0x576   :  { %v1537_v28 = vmul.f32 %v2173_v0, %v1514_v40  ;;  %vm1543_vm14 = vweird.f32 %v2173_v0 }
 0x577   :  { %2174 = vrsqrt.f32 %v1515_v41  ;;  %vm1544_vm0 = vmor %vm1542_vm15, %vm1543_vm14  ;;  %vm1552_vm1 = vweird.f32 %v1515_v41 }
 0x578   :  { %v1538_v45 = vmul.f32 %v2173_v0, %v1537_v28 }
 0x57a   :  { %v1539_v20 = vmul.f32 0.5, %v1538_v45 }
 0x57c   :  { %v1540_v48 = vsub.f32 1.5, %v1539_v20 }
 0x57d   :  { %v2175_v10 = vpop.eup %2174 }
 0x57e   :  { %v1541_v29 = vmul.f32 %v2173_v0, %v1540_v48  ;;  %v1547_v4 = vmul.f32 %v2175_v10, %v1515_v41  ;;  %vm1553_vm2 = vweird.f32 %v2175_v10 }
 0x57f   :  { %vm1554_vm3 = vmor %vm1552_vm1, %vm1553_vm2 }
 0x580   :  { %v1545_v13 = vsel %vm1544_vm0, %v2173_v0, %v1541_v29  ;;  %v1548_v56 = vmul.f32 %v2175_v10, %v1547_v4 }
 0x581   :  { %v1558_v42 = vmul.f32 %v1545_v13, %v3111_v53 }
 0x582   :  { %v1549_v57 = vmul.f32 0.5, %v1548_v56 }
 0x583   :  { %v1566_v6 = vmul.f32 %v2073_v8, %v1558_v42 }
 0x584   :  { %v1550_v46 = vsub.f32 1.5, %v1549_v57 }
 0x585   :  { %1570 = vst.msk [vmem:[#allocation2 + $0x10] sm:$0xff] %vm1488_vm6, %v1566_v6 }
 0x586   :  { %v1551_v49 = vmul.f32 %v2175_v10, %v1550_v46 }
 0x588   :  { %v1555_v52 = vsel %vm1554_vm3, %v2175_v10, %v1551_v49 }
 0x589   :  { %v1559_v47 = vmul.f32 %v1555_v52, %v3116_v59 }
 0x58b   :  { %v1567_v53 = vmul.f32 %v2073_v8, %v1559_v47 }
 0x58d   :  { %1571 = vst.msk [vmem:[#allocation2 + $0x18] sm:$0xff] %vm1488_vm6, %v1567_v53 }
 0x58e   :  { %1584 = dma.vmem_to_hbm [thread:$0]  %s1577_s19, 512, %s1579_s22, [#allocation3], %s2206_s1, %s2206_s1, %s2207_s23  }
 0x58f   :  { %2200 = dma.done.wait [#allocation3], 512  }
 0x590   :  { %2201 = vsyncadd [#allocation3], 4294966784 }
 0x591   :  { %1589 = vsyncpa [#allocation3], 1 }

</bundles_post_ra>
